<compile_context>
chip_gen: v7x
topology: tpu7x:2x2x1
jax: 0.10.0
libtpu: 0.0.40
codegen_flags: <defaults>
</compile_context>

<pallas_src>
import jax
import jax.numpy as jnp
from jax import lax
from jax.experimental import pallas as pl
from jax.experimental.pallas import tpu as pltpu


OUT_LANES = 128  # FC head output padded to one full lane group; sliced to 1 in wrapper


def _lstm_kernel(x_ref, wih0_ref, whh0_ref, b0_ref, wih1_ref, whh1_ref, b1_ref,
                 wfc_ref, bfc_ref, out_ref, xproj_ref, h0s, c0s, h1s, c1s):
    t = pl.program_id(1)
    Tc, Bb, I = x_ref.shape
    Hp = h0s.shape[-1]                      # lane-aligned hidden width (mult of 128)

    @pl.when(t == 0)
    def _():
        h0s[...] = jnp.zeros_like(h0s)
        c0s[...] = jnp.zeros_like(c0s)
        h1s[...] = jnp.zeros_like(h1s)
        c1s[...] = jnp.zeros_like(c1s)

    # ---- Hoisted layer-0 input projection: one big MXU matmul per chunk.
    # (Tc*Bb, I) x (I, 4Hp) + b0 -> f32 scratch.  Removes the dependent
    # x-projection matmul and the [x_t, h] lane concat from the serial chain.
    x_flat = x_ref[...].reshape(Tc * Bb, I).astype(wih0_ref.dtype)
    xproj_ref[...] = (jnp.dot(x_flat, wih0_ref[...],
                              preferred_element_type=jnp.float32)
                      + b0_ref[...]).reshape(Tc, Bb, 4 * Hp)

    # ---- Hoist weight / bias loads out of the time loop (no per-step broadcasts).
    whh0 = whh0_ref[...]
    wih1 = wih1_ref[...]
    whh1 = whh1_ref[...]
    b1 = b1_ref[...]
    cdt = whh0.dtype

    def gate_math(gates, c):
        # Gate column order is [i, f, o, g] (reordered host-side) and every gate
        # block is zero-padded to Hp lanes -> all slices are 128-lane aligned.
        sig = jax.nn.sigmoid(gates[:, :3 * Hp])      # one contiguous EUP slab
        g = jnp.tanh(gates[:, 3 * Hp:])
        i_g = sig[:, 0:Hp]
        f_g = sig[:, Hp:2 * Hp]
        o_g = sig[:, 2 * Hp:3 * Hp]
        c_new = f_g * c + i_g * g
        h_new = o_g * jnp.tanh(c_new)
        return h_new, c_new

    def step(s, carry):
        h0, c0, h1, c1 = carry
        # Layer 0: input projection precomputed; only the recurrent dot remains.
        g0 = xproj_ref[s] + jnp.dot(h0.astype(cdt), whh0,
                                    preferred_element_type=jnp.float32)
        h0, c0 = gate_math(g0, c0)
        # Layer 1: two independent dots, no lane concat of [h0, h1].
        g1 = (jnp.dot(h0.astype(cdt), wih1, preferred_element_type=jnp.float32)
              + jnp.dot(h1.astype(cdt), whh1, preferred_element_type=jnp.float32)
              + b1)
        h1, c1 = gate_math(g1, c1)
        return (h0, c0, h1, c1)

    carry0 = (h0s[...], c0s[...], h1s[...], c1s[...])
    unroll = True if Tc <= 16 else 8
    h0, c0, h1, c1 = lax.fori_loop(0, Tc, step, carry0, unroll=unroll)

    h0s[...] = h0
    c0s[...] = c0
    h1s[...] = h1
    c1s[...] = c1

    # FC head on the final layer-1 hidden state; output lane-padded to 128.
    @pl.when(t == pl.num_programs(1) - 1)
    def _():
        out_ref[...] = (jnp.dot(h1.astype(wfc_ref.dtype), wfc_ref[...],
                                preferred_element_type=jnp.float32)
                        + bfc_ref[...])


def _round_up(n, m):
    return ((n + m - 1) // m) * m


def _prep_gate_cols(w, H, Hp):
    """Reorder the last dim from PyTorch gate order [i, f, g, o] to [i, f, o, g]
    and zero-pad each gate block from H to Hp columns (lane aligned)."""
    i, f, g, o = jnp.split(w, 4, axis=-1)
    pad = [(0, 0)] * (w.ndim - 1) + [(0, Hp - H)]
    return jnp.concatenate([jnp.pad(blk, pad) for blk in (i, f, o, g)], axis=-1)


def _pad_rows(w, rows):
    return jnp.pad(w, ((0, rows - w.shape[0]),) + ((0, 0),) * (w.ndim - 1))


def lstm_model_forward(x, params, *, compute_dtype=jnp.bfloat16,
                       time_chunk=None, batch_block=None):
    """x: (B, T, I) float32.  Returns (B, 1) float32."""
    B, T, I = x.shape
    H = params["whh0"].shape[0]
    Hp = _round_up(H, 128)                  # lane-aligned hidden width

    # Pad batch to the sublane width (>= 8); padded rows are discarded at the end.
    B_pad = max(8, _round_up(B, 8))
    # (T, B, I) dense chunks; x streamed in the compute dtype (bf16 halves DMA).
    # NOTE: bf16 x/h rounding compounds over timesteps; for very long sequences
    # use compute_dtype=jnp.float32.
    xt = jnp.transpose(x, (1, 0, 2)).astype(compute_dtype)
    if B_pad != B:
        xt = jnp.pad(xt, ((0, 0), (0, B_pad - B), (0, 0)))

    # Host-side weight prep: split W_ih / W_hh (layer-0 input projection is hoisted
    # in-kernel), reorder gate columns [i,f,g,o]->[i,f,o,g], lane-pad each gate to
    # Hp, pad contraction rows to Hp, weights in compute dtype, biases f32.
    wih0 = _prep_gate_cols(params["wih0"], H, Hp).astype(compute_dtype)           # (I, 4Hp)
    whh0 = _pad_rows(_prep_gate_cols(params["whh0"], H, Hp), Hp).astype(compute_dtype)
    wih1 = _pad_rows(_prep_gate_cols(params["wih1"], H, Hp), Hp).astype(compute_dtype)
    whh1 = _pad_rows(_prep_gate_cols(params["whh1"], H, Hp), Hp).astype(compute_dtype)
    b0 = _prep_gate_cols(params["b0"], H, Hp).astype(jnp.float32)                 # (1, 4Hp)
    b1 = _prep_gate_cols(params["b1"], H, Hp).astype(jnp.float32)
    wfc = jnp.pad(params["wfc"], ((0, Hp - H), (0, OUT_LANES - 1))).astype(compute_dtype)
    bfc = jnp.pad(params["bfc"], ((0, 0), (0, OUT_LANES - 1))).astype(jnp.float32)

    # Split the batch across v7x's two TensorCores when it is big enough
    # (harmless sequential no-op on single-TC v5e/v6e).
    if batch_block is None:
        batch_block = B_pad // 2 if (B_pad >= 16 and (B_pad // 2) % 8 == 0) else B_pad
    assert B_pad % batch_block == 0 and batch_block % 8 == 0
    nb = B_pad // batch_block

    # Time chunking: largest divisor of T whose per-chunk footprint (x chunk +
    # f32 input-projection scratch) stays within a few MiB, so the chunk t+1 DMA
    # overlaps compute of chunk t.
    x_item = jnp.dtype(compute_dtype).itemsize
    if time_chunk is None:
        def chunk_bytes(tc):
            return tc * batch_block * (I * x_item + 4 * Hp * 4)
        time_chunk = 1
        for tc in range(1, T + 1):
            if T % tc == 0 and chunk_bytes(tc) <= (4 << 20):
                time_chunk = tc
    assert T % time_chunk == 0, "time_chunk must divide T"
    n_chunks = T // time_chunk
    single_step = (nb * n_chunks == 1)

    # Constant-index blocks (weights/biases): single-buffered.
    def const(shape):
        zeros = (0,) * len(shape)
        return pl.BlockSpec(shape, lambda b, t: zeros, pipeline_mode=pl.Buffered(1))

    if single_step:
        # Only one grid step: a second x buffer would be dead VMEM.
        x_spec = pl.BlockSpec((time_chunk, batch_block, I), lambda b, t: (t, b, 0),
                              pipeline_mode=pl.Buffered(1))
    else:
        x_spec = pl.BlockSpec((time_chunk, batch_block, I), lambda b, t: (t, b, 0))

    # Explicit VMEM budget (no double counting), capped at 40 MiB for v7x (64 MiB
    # physical) while still valid on v5e/v6e.
    cd_item = jnp.dtype(compute_dtype).itemsize
    w_bytes = (I * 4 * Hp + 3 * Hp * 4 * Hp + Hp * OUT_LANES) * cd_item
    b_bytes = (2 * 4 * Hp + OUT_LANES) * 8 * 4            # (1, N) pads sublanes to 8
    x_bytes = (1 if single_step else 2) * time_chunk * batch_block * I * x_item
    s_bytes = (time_chunk * batch_block * 4 * Hp + 4 * batch_block * Hp) * 4
    o_bytes = 2 * batch_block * OUT_LANES * 4
    total = w_bytes + b_bytes + x_bytes + s_bytes + o_bytes
    vmem_limit = int(min(max(int(1.5 * total) + (4 << 20), 16 << 20), 40 << 20))

    out = pl.pallas_call(
        _lstm_kernel,
        out_shape=jax.ShapeDtypeStruct((B_pad, OUT_LANES), jnp.float32),
        grid_spec=pltpu.PrefetchScalarGridSpec(
            num_scalar_prefetch=0,
            grid=(nb, n_chunks),
            in_specs=[
                x_spec,                                     # x chunk (Tc, Bb, I)
                const((I, 4 * Hp)),                         # W_ih layer 0
                const((Hp, 4 * Hp)),                        # W_hh layer 0
                const((1, 4 * Hp)),                         # bias layer 0
                const((Hp, 4 * Hp)),                        # W_ih layer 1
                const((Hp, 4 * Hp)),                        # W_hh layer 1
                const((1, 4 * Hp)),                         # bias layer 1
                const((Hp, OUT_LANES)),                     # fc weight (lane padded)
                const((1, OUT_LANES)),                      # fc bias
            ],
            out_specs=pl.BlockSpec((batch_block, OUT_LANES), lambda b, t: (b, 0)),
            scratch_shapes=[
                pltpu.VMEM((time_chunk, batch_block, 4 * Hp), jnp.float32),  # x proj
                pltpu.VMEM((batch_block, Hp), jnp.float32),  # h layer 0
                pltpu.VMEM((batch_block, Hp), jnp.float32),  # c layer 0
                pltpu.VMEM((batch_block, Hp), jnp.float32),  # h layer 1
                pltpu.VMEM((batch_block, Hp), jnp.float32),  # c layer 1
            ],
        ),
        compiler_params=pltpu.CompilerParams(
            dimension_semantics=("parallel", "arbitrary"),
            vmem_limit_bytes=vmem_limit),
    )(xt, wih0, whh0, b0, wih1, whh1, b1, wfc, bfc)
    return out[:B, :1]


def lstm_model_reference(x, params):
    """Pure-JAX reference (same math as torch.nn.LSTM + Linear), f32 throughout."""
    B, T, I = x.shape
    H = params["whh0"].shape[0]

    def cell(x_in, h, c, wih, whh, b):
        gates = x_in @ wih + h @ whh + b
        i = jax.nn.sigmoid(gates[:, 0:H])
        f = jax.nn.sigmoid(gates[:, H:2 * H])
        g = jnp.tanh(gates[:, 2 * H:3 * H])
        o = jax.nn.sigmoid(gates[:, 3 * H:4 * H])
        c_new = f * c + i * g
        h_new = o * jnp.tanh(c_new)
        return h_new, c_new

    def step(carry, x_t):
        h0, c0, h1, c1 = carry
        h0, c0 = cell(x_t, h0, c0, params["wih0"], params["whh0"], params["b0"])
        h1, c1 = cell(h0, h1, c1, params["wih1"], params["whh1"], params["b1"])
        return (h0, c0, h1, c1), h1

    zeros = jnp.zeros((B, H), jnp.float32)
    (_, _, _, _), hs = lax.scan(step, (zeros,) * 4, jnp.swapaxes(x, 0, 1))
    last = hs[-1]
    return last @ params["wfc"] + params["bfc"]


def init_params(key, input_size, hidden_size):
    """Deterministic init matching PyTorch shapes: U(-1/sqrt(H), 1/sqrt(H)).
    Gate order is PyTorch's [i, f, g, o]; weights stored transposed (in, 4H)."""
    H = hidden_size
    bound = 1.0 / jnp.sqrt(jnp.float32(H))
    ks = jax.random.split(key, 9)
    u = lambda k, shape: jax.random.uniform(k, shape, jnp.float32, -bound, bound)
    return {
        "wih0": u(ks[0], (input_size, 4 * H)),
        "whh0": u(ks[1], (H, 4 * H)),
        "b0":   u(ks[2], (1, 4 * H)) + u(ks[3], (1, 4 * H)),   # b_ih + b_hh
        "wih1": u(ks[4], (H, 4 * H)),
        "whh1": u(ks[5], (H, 4 * H)),
        "b1":   u(ks[6], (1, 4 * H)) + u(ks[7], (1, 4 * H)),
        "wfc":  u(ks[8], (H, 1)),
        "bfc":  jnp.zeros((1, 1), jnp.float32),
    }


if __name__ == "__main__":
    B, T, I, H = 2, 8, 16, 64   # module default hidden_size=64, num_layers=2

    key = jax.random.PRNGKey(0)
    kx, kp = jax.random.split(key)
    x = jax.random.normal(kx, (B, T, I), jnp.float32)
    params = init_params(kp, I, H)

    ref = jax.block_until_ready(lstm_model_reference(x, params))

    # f32-weight path: exact correctness check.
    out_f32 = jax.block_until_ready(
        lstm_model_forward(x, params, compute_dtype=jnp.float32))
    assert out_f32.shape == (B, 1)
    assert jnp.allclose(out_f32, ref, atol=1e-4, rtol=1e-4), (out_f32, ref)

    # bf16-weight path (default, faster): looser tolerance.
    out_bf16 = jax.block_until_ready(lstm_model_forward(x, params))
    assert out_bf16.shape == (B, 1)
    assert jnp.allclose(out_bf16, ref, atol=3e-2, rtol=3e-2), (out_bf16, ref)

    print("KERNEL_OK")
</pallas_src>

<mosaic_0001>
module attributes {stable_mosaic.version = 11 : i64} {
  func.func @_lstm_kernel(%arg0: i32, %arg1: i32, %arg2: memref<8x8x16xf32, #tpu.memory_space<vmem>>, %arg3: memref<16x512xf32, #tpu.memory_space<vmem>>, %arg4: memref<128x512xf32, #tpu.memory_space<vmem>>, %arg5: memref<1x512xf32, #tpu.memory_space<vmem>>, %arg6: memref<128x512xf32, #tpu.memory_space<vmem>>, %arg7: memref<128x512xf32, #tpu.memory_space<vmem>>, %arg8: memref<1x512xf32, #tpu.memory_space<vmem>>, %arg9: memref<128x128xf32, #tpu.memory_space<vmem>>, %arg10: memref<1x128xf32, #tpu.memory_space<vmem>>, %arg11: memref<8x128xf32, #tpu.memory_space<vmem>>, %arg12: memref<8x8x512xf32, #tpu.memory_space<vmem>>, %arg13: memref<8x128xf32, #tpu.memory_space<vmem>>, %arg14: memref<8x128xf32, #tpu.memory_space<vmem>>, %arg15: memref<8x128xf32, #tpu.memory_space<vmem>>, %arg16: memref<8x128xf32, #tpu.memory_space<vmem>>) attributes {dimension_semantics = [#tpu.dimension_semantics<parallel>, #tpu.dimension_semantics<arbitrary>], iteration_bounds = array<i64: 1, 1>, scalar_prefetch = 0 : i64, scratch_operands = 5 : i64, tpu.core_type = #tpu.core_type<tc>, window_params = [{pipeline_mode = #tpu.pipeline_mode<synchronous>, transform_indices = @transform_0, window_bounds = array<i64: 8, 8, 16>}, {pipeline_mode = #tpu.pipeline_mode<synchronous>, transform_indices = @transform_1, window_bounds = array<i64: 16, 512>}, {pipeline_mode = #tpu.pipeline_mode<synchronous>, transform_indices = @transform_2, window_bounds = array<i64: 128, 512>}, {pipeline_mode = #tpu.pipeline_mode<synchronous>, transform_indices = @transform_3, window_bounds = array<i64: 1, 512>}, {pipeline_mode = #tpu.pipeline_mode<synchronous>, transform_indices = @transform_4, window_bounds = array<i64: 128, 512>}, {pipeline_mode = #tpu.pipeline_mode<synchronous>, transform_indices = @transform_5, window_bounds = array<i64: 128, 512>}, {pipeline_mode = #tpu.pipeline_mode<synchronous>, transform_indices = @transform_6, window_bounds = array<i64: 1, 512>}, {pipeline_mode = #tpu.pipeline_mode<synchronous>, transform_indices = @transform_7, window_bounds = array<i64: 128, 128>}, {pipeline_mode = #tpu.pipeline_mode<synchronous>, transform_indices = @transform_8, window_bounds = array<i64: 1, 128>}, {transform_indices = @transform_9, window_bounds = array<i64: 8, 128>}]} {
    %c0_i32 = arith.constant 0 : i32
    %0 = arith.cmpi eq, %arg1, %c0_i32 : i32
    %1 = arith.extui %0 : i1 to i32
    %c0_i32_0 = arith.constant 0 : i32
    %2 = arith.cmpi ne, %1, %c0_i32_0 : i32
    scf.if %2 {
      %cst_93 = arith.constant 0.000000e+00 : f32
      %363 = vector.broadcast %cst_93 : f32 to vector<8x128xf32>
      %c0_94 = arith.constant 0 : index
      %c0_95 = arith.constant 0 : index
      %364 = vector.load %arg13[%c0_94, %c0_95] : memref<8x128xf32, #tpu.memory_space<vmem>>, vector<8x128xf32>
      tpu.vector_store %arg13[%c0_94, %c0_95], %363 {strides = array<i32>} : memref<8x128xf32, #tpu.memory_space<vmem>>, vector<8x128xf32>,
      %cst_96 = arith.constant 0.000000e+00 : f32
      %365 = vector.broadcast %cst_96 : f32 to vector<8x128xf32>
      %c0_97 = arith.constant 0 : index
      %c0_98 = arith.constant 0 : index
      %366 = vector.load %arg14[%c0_97, %c0_98] : memref<8x128xf32, #tpu.memory_space<vmem>>, vector<8x128xf32>
      tpu.vector_store %arg14[%c0_97, %c0_98], %365 {strides = array<i32>} : memref<8x128xf32, #tpu.memory_space<vmem>>, vector<8x128xf32>,
      %cst_99 = arith.constant 0.000000e+00 : f32
      %367 = vector.broadcast %cst_99 : f32 to vector<8x128xf32>
      %c0_100 = arith.constant 0 : index
      %c0_101 = arith.constant 0 : index
      %368 = vector.load %arg15[%c0_100, %c0_101] : memref<8x128xf32, #tpu.memory_space<vmem>>, vector<8x128xf32>
      tpu.vector_store %arg15[%c0_100, %c0_101], %367 {strides = array<i32>} : memref<8x128xf32, #tpu.memory_space<vmem>>, vector<8x128xf32>,
      %cst_102 = arith.constant 0.000000e+00 : f32
      %369 = vector.broadcast %cst_102 : f32 to vector<8x128xf32>
      %c0_103 = arith.constant 0 : index
      %c0_104 = arith.constant 0 : index
      %370 = vector.load %arg16[%c0_103, %c0_104] : memref<8x128xf32, #tpu.memory_space<vmem>>, vector<8x128xf32>
      tpu.vector_store %arg16[%c0_103, %c0_104], %369 {strides = array<i32>} : memref<8x128xf32, #tpu.memory_space<vmem>>, vector<8x128xf32>,
    } else {
    }
    %c0 = arith.constant 0 : index
    %c0_1 = arith.constant 0 : index
    %c0_2 = arith.constant 0 : index
    %3 = vector.load %arg2[%c0, %c0_1, %c0_2] : memref<8x8x16xf32, #tpu.memory_space<vmem>>, vector<8x8x16xf32>
    %4 = vector.shape_cast %3 : vector<8x8x16xf32> to vector<64x16xf32>
    %c0_3 = arith.constant 0 : index
    %c0_4 = arith.constant 0 : index
    %5 = vector.load %arg3[%c0_3, %c0_4] : memref<16x512xf32, #tpu.memory_space<vmem>>, vector<16x512xf32>
    %cst = arith.constant dense<0.000000e+00> : vector<64x512xf32>
    %6 = tpu.matmul %4, %5, %cst {dimension_numbers = #tpu.dot_dimension_numbers<[1], [0], [0], [1], [0, 0, 1, 1], [], []>} : vector<64x16xf32>, vector<16x512xf32>, vector<64x512xf32> -> vector<64x512xf32>
    %c0_5 = arith.constant 0 : index
    %c0_6 = arith.constant 0 : index
    %7 = vector.load %arg5[%c0_5, %c0_6] : memref<1x512xf32, #tpu.memory_space<vmem>>, vector<1x512xf32>
    %8 = vector.broadcast %7 : vector<1x512xf32> to vector<64x512xf32>
    %9 = arith.addf %6, %8 : vector<64x512xf32>
    %10 = vector.shape_cast %9 : vector<64x512xf32> to vector<8x8x512xf32>
    %c0_7 = arith.constant 0 : index
    %c0_8 = arith.constant 0 : index
    %c0_9 = arith.constant 0 : index
    %11 = vector.load %arg12[%c0_7, %c0_8, %c0_9] : memref<8x8x512xf32, #tpu.memory_space<vmem>>, vector<8x8x512xf32>
    tpu.vector_store %arg12[%c0_7, %c0_8, %c0_9], %10 {strides = array<i32>} : memref<8x8x512xf32, #tpu.memory_space<vmem>>, vector<8x8x512xf32>,
    %c0_10 = arith.constant 0 : index
    %c0_11 = arith.constant 0 : index
    %12 = vector.load %arg4[%c0_10, %c0_11] : memref<128x512xf32, #tpu.memory_space<vmem>>, vector<128x512xf32>
    %c0_12 = arith.constant 0 : index
    %c0_13 = arith.constant 0 : index
    %13 = vector.load %arg6[%c0_12, %c0_13] : memref<128x512xf32, #tpu.memory_space<vmem>>, vector<128x512xf32>
    %c0_14 = arith.constant 0 : index
    %c0_15 = arith.constant 0 : index
    %14 = vector.load %arg7[%c0_14, %c0_15] : memref<128x512xf32, #tpu.memory_space<vmem>>, vector<128x512xf32>
    %c0_16 = arith.constant 0 : index
    %c0_17 = arith.constant 0 : index
    %15 = vector.load %arg8[%c0_16, %c0_17] : memref<1x512xf32, #tpu.memory_space<vmem>>, vector<1x512xf32>
    %c0_18 = arith.constant 0 : index
    %c0_19 = arith.constant 0 : index
    %16 = vector.load %arg13[%c0_18, %c0_19] : memref<8x128xf32, #tpu.memory_space<vmem>>, vector<8x128xf32>
    %c0_20 = arith.constant 0 : index
    %c0_21 = arith.constant 0 : index
    %17 = vector.load %arg14[%c0_20, %c0_21] : memref<8x128xf32, #tpu.memory_space<vmem>>, vector<8x128xf32>
    %c0_22 = arith.constant 0 : index
    %c0_23 = arith.constant 0 : index
    %18 = vector.load %arg15[%c0_22, %c0_23] : memref<8x128xf32, #tpu.memory_space<vmem>>, vector<8x128xf32>
    %c0_24 = arith.constant 0 : index
    %c0_25 = arith.constant 0 : index
    %19 = vector.load %arg16[%c0_24, %c0_25] : memref<8x128xf32, #tpu.memory_space<vmem>>, vector<8x128xf32>
    %c0_i32_26 = arith.constant 0 : i32
    %20 = arith.index_cast %c0_i32_26 : i32 to index
    %c0_27 = arith.constant 0 : index
    %c0_28 = arith.constant 0 : index
    %21 = vector.load %arg12[%20, %c0_27, %c0_28] : memref<8x8x512xf32, #tpu.memory_space<vmem>>, vector<1x8x512xf32>
    %22 = vector.shape_cast %21 : vector<1x8x512xf32> to vector<8x512xf32>
    %cst_29 = arith.constant dense<0.000000e+00> : vector<8x512xf32>
    %23 = tpu.matmul %16, %12, %cst_29 {dimension_numbers = #tpu.dot_dimension_numbers<[1], [0], [0], [1], [0, 0, 1, 1], [], []>} : vector<8x128xf32>, vector<128x512xf32>, vector<8x512xf32> -> vector<8x512xf32>
    %24 = arith.addf %22, %23 : vector<8x512xf32>
    %25 = vector.extract_strided_slice %24 {offsets = [0, 0], sizes = [8, 384], strides = [1, 1]} : vector<8x512xf32> to vector<8x384xf32>
    %26 = arith.negf %25 : vector<8x384xf32>
    %27 = math.exp %26 : vector<8x384xf32>
    %cst_30 = arith.constant 1.000000e+00 : f32
    %28 = vector.broadcast %cst_30 : f32 to vector<8x384xf32>
    %29 = arith.addf %28, %27 : vector<8x384xf32>
    %30 = arith.divf %28, %29 : vector<8x384xf32>
    %31 = vector.extract_strided_slice %24 {offsets = [0, 384], sizes = [8, 128], strides = [1, 1]} : vector<8x512xf32> to vector<8x128xf32>
    %32 = math.tanh %31 : vector<8x128xf32>
    %33 = vector.extract_strided_slice %30 {offsets = [0, 0], sizes = [8, 128], strides = [1, 1]} : vector<8x384xf32> to vector<8x128xf32>
    %34 = vector.extract_strided_slice %30 {offsets = [0, 128], sizes = [8, 128], strides = [1, 1]} : vector<8x384xf32> to vector<8x128xf32>
    %35 = vector.extract_strided_slice %30 {offsets = [0, 256], sizes = [8, 128], strides = [1, 1]} : vector<8x384xf32> to vector<8x128xf32>
    %36 = arith.mulf %34, %17 : vector<8x128xf32>
    %37 = arith.mulf %33, %32 : vector<8x128xf32>
    %38 = arith.addf %36, %37 : vector<8x128xf32>
    %39 = math.tanh %38 : vector<8x128xf32>
    %40 = arith.mulf %35, %39 : vector<8x128xf32>
    %cst_31 = arith.constant dense<0.000000e+00> : vector<8x512xf32>
    %41 = tpu.matmul %40, %13, %cst_31 {dimension_numbers = #tpu.dot_dimension_numbers<[1], [0], [0], [1], [0, 0, 1, 1], [], []>} : vector<8x128xf32>, vector<128x512xf32>, vector<8x512xf32> -> vector<8x512xf32>
    %cst_32 = arith.constant dense<0.000000e+00> : vector<8x512xf32>
    %42 = tpu.matmul %18, %14, %cst_32 {dimension_numbers = #tpu.dot_dimension_numbers<[1], [0], [0], [1], [0, 0, 1, 1], [], []>} : vector<8x128xf32>, vector<128x512xf32>, vector<8x512xf32> -> vector<8x512xf32>
    %43 = arith.addf %41, %42 : vector<8x512xf32>
    %44 = vector.broadcast %15 : vector<1x512xf32> to vector<8x512xf32>
    %45 = arith.addf %43, %44 : vector<8x512xf32>
    %46 = vector.extract_strided_slice %45 {offsets = [0, 0], sizes = [8, 384], strides = [1, 1]} : vector<8x512xf32> to vector<8x384xf32>
    %47 = arith.negf %46 : vector<8x384xf32>
    %48 = math.exp %47 : vector<8x384xf32>
    %cst_33 = arith.constant 1.000000e+00 : f32
    %49 = vector.broadcast %cst_33 : f32 to vector<8x384xf32>
    %50 = arith.addf %49, %48 : vector<8x384xf32>
    %51 = arith.divf %49, %50 : vector<8x384xf32>
    %52 = vector.extract_strided_slice %45 {offsets = [0, 384], sizes = [8, 128], strides = [1, 1]} : vector<8x512xf32> to vector<8x128xf32>
    %53 = math.tanh %52 : vector<8x128xf32>
    %54 = vector.extract_strided_slice %51 {offsets = [0, 0], sizes = [8, 128], strides = [1, 1]} : vector<8x384xf32> to vector<8x128xf32>
    %55 = vector.extract_strided_slice %51 {offsets = [0, 128], sizes = [8, 128], strides = [1, 1]} : vector<8x384xf32> to vector<8x128xf32>
    %56 = vector.extract_strided_slice %51 {offsets = [0, 256], sizes = [8, 128], strides = [1, 1]} : vector<8x384xf32> to vector<8x128xf32>
    %57 = arith.mulf %55, %19 : vector<8x128xf32>
    %58 = arith.mulf %54, %53 : vector<8x128xf32>
    %59 = arith.addf %57, %58 : vector<8x128xf32>
    %60 = math.tanh %59 : vector<8x128xf32>
    %61 = arith.mulf %56, %60 : vector<8x128xf32>
    %c1_i32 = arith.constant 1 : i32
    %62 = arith.index_cast %c1_i32 : i32 to index
    %c0_34 = arith.constant 0 : index
    %c0_35 = arith.constant 0 : index
    %63 = vector.load %arg12[%62, %c0_34, %c0_35] : memref<8x8x512xf32, #tpu.memory_space<vmem>>, vector<1x8x512xf32>
    %64 = vector.shape_cast %63 : vector<1x8x512xf32> to vector<8x512xf32>
    %cst_36 = arith.constant dense<0.000000e+00> : vector<8x512xf32>
    %65 = tpu.matmul %40, %12, %cst_36 {dimension_numbers = #tpu.dot_dimension_numbers<[1], [0], [0], [1], [0, 0, 1, 1], [], []>} : vector<8x128xf32>, vector<128x512xf32>, vector<8x512xf32> -> vector<8x512xf32>
    %66 = arith.addf %64, %65 : vector<8x512xf32>
    %67 = vector.extract_strided_slice %66 {offsets = [0, 0], sizes = [8, 384], strides = [1, 1]} : vector<8x512xf32> to vector<8x384xf32>
    %68 = arith.negf %67 : vector<8x384xf32>
    %69 = math.exp %68 : vector<8x384xf32>
    %cst_37 = arith.constant 1.000000e+00 : f32
    %70 = vector.broadcast %cst_37 : f32 to vector<8x384xf32>
    %71 = arith.addf %70, %69 : vector<8x384xf32>
    %72 = arith.divf %70, %71 : vector<8x384xf32>
    %73 = vector.extract_strided_slice %66 {offsets = [0, 384], sizes = [8, 128], strides = [1, 1]} : vector<8x512xf32> to vector<8x128xf32>
    %74 = math.tanh %73 : vector<8x128xf32>
    %75 = vector.extract_strided_slice %72 {offsets = [0, 0], sizes = [8, 128], strides = [1, 1]} : vector<8x384xf32> to vector<8x128xf32>
    %76 = vector.extract_strided_slice %72 {offsets = [0, 128], sizes = [8, 128], strides = [1, 1]} : vector<8x384xf32> to vector<8x128xf32>
    %77 = vector.extract_strided_slice %72 {offsets = [0, 256], sizes = [8, 128], strides = [1, 1]} : vector<8x384xf32> to vector<8x128xf32>
    %78 = arith.mulf %76, %38 : vector<8x128xf32>
    %79 = arith.mulf %75, %74 : vector<8x128xf32>
    %80 = arith.addf %78, %79 : vector<8x128xf32>
    %81 = math.tanh %80 : vector<8x128xf32>
    %82 = arith.mulf %77, %81 : vector<8x128xf32>
    %cst_38 = arith.constant dense<0.000000e+00> : vector<8x512xf32>
    %83 = tpu.matmul %82, %13, %cst_38 {dimension_numbers = #tpu.dot_dimension_numbers<[1], [0], [0], [1], [0, 0, 1, 1], [], []>} : vector<8x128xf32>, vector<128x512xf32>, vector<8x512xf32> -> vector<8x512xf32>
    %cst_39 = arith.constant dense<0.000000e+00> : vector<8x512xf32>
    %84 = tpu.matmul %61, %14, %cst_39 {dimension_numbers = #tpu.dot_dimension_numbers<[1], [0], [0], [1], [0, 0, 1, 1], [], []>} : vector<8x128xf32>, vector<128x512xf32>, vector<8x512xf32> -> vector<8x512xf32>
    %85 = arith.addf %83, %84 : vector<8x512xf32>
    %86 = vector.broadcast %15 : vector<1x512xf32> to vector<8x512xf32>
    %87 = arith.addf %85, %86 : vector<8x512xf32>
    %88 = vector.extract_strided_slice %87 {offsets = [0, 0], sizes = [8, 384], strides = [1, 1]} : vector<8x512xf32> to vector<8x384xf32>
    %89 = arith.negf %88 : vector<8x384xf32>
    %90 = math.exp %89 : vector<8x384xf32>
    %cst_40 = arith.constant 1.000000e+00 : f32
    %91 = vector.broadcast %cst_40 : f32 to vector<8x384xf32>
    %92 = arith.addf %91, %90 : vector<8x384xf32>
    %93 = arith.divf %91, %92 : vector<8x384xf32>
    %94 = vector.extract_strided_slice %87 {offsets = [0, 384], sizes = [8, 128], strides = [1, 1]} : vector<8x512xf32> to vector<8x128xf32>
    %95 = math.tanh %94 : vector<8x128xf32>
    %96 = vector.extract_strided_slice %93 {offsets = [0, 0], sizes = [8, 128], strides = [1, 1]} : vector<8x384xf32> to vector<8x128xf32>
    %97 = vector.extract_strided_slice %93 {offsets = [0, 128], sizes = [8, 128], strides = [1, 1]} : vector<8x384xf32> to vector<8x128xf32>
    %98 = vector.extract_strided_slice %93 {offsets = [0, 256], sizes = [8, 128], strides = [1, 1]} : vector<8x384xf32> to vector<8x128xf32>
    %99 = arith.mulf %97, %59 : vector<8x128xf32>
    %100 = arith.mulf %96, %95 : vector<8x128xf32>
    %101 = arith.addf %99, %100 : vector<8x128xf32>
    %102 = math.tanh %101 : vector<8x128xf32>
    %103 = arith.mulf %98, %102 : vector<8x128xf32>
    %c2_i32 = arith.constant 2 : i32
    %104 = arith.index_cast %c2_i32 : i32 to index
    %c0_41 = arith.constant 0 : index
    %c0_42 = arith.constant 0 : index
    %105 = vector.load %arg12[%104, %c0_41, %c0_42] : memref<8x8x512xf32, #tpu.memory_space<vmem>>, vector<1x8x512xf32>
    %106 = vector.shape_cast %105 : vector<1x8x512xf32> to vector<8x512xf32>
    %cst_43 = arith.constant dense<0.000000e+00> : vector<8x512xf32>
    %107 = tpu.matmul %82, %12, %cst_43 {dimension_numbers = #tpu.dot_dimension_numbers<[1], [0], [0], [1], [0, 0, 1, 1], [], []>} : vector<8x128xf32>, vector<128x512xf32>, vector<8x512xf32> -> vector<8x512xf32>
    %108 = arith.addf %106, %107 : vector<8x512xf32>
    %109 = vector.extract_strided_slice %108 {offsets = [0, 0], sizes = [8, 384], strides = [1, 1]} : vector<8x512xf32> to vector<8x384xf32>
    %110 = arith.negf %109 : vector<8x384xf32>
    %111 = math.exp %110 : vector<8x384xf32>
    %cst_44 = arith.constant 1.000000e+00 : f32
    %112 = vector.broadcast %cst_44 : f32 to vector<8x384xf32>
    %113 = arith.addf %112, %111 : vector<8x384xf32>
    %114 = arith.divf %112, %113 : vector<8x384xf32>
    %115 = vector.extract_strided_slice %108 {offsets = [0, 384], sizes = [8, 128], strides = [1, 1]} : vector<8x512xf32> to vector<8x128xf32>
    %116 = math.tanh %115 : vector<8x128xf32>
    %117 = vector.extract_strided_slice %114 {offsets = [0, 0], sizes = [8, 128], strides = [1, 1]} : vector<8x384xf32> to vector<8x128xf32>
    %118 = vector.extract_strided_slice %114 {offsets = [0, 128], sizes = [8, 128], strides = [1, 1]} : vector<8x384xf32> to vector<8x128xf32>
    %119 = vector.extract_strided_slice %114 {offsets = [0, 256], sizes = [8, 128], strides = [1, 1]} : vector<8x384xf32> to vector<8x128xf32>
    %120 = arith.mulf %118, %80 : vector<8x128xf32>
    %121 = arith.mulf %117, %116 : vector<8x128xf32>
    %122 = arith.addf %120, %121 : vector<8x128xf32>
    %123 = math.tanh %122 : vector<8x128xf32>
    %124 = arith.mulf %119, %123 : vector<8x128xf32>
    %cst_45 = arith.constant dense<0.000000e+00> : vector<8x512xf32>
    %125 = tpu.matmul %124, %13, %cst_45 {dimension_numbers = #tpu.dot_dimension_numbers<[1], [0], [0], [1], [0, 0, 1, 1], [], []>} : vector<8x128xf32>, vector<128x512xf32>, vector<8x512xf32> -> vector<8x512xf32>
    %cst_46 = arith.constant dense<0.000000e+00> : vector<8x512xf32>
    %126 = tpu.matmul %103, %14, %cst_46 {dimension_numbers = #tpu.dot_dimension_numbers<[1], [0], [0], [1], [0, 0, 1, 1], [], []>} : vector<8x128xf32>, vector<128x512xf32>, vector<8x512xf32> -> vector<8x512xf32>
    %127 = arith.addf %125, %126 : vector<8x512xf32>
    %128 = vector.broadcast %15 : vector<1x512xf32> to vector<8x512xf32>
    %129 = arith.addf %127, %128 : vector<8x512xf32>
    %130 = vector.extract_strided_slice %129 {offsets = [0, 0], sizes = [8, 384], strides = [1, 1]} : vector<8x512xf32> to vector<8x384xf32>
    %131 = arith.negf %130 : vector<8x384xf32>
    %132 = math.exp %131 : vector<8x384xf32>
    %cst_47 = arith.constant 1.000000e+00 : f32
    %133 = vector.broadcast %cst_47 : f32 to vector<8x384xf32>
    %134 = arith.addf %133, %132 : vector<8x384xf32>
    %135 = arith.divf %133, %134 : vector<8x384xf32>
    %136 = vector.extract_strided_slice %129 {offsets = [0, 384], sizes = [8, 128], strides = [1, 1]} : vector<8x512xf32> to vector<8x128xf32>
    %137 = math.tanh %136 : vector<8x128xf32>
    %138 = vector.extract_strided_slice %135 {offsets = [0, 0], sizes = [8, 128], strides = [1, 1]} : vector<8x384xf32> to vector<8x128xf32>
    %139 = vector.extract_strided_slice %135 {offsets = [0, 128], sizes = [8, 128], strides = [1, 1]} : vector<8x384xf32> to vector<8x128xf32>
    %140 = vector.extract_strided_slice %135 {offsets = [0, 256], sizes = [8, 128], strides = [1, 1]} : vector<8x384xf32> to vector<8x128xf32>
    %141 = arith.mulf %139, %101 : vector<8x128xf32>
    %142 = arith.mulf %138, %137 : vector<8x128xf32>
    %143 = arith.addf %141, %142 : vector<8x128xf32>
    %144 = math.tanh %143 : vector<8x128xf32>
    %145 = arith.mulf %140, %144 : vector<8x128xf32>
    %c3_i32 = arith.constant 3 : i32
    %146 = arith.index_cast %c3_i32 : i32 to index
    %c0_48 = arith.constant 0 : index
    %c0_49 = arith.constant 0 : index
    %147 = vector.load %arg12[%146, %c0_48, %c0_49] : memref<8x8x512xf32, #tpu.memory_space<vmem>>, vector<1x8x512xf32>
    %148 = vector.shape_cast %147 : vector<1x8x512xf32> to vector<8x512xf32>
    %cst_50 = arith.constant dense<0.000000e+00> : vector<8x512xf32>
    %149 = tpu.matmul %124, %12, %cst_50 {dimension_numbers = #tpu.dot_dimension_numbers<[1], [0], [0], [1], [0, 0, 1, 1], [], []>} : vector<8x128xf32>, vector<128x512xf32>, vector<8x512xf32> -> vector<8x512xf32>
    %150 = arith.addf %148, %149 : vector<8x512xf32>
    %151 = vector.extract_strided_slice %150 {offsets = [0, 0], sizes = [8, 384], strides = [1, 1]} : vector<8x512xf32> to vector<8x384xf32>
    %152 = arith.negf %151 : vector<8x384xf32>
    %153 = math.exp %152 : vector<8x384xf32>
    %cst_51 = arith.constant 1.000000e+00 : f32
    %154 = vector.broadcast %cst_51 : f32 to vector<8x384xf32>
    %155 = arith.addf %154, %153 : vector<8x384xf32>
    %156 = arith.divf %154, %155 : vector<8x384xf32>
    %157 = vector.extract_strided_slice %150 {offsets = [0, 384], sizes = [8, 128], strides = [1, 1]} : vector<8x512xf32> to vector<8x128xf32>
    %158 = math.tanh %157 : vector<8x128xf32>
    %159 = vector.extract_strided_slice %156 {offsets = [0, 0], sizes = [8, 128], strides = [1, 1]} : vector<8x384xf32> to vector<8x128xf32>
    %160 = vector.extract_strided_slice %156 {offsets = [0, 128], sizes = [8, 128], strides = [1, 1]} : vector<8x384xf32> to vector<8x128xf32>
    %161 = vector.extract_strided_slice %156 {offsets = [0, 256], sizes = [8, 128], strides = [1, 1]} : vector<8x384xf32> to vector<8x128xf32>
    %162 = arith.mulf %160, %122 : vector<8x128xf32>
    %163 = arith.mulf %159, %158 : vector<8x128xf32>
    %164 = arith.addf %162, %163 : vector<8x128xf32>
    %165 = math.tanh %164 : vector<8x128xf32>
    %166 = arith.mulf %161, %165 : vector<8x128xf32>
    %cst_52 = arith.constant dense<0.000000e+00> : vector<8x512xf32>
    %167 = tpu.matmul %166, %13, %cst_52 {dimension_numbers = #tpu.dot_dimension_numbers<[1], [0], [0], [1], [0, 0, 1, 1], [], []>} : vector<8x128xf32>, vector<128x512xf32>, vector<8x512xf32> -> vector<8x512xf32>
    %cst_53 = arith.constant dense<0.000000e+00> : vector<8x512xf32>
    %168 = tpu.matmul %145, %14, %cst_53 {dimension_numbers = #tpu.dot_dimension_numbers<[1], [0], [0], [1], [0, 0, 1, 1], [], []>} : vector<8x128xf32>, vector<128x512xf32>, vector<8x512xf32> -> vector<8x512xf32>
    %169 = arith.addf %167, %168 : vector<8x512xf32>
    %170 = vector.broadcast %15 : vector<1x512xf32> to vector<8x512xf32>
    %171 = arith.addf %169, %170 : vector<8x512xf32>
    %172 = vector.extract_strided_slice %171 {offsets = [0, 0], sizes = [8, 384], strides = [1, 1]} : vector<8x512xf32> to vector<8x384xf32>
    %173 = arith.negf %172 : vector<8x384xf32>
    %174 = math.exp %173 : vector<8x384xf32>
    %cst_54 = arith.constant 1.000000e+00 : f32
    %175 = vector.broadcast %cst_54 : f32 to vector<8x384xf32>
    %176 = arith.addf %175, %174 : vector<8x384xf32>
    %177 = arith.divf %175, %176 : vector<8x384xf32>
    %178 = vector.extract_strided_slice %171 {offsets = [0, 384], sizes = [8, 128], strides = [1, 1]} : vector<8x512xf32> to vector<8x128xf32>
    %179 = math.tanh %178 : vector<8x128xf32>
    %180 = vector.extract_strided_slice %177 {offsets = [0, 0], sizes = [8, 128], strides = [1, 1]} : vector<8x384xf32> to vector<8x128xf32>
    %181 = vector.extract_strided_slice %177 {offsets = [0, 128], sizes = [8, 128], strides = [1, 1]} : vector<8x384xf32> to vector<8x128xf32>
    %182 = vector.extract_strided_slice %177 {offsets = [0, 256], sizes = [8, 128], strides = [1, 1]} : vector<8x384xf32> to vector<8x128xf32>
    %183 = arith.mulf %181, %143 : vector<8x128xf32>
    %184 = arith.mulf %180, %179 : vector<8x128xf32>
    %185 = arith.addf %183, %184 : vector<8x128xf32>
    %186 = math.tanh %185 : vector<8x128xf32>
    %187 = arith.mulf %182, %186 : vector<8x128xf32>
    %c4_i32 = arith.constant 4 : i32
    %188 = arith.index_cast %c4_i32 : i32 to index
    %c0_55 = arith.constant 0 : index
    %c0_56 = arith.constant 0 : index
    %189 = vector.load %arg12[%188, %c0_55, %c0_56] : memref<8x8x512xf32, #tpu.memory_space<vmem>>, vector<1x8x512xf32>
    %190 = vector.shape_cast %189 : vector<1x8x512xf32> to vector<8x512xf32>
    %cst_57 = arith.constant dense<0.000000e+00> : vector<8x512xf32>
    %191 = tpu.matmul %166, %12, %cst_57 {dimension_numbers = #tpu.dot_dimension_numbers<[1], [0], [0], [1], [0, 0, 1, 1], [], []>} : vector<8x128xf32>, vector<128x512xf32>, vector<8x512xf32> -> vector<8x512xf32>
    %192 = arith.addf %190, %191 : vector<8x512xf32>
    %193 = vector.extract_strided_slice %192 {offsets = [0, 0], sizes = [8, 384], strides = [1, 1]} : vector<8x512xf32> to vector<8x384xf32>
    %194 = arith.negf %193 : vector<8x384xf32>
    %195 = math.exp %194 : vector<8x384xf32>
    %cst_58 = arith.constant 1.000000e+00 : f32
    %196 = vector.broadcast %cst_58 : f32 to vector<8x384xf32>
    %197 = arith.addf %196, %195 : vector<8x384xf32>
    %198 = arith.divf %196, %197 : vector<8x384xf32>
    %199 = vector.extract_strided_slice %192 {offsets = [0, 384], sizes = [8, 128], strides = [1, 1]} : vector<8x512xf32> to vector<8x128xf32>
    %200 = math.tanh %199 : vector<8x128xf32>
    %201 = vector.extract_strided_slice %198 {offsets = [0, 0], sizes = [8, 128], strides = [1, 1]} : vector<8x384xf32> to vector<8x128xf32>
    %202 = vector.extract_strided_slice %198 {offsets = [0, 128], sizes = [8, 128], strides = [1, 1]} : vector<8x384xf32> to vector<8x128xf32>
    %203 = vector.extract_strided_slice %198 {offsets = [0, 256], sizes = [8, 128], strides = [1, 1]} : vector<8x384xf32> to vector<8x128xf32>
    %204 = arith.mulf %202, %164 : vector<8x128xf32>
    %205 = arith.mulf %201, %200 : vector<8x128xf32>
    %206 = arith.addf %204, %205 : vector<8x128xf32>
    %207 = math.tanh %206 : vector<8x128xf32>
    %208 = arith.mulf %203, %207 : vector<8x128xf32>
    %cst_59 = arith.constant dense<0.000000e+00> : vector<8x512xf32>
    %209 = tpu.matmul %208, %13, %cst_59 {dimension_numbers = #tpu.dot_dimension_numbers<[1], [0], [0], [1], [0, 0, 1, 1], [], []>} : vector<8x128xf32>, vector<128x512xf32>, vector<8x512xf32> -> vector<8x512xf32>
    %cst_60 = arith.constant dense<0.000000e+00> : vector<8x512xf32>
    %210 = tpu.matmul %187, %14, %cst_60 {dimension_numbers = #tpu.dot_dimension_numbers<[1], [0], [0], [1], [0, 0, 1, 1], [], []>} : vector<8x128xf32>, vector<128x512xf32>, vector<8x512xf32> -> vector<8x512xf32>
    %211 = arith.addf %209, %210 : vector<8x512xf32>
    %212 = vector.broadcast %15 : vector<1x512xf32> to vector<8x512xf32>
    %213 = arith.addf %211, %212 : vector<8x512xf32>
    %214 = vector.extract_strided_slice %213 {offsets = [0, 0], sizes = [8, 384], strides = [1, 1]} : vector<8x512xf32> to vector<8x384xf32>
    %215 = arith.negf %214 : vector<8x384xf32>
    %216 = math.exp %215 : vector<8x384xf32>
    %cst_61 = arith.constant 1.000000e+00 : f32
    %217 = vector.broadcast %cst_61 : f32 to vector<8x384xf32>
    %218 = arith.addf %217, %216 : vector<8x384xf32>
    %219 = arith.divf %217, %218 : vector<8x384xf32>
    %220 = vector.extract_strided_slice %213 {offsets = [0, 384], sizes = [8, 128], strides = [1, 1]} : vector<8x512xf32> to vector<8x128xf32>
    %221 = math.tanh %220 : vector<8x128xf32>
    %222 = vector.extract_strided_slice %219 {offsets = [0, 0], sizes = [8, 128], strides = [1, 1]} : vector<8x384xf32> to vector<8x128xf32>
    %223 = vector.extract_strided_slice %219 {offsets = [0, 128], sizes = [8, 128], strides = [1, 1]} : vector<8x384xf32> to vector<8x128xf32>
    %224 = vector.extract_strided_slice %219 {offsets = [0, 256], sizes = [8, 128], strides = [1, 1]} : vector<8x384xf32> to vector<8x128xf32>
    %225 = arith.mulf %223, %185 : vector<8x128xf32>
    %226 = arith.mulf %222, %221 : vector<8x128xf32>
    %227 = arith.addf %225, %226 : vector<8x128xf32>
    %228 = math.tanh %227 : vector<8x128xf32>
    %229 = arith.mulf %224, %228 : vector<8x128xf32>
    %c5_i32 = arith.constant 5 : i32
    %230 = arith.index_cast %c5_i32 : i32 to index
    %c0_62 = arith.constant 0 : index
    %c0_63 = arith.constant 0 : index
    %231 = vector.load %arg12[%230, %c0_62, %c0_63] : memref<8x8x512xf32, #tpu.memory_space<vmem>>, vector<1x8x512xf32>
    %232 = vector.shape_cast %231 : vector<1x8x512xf32> to vector<8x512xf32>
    %cst_64 = arith.constant dense<0.000000e+00> : vector<8x512xf32>
    %233 = tpu.matmul %208, %12, %cst_64 {dimension_numbers = #tpu.dot_dimension_numbers<[1], [0], [0], [1], [0, 0, 1, 1], [], []>} : vector<8x128xf32>, vector<128x512xf32>, vector<8x512xf32> -> vector<8x512xf32>
    %234 = arith.addf %232, %233 : vector<8x512xf32>
    %235 = vector.extract_strided_slice %234 {offsets = [0, 0], sizes = [8, 384], strides = [1, 1]} : vector<8x512xf32> to vector<8x384xf32>
    %236 = arith.negf %235 : vector<8x384xf32>
    %237 = math.exp %236 : vector<8x384xf32>
    %cst_65 = arith.constant 1.000000e+00 : f32
    %238 = vector.broadcast %cst_65 : f32 to vector<8x384xf32>
    %239 = arith.addf %238, %237 : vector<8x384xf32>
    %240 = arith.divf %238, %239 : vector<8x384xf32>
    %241 = vector.extract_strided_slice %234 {offsets = [0, 384], sizes = [8, 128], strides = [1, 1]} : vector<8x512xf32> to vector<8x128xf32>
    %242 = math.tanh %241 : vector<8x128xf32>
    %243 = vector.extract_strided_slice %240 {offsets = [0, 0], sizes = [8, 128], strides = [1, 1]} : vector<8x384xf32> to vector<8x128xf32>
    %244 = vector.extract_strided_slice %240 {offsets = [0, 128], sizes = [8, 128], strides = [1, 1]} : vector<8x384xf32> to vector<8x128xf32>
    %245 = vector.extract_strided_slice %240 {offsets = [0, 256], sizes = [8, 128], strides = [1, 1]} : vector<8x384xf32> to vector<8x128xf32>
    %246 = arith.mulf %244, %206 : vector<8x128xf32>
    %247 = arith.mulf %243, %242 : vector<8x128xf32>
    %248 = arith.addf %246, %247 : vector<8x128xf32>
    %249 = math.tanh %248 : vector<8x128xf32>
    %250 = arith.mulf %245, %249 : vector<8x128xf32>
    %cst_66 = arith.constant dense<0.000000e+00> : vector<8x512xf32>
    %251 = tpu.matmul %250, %13, %cst_66 {dimension_numbers = #tpu.dot_dimension_numbers<[1], [0], [0], [1], [0, 0, 1, 1], [], []>} : vector<8x128xf32>, vector<128x512xf32>, vector<8x512xf32> -> vector<8x512xf32>
    %cst_67 = arith.constant dense<0.000000e+00> : vector<8x512xf32>
    %252 = tpu.matmul %229, %14, %cst_67 {dimension_numbers = #tpu.dot_dimension_numbers<[1], [0], [0], [1], [0, 0, 1, 1], [], []>} : vector<8x128xf32>, vector<128x512xf32>, vector<8x512xf32> -> vector<8x512xf32>
    %253 = arith.addf %251, %252 : vector<8x512xf32>
    %254 = vector.broadcast %15 : vector<1x512xf32> to vector<8x512xf32>
    %255 = arith.addf %253, %254 : vector<8x512xf32>
    %256 = vector.extract_strided_slice %255 {offsets = [0, 0], sizes = [8, 384], strides = [1, 1]} : vector<8x512xf32> to vector<8x384xf32>
    %257 = arith.negf %256 : vector<8x384xf32>
    %258 = math.exp %257 : vector<8x384xf32>
    %cst_68 = arith.constant 1.000000e+00 : f32
    %259 = vector.broadcast %cst_68 : f32 to vector<8x384xf32>
    %260 = arith.addf %259, %258 : vector<8x384xf32>
    %261 = arith.divf %259, %260 : vector<8x384xf32>
    %262 = vector.extract_strided_slice %255 {offsets = [0, 384], sizes = [8, 128], strides = [1, 1]} : vector<8x512xf32> to vector<8x128xf32>
    %263 = math.tanh %262 : vector<8x128xf32>
    %264 = vector.extract_strided_slice %261 {offsets = [0, 0], sizes = [8, 128], strides = [1, 1]} : vector<8x384xf32> to vector<8x128xf32>
    %265 = vector.extract_strided_slice %261 {offsets = [0, 128], sizes = [8, 128], strides = [1, 1]} : vector<8x384xf32> to vector<8x128xf32>
    %266 = vector.extract_strided_slice %261 {offsets = [0, 256], sizes = [8, 128], strides = [1, 1]} : vector<8x384xf32> to vector<8x128xf32>
    %267 = arith.mulf %265, %227 : vector<8x128xf32>
    %268 = arith.mulf %264, %263 : vector<8x128xf32>
    %269 = arith.addf %267, %268 : vector<8x128xf32>
    %270 = math.tanh %269 : vector<8x128xf32>
    %271 = arith.mulf %266, %270 : vector<8x128xf32>
    %c6_i32 = arith.constant 6 : i32
    %272 = arith.index_cast %c6_i32 : i32 to index
    %c0_69 = arith.constant 0 : index
    %c0_70 = arith.constant 0 : index
    %273 = vector.load %arg12[%272, %c0_69, %c0_70] : memref<8x8x512xf32, #tpu.memory_space<vmem>>, vector<1x8x512xf32>
    %274 = vector.shape_cast %273 : vector<1x8x512xf32> to vector<8x512xf32>
    %cst_71 = arith.constant dense<0.000000e+00> : vector<8x512xf32>
    %275 = tpu.matmul %250, %12, %cst_71 {dimension_numbers = #tpu.dot_dimension_numbers<[1], [0], [0], [1], [0, 0, 1, 1], [], []>} : vector<8x128xf32>, vector<128x512xf32>, vector<8x512xf32> -> vector<8x512xf32>
    %276 = arith.addf %274, %275 : vector<8x512xf32>
    %277 = vector.extract_strided_slice %276 {offsets = [0, 0], sizes = [8, 384], strides = [1, 1]} : vector<8x512xf32> to vector<8x384xf32>
    %278 = arith.negf %277 : vector<8x384xf32>
    %279 = math.exp %278 : vector<8x384xf32>
    %cst_72 = arith.constant 1.000000e+00 : f32
    %280 = vector.broadcast %cst_72 : f32 to vector<8x384xf32>
    %281 = arith.addf %280, %279 : vector<8x384xf32>
    %282 = arith.divf %280, %281 : vector<8x384xf32>
    %283 = vector.extract_strided_slice %276 {offsets = [0, 384], sizes = [8, 128], strides = [1, 1]} : vector<8x512xf32> to vector<8x128xf32>
    %284 = math.tanh %283 : vector<8x128xf32>
    %285 = vector.extract_strided_slice %282 {offsets = [0, 0], sizes = [8, 128], strides = [1, 1]} : vector<8x384xf32> to vector<8x128xf32>
    %286 = vector.extract_strided_slice %282 {offsets = [0, 128], sizes = [8, 128], strides = [1, 1]} : vector<8x384xf32> to vector<8x128xf32>
    %287 = vector.extract_strided_slice %282 {offsets = [0, 256], sizes = [8, 128], strides = [1, 1]} : vector<8x384xf32> to vector<8x128xf32>
    %288 = arith.mulf %286, %248 : vector<8x128xf32>
    %289 = arith.mulf %285, %284 : vector<8x128xf32>
    %290 = arith.addf %288, %289 : vector<8x128xf32>
    %291 = math.tanh %290 : vector<8x128xf32>
    %292 = arith.mulf %287, %291 : vector<8x128xf32>
    %cst_73 = arith.constant dense<0.000000e+00> : vector<8x512xf32>
    %293 = tpu.matmul %292, %13, %cst_73 {dimension_numbers = #tpu.dot_dimension_numbers<[1], [0], [0], [1], [0, 0, 1, 1], [], []>} : vector<8x128xf32>, vector<128x512xf32>, vector<8x512xf32> -> vector<8x512xf32>
    %cst_74 = arith.constant dense<0.000000e+00> : vector<8x512xf32>
    %294 = tpu.matmul %271, %14, %cst_74 {dimension_numbers = #tpu.dot_dimension_numbers<[1], [0], [0], [1], [0, 0, 1, 1], [], []>} : vector<8x128xf32>, vector<128x512xf32>, vector<8x512xf32> -> vector<8x512xf32>
    %295 = arith.addf %293, %294 : vector<8x512xf32>
    %296 = vector.broadcast %15 : vector<1x512xf32> to vector<8x512xf32>
    %297 = arith.addf %295, %296 : vector<8x512xf32>
    %298 = vector.extract_strided_slice %297 {offsets = [0, 0], sizes = [8, 384], strides = [1, 1]} : vector<8x512xf32> to vector<8x384xf32>
    %299 = arith.negf %298 : vector<8x384xf32>
    %300 = math.exp %299 : vector<8x384xf32>
    %cst_75 = arith.constant 1.000000e+00 : f32
    %301 = vector.broadcast %cst_75 : f32 to vector<8x384xf32>
    %302 = arith.addf %301, %300 : vector<8x384xf32>
    %303 = arith.divf %301, %302 : vector<8x384xf32>
    %304 = vector.extract_strided_slice %297 {offsets = [0, 384], sizes = [8, 128], strides = [1, 1]} : vector<8x512xf32> to vector<8x128xf32>
    %305 = math.tanh %304 : vector<8x128xf32>
    %306 = vector.extract_strided_slice %303 {offsets = [0, 0], sizes = [8, 128], strides = [1, 1]} : vector<8x384xf32> to vector<8x128xf32>
    %307 = vector.extract_strided_slice %303 {offsets = [0, 128], sizes = [8, 128], strides = [1, 1]} : vector<8x384xf32> to vector<8x128xf32>
    %308 = vector.extract_strided_slice %303 {offsets = [0, 256], sizes = [8, 128], strides = [1, 1]} : vector<8x384xf32> to vector<8x128xf32>
    %309 = arith.mulf %307, %269 : vector<8x128xf32>
    %310 = arith.mulf %306, %305 : vector<8x128xf32>
    %311 = arith.addf %309, %310 : vector<8x128xf32>
    %312 = math.tanh %311 : vector<8x128xf32>
    %313 = arith.mulf %308, %312 : vector<8x128xf32>
    %c7_i32 = arith.constant 7 : i32
    %314 = arith.index_cast %c7_i32 : i32 to index
    %c0_76 = arith.constant 0 : index
    %c0_77 = arith.constant 0 : index
    %315 = vector.load %arg12[%314, %c0_76, %c0_77] : memref<8x8x512xf32, #tpu.memory_space<vmem>>, vector<1x8x512xf32>
    %316 = vector.shape_cast %315 : vector<1x8x512xf32> to vector<8x512xf32>
    %cst_78 = arith.constant dense<0.000000e+00> : vector<8x512xf32>
    %317 = tpu.matmul %292, %12, %cst_78 {dimension_numbers = #tpu.dot_dimension_numbers<[1], [0], [0], [1], [0, 0, 1, 1], [], []>} : vector<8x128xf32>, vector<128x512xf32>, vector<8x512xf32> -> vector<8x512xf32>
    %318 = arith.addf %316, %317 : vector<8x512xf32>
    %319 = vector.extract_strided_slice %318 {offsets = [0, 0], sizes = [8, 384], strides = [1, 1]} : vector<8x512xf32> to vector<8x384xf32>
    %320 = arith.negf %319 : vector<8x384xf32>
    %321 = math.exp %320 : vector<8x384xf32>
    %cst_79 = arith.constant 1.000000e+00 : f32
    %322 = vector.broadcast %cst_79 : f32 to vector<8x384xf32>
    %323 = arith.addf %322, %321 : vector<8x384xf32>
    %324 = arith.divf %322, %323 : vector<8x384xf32>
    %325 = vector.extract_strided_slice %318 {offsets = [0, 384], sizes = [8, 128], strides = [1, 1]} : vector<8x512xf32> to vector<8x128xf32>
    %326 = math.tanh %325 : vector<8x128xf32>
    %327 = vector.extract_strided_slice %324 {offsets = [0, 0], sizes = [8, 128], strides = [1, 1]} : vector<8x384xf32> to vector<8x128xf32>
    %328 = vector.extract_strided_slice %324 {offsets = [0, 128], sizes = [8, 128], strides = [1, 1]} : vector<8x384xf32> to vector<8x128xf32>
    %329 = vector.extract_strided_slice %324 {offsets = [0, 256], sizes = [8, 128], strides = [1, 1]} : vector<8x384xf32> to vector<8x128xf32>
    %330 = arith.mulf %328, %290 : vector<8x128xf32>
    %331 = arith.mulf %327, %326 : vector<8x128xf32>
    %332 = arith.addf %330, %331 : vector<8x128xf32>
    %333 = math.tanh %332 : vector<8x128xf32>
    %334 = arith.mulf %329, %333 : vector<8x128xf32>
    %cst_80 = arith.constant dense<0.000000e+00> : vector<8x512xf32>
    %335 = tpu.matmul %334, %13, %cst_80 {dimension_numbers = #tpu.dot_dimension_numbers<[1], [0], [0], [1], [0, 0, 1, 1], [], []>} : vector<8x128xf32>, vector<128x512xf32>, vector<8x512xf32> -> vector<8x512xf32>
    %cst_81 = arith.constant dense<0.000000e+00> : vector<8x512xf32>
    %336 = tpu.matmul %313, %14, %cst_81 {dimension_numbers = #tpu.dot_dimension_numbers<[1], [0], [0], [1], [0, 0, 1, 1], [], []>} : vector<8x128xf32>, vector<128x512xf32>, vector<8x512xf32> -> vector<8x512xf32>
    %337 = arith.addf %335, %336 : vector<8x512xf32>
    %338 = vector.broadcast %15 : vector<1x512xf32> to vector<8x512xf32>
    %339 = arith.addf %337, %338 : vector<8x512xf32>
    %340 = vector.extract_strided_slice %339 {offsets = [0, 0], sizes = [8, 384], strides = [1, 1]} : vector<8x512xf32> to vector<8x384xf32>
    %341 = arith.negf %340 : vector<8x384xf32>
    %342 = math.exp %341 : vector<8x384xf32>
    %cst_82 = arith.constant 1.000000e+00 : f32
    %343 = vector.broadcast %cst_82 : f32 to vector<8x384xf32>
    %344 = arith.addf %343, %342 : vector<8x384xf32>
    %345 = arith.divf %343, %344 : vector<8x384xf32>
    %346 = vector.extract_strided_slice %339 {offsets = [0, 384], sizes = [8, 128], strides = [1, 1]} : vector<8x512xf32> to vector<8x128xf32>
    %347 = math.tanh %346 : vector<8x128xf32>
    %348 = vector.extract_strided_slice %345 {offsets = [0, 0], sizes = [8, 128], strides = [1, 1]} : vector<8x384xf32> to vector<8x128xf32>
    %349 = vector.extract_strided_slice %345 {offsets = [0, 128], sizes = [8, 128], strides = [1, 1]} : vector<8x384xf32> to vector<8x128xf32>
    %350 = vector.extract_strided_slice %345 {offsets = [0, 256], sizes = [8, 128], strides = [1, 1]} : vector<8x384xf32> to vector<8x128xf32>
    %351 = arith.mulf %349, %311 : vector<8x128xf32>
    %352 = arith.mulf %348, %347 : vector<8x128xf32>
    %353 = arith.addf %351, %352 : vector<8x128xf32>
    %354 = math.tanh %353 : vector<8x128xf32>
    %355 = arith.mulf %350, %354 : vector<8x128xf32>
    %c8_i32 = arith.constant 8 : i32
    %c0_83 = arith.constant 0 : index
    %c0_84 = arith.constant 0 : index
    %356 = vector.load %arg13[%c0_83, %c0_84] : memref<8x128xf32, #tpu.memory_space<vmem>>, vector<8x128xf32>
    tpu.vector_store %arg13[%c0_83, %c0_84], %334 {strides = array<i32>} : memref<8x128xf32, #tpu.memory_space<vmem>>, vector<8x128xf32>,
    %c0_85 = arith.constant 0 : index
    %c0_86 = arith.constant 0 : index
    %357 = vector.load %arg14[%c0_85, %c0_86] : memref<8x128xf32, #tpu.memory_space<vmem>>, vector<8x128xf32>
    tpu.vector_store %arg14[%c0_85, %c0_86], %332 {strides = array<i32>} : memref<8x128xf32, #tpu.memory_space<vmem>>, vector<8x128xf32>,
    %c0_87 = arith.constant 0 : index
    %c0_88 = arith.constant 0 : index
    %358 = vector.load %arg15[%c0_87, %c0_88] : memref<8x128xf32, #tpu.memory_space<vmem>>, vector<8x128xf32>
    tpu.vector_store %arg15[%c0_87, %c0_88], %355 {strides = array<i32>} : memref<8x128xf32, #tpu.memory_space<vmem>>, vector<8x128xf32>,
    %c0_89 = arith.constant 0 : index
    %c0_90 = arith.constant 0 : index
    %359 = vector.load %arg16[%c0_89, %c0_90] : memref<8x128xf32, #tpu.memory_space<vmem>>, vector<8x128xf32>
    tpu.vector_store %arg16[%c0_89, %c0_90], %353 {strides = array<i32>} : memref<8x128xf32, #tpu.memory_space<vmem>>, vector<8x128xf32>,
    %c0_i32_91 = arith.constant 0 : i32
    %360 = arith.cmpi eq, %arg1, %c0_i32_91 : i32
    %361 = arith.extui %360 : i1 to i32
    %c0_i32_92 = arith.constant 0 : i32
    %362 = arith.cmpi ne, %361, %c0_i32_92 : i32
    scf.if %362 {
      %c0_93 = arith.constant 0 : index
      %c0_94 = arith.constant 0 : index
      %363 = vector.load %arg9[%c0_93, %c0_94] : memref<128x128xf32, #tpu.memory_space<vmem>>, vector<128x128xf32>
      %cst_95 = arith.constant dense<0.000000e+00> : vector<8x128xf32>
      %364 = tpu.matmul %355, %363, %cst_95 {dimension_numbers = #tpu.dot_dimension_numbers<[1], [0], [0], [1], [0, 0, 1, 1], [], []>} : vector<8x128xf32>, vector<128x128xf32>, vector<8x128xf32> -> vector<8x128xf32>
      %c0_96 = arith.constant 0 : index
      %c0_97 = arith.constant 0 : index
      %365 = vector.load %arg10[%c0_96, %c0_97] : memref<1x128xf32, #tpu.memory_space<vmem>>, vector<1x128xf32>
      %366 = vector.broadcast %365 : vector<1x128xf32> to vector<8x128xf32>
      %367 = arith.addf %364, %366 : vector<8x128xf32>
      %c0_98 = arith.constant 0 : index
      %c0_99 = arith.constant 0 : index
      %368 = vector.load %arg11[%c0_98, %c0_99] : memref<8x128xf32, #tpu.memory_space<vmem>>, vector<8x128xf32>
      tpu.vector_store %arg11[%c0_98, %c0_99], %367 {strides = array<i32>} : memref<8x128xf32, #tpu.memory_space<vmem>>, vector<8x128xf32>,
    } else {
    }
    return
  }
  func.func @transform_0(%arg0: i32, %arg1: i32) -> (i32, i32, i32) {
    %c0_i32 = arith.constant 0 : i32
    %c0_i32_0 = arith.constant 0 : i32
    return %arg1, %arg0, %c0_i32 : i32, i32, i32
  }
  func.func @transform_1(%arg0: i32, %arg1: i32) -> (i32, i32) {
    %c0_i32 = arith.constant 0 : i32
    %c0_i32_0 = arith.constant 0 : i32
    %c0_i32_1 = arith.constant 0 : i32
    return %c0_i32, %c0_i32_0 : i32, i32
  }
  func.func @transform_2(%arg0: i32, %arg1: i32) -> (i32, i32) {
    %c0_i32 = arith.constant 0 : i32
    %c0_i32_0 = arith.constant 0 : i32
    %c0_i32_1 = arith.constant 0 : i32
    return %c0_i32, %c0_i32_0 : i32, i32
  }
  func.func @transform_3(%arg0: i32, %arg1: i32) -> (i32, i32) {
    %c0_i32 = arith.constant 0 : i32
    %c0_i32_0 = arith.constant 0 : i32
    %c0_i32_1 = arith.constant 0 : i32
    return %c0_i32, %c0_i32_0 : i32, i32
  }
  func.func @transform_4(%arg0: i32, %arg1: i32) -> (i32, i32) {
    %c0_i32 = arith.constant 0 : i32
    %c0_i32_0 = arith.constant 0 : i32
    %c0_i32_1 = arith.constant 0 : i32
    return %c0_i32, %c0_i32_0 : i32, i32
  }
  func.func @transform_5(%arg0: i32, %arg1: i32) -> (i32, i32) {
    %c0_i32 = arith.constant 0 : i32
    %c0_i32_0 = arith.constant 0 : i32
    %c0_i32_1 = arith.constant 0 : i32
    return %c0_i32, %c0_i32_0 : i32, i32
  }
  func.func @transform_6(%arg0: i32, %arg1: i32) -> (i32, i32) {
    %c0_i32 = arith.constant 0 : i32
    %c0_i32_0 = arith.constant 0 : i32
    %c0_i32_1 = arith.constant 0 : i32
    return %c0_i32, %c0_i32_0 : i32, i32
  }
  func.func @transform_7(%arg0: i32, %arg1: i32) -> (i32, i32) {
    %c0_i32 = arith.constant 0 : i32
    %c0_i32_0 = arith.constant 0 : i32
    %c0_i32_1 = arith.constant 0 : i32
    return %c0_i32, %c0_i32_0 : i32, i32
  }
  func.func @transform_8(%arg0: i32, %arg1: i32) -> (i32, i32) {
    %c0_i32 = arith.constant 0 : i32
    %c0_i32_0 = arith.constant 0 : i32
    %c0_i32_1 = arith.constant 0 : i32
    return %c0_i32, %c0_i32_0 : i32, i32
  }
  func.func @transform_9(%arg0: i32, %arg1: i32) -> (i32, i32) {
    %c0_i32 = arith.constant 0 : i32
    %c0_i32_0 = arith.constant 0 : i32
    return %arg0, %c0_i32 : i32, i32
  }
}

</mosaic_0001>

<bundles_post_ra>
// kernel: tpu_custom_call.1
= control target key start
LH: loop header
LB: loop body
LE: loop exit
PB: predicated region body
PF: predicated region fallthrough
CT: control target
= control target key end

     0   :  { %14 = vsyncpa [#allocation8], 0  ;;  %s8269_s0 = inlined_call_operand.hbm [shape: f32[8,8,16], index: 0, kind: input, shape index: {}]   ;;  %s8270_s1 = inlined_call_operand.hbm [shape: f32[16,512], index: 1, kind: input, shape index: {}]   ;;  %s8271_s2 = inlined_call_operand.hbm [shape: f32[128,512], index: 2, kind: input, shape index: {}]   ;;  %s8272_s3 = inlined_call_operand.vmem [shape: f32[1,512], index: 3, kind: input, shape index: {}]   ;;  %s8273_s4 = inlined_call_operand.hbm [shape: f32[128,512], index: 4, kind: input, shape index: {}]   ;;  %s8274_s5 = inlined_call_operand.hbm [shape: f32[128,512], index: 5, kind: input, shape index: {}]   ;;  %s8275_s6 = inlined_call_operand.vmem [shape: f32[1,512], index: 6, kind: input, shape index: {}]   ;;  %s8276_s7 = inlined_call_operand.hbm [shape: f32[128,128], index: 7, kind: input, shape index: {}]   ;;  %s8277_s8 = inlined_call_operand.vmem [shape: f32[1,128], index: 8, kind: input, shape index: {}]   ;;  %s8278_s9 = inlined_call_operand.hbm [shape: f32[8,128], index: 9, kind: output, shape index: {}]  }
   0x1   :  { %15 = vsyncpa [#allocation11], 0 }
   0x2   :  { %16 = vsyncpa [#allocation14], 0 }
   0x3   :  { %17 = vsyncpa [#allocation17], 0 }
   0x4   :  { %18 = vsyncpa [#allocation9], 0  ;;  %s6891_s30 = smov [#allocation10]   ;;  %s6727_s13 = scalar_lea.hbm %s8270_s1, 1024 }
   0x5   :  { %s36_s10 = sshll.u32 %s6891_s30, 4  ;;  %p6728_p0 = scmp.ne.s32.totalorder %s8270_s1, %s6727_s13  ;;  %s37_s10 = int_to_ptr.vmem [resolvable:$true] %s36_s10 }
   0x6   :  { %p6731_p1 = scmp.lt.u32.totalorder %s6727_s13, %s8270_s1 }
   0x8   :  { %p6733_p2 = pnand %p6731_p1, %p6728_p0 }
   0xa   :  { %6736 = shalt.err (!%p6733_p2)
}
   0xb   :  { %s6737_s18 = scalar_lea.vmem %s37_s10, 1024  ;;  %p6742_p4 = scmp.lt.s32.totalorder %s37_s10, %s37_s10 }
   0xc   :  { %p6738_p3 = scmp.ne.s32.totalorder %s37_s10, %s6737_s18  ;;  %p6743_p5 = scmp.lt.s32.totalorder %s6737_s18, %s6737_s18 }
   0xe   :  { %p6744_p6 = por %p6743_p5, %p6742_p4 }
  0x10   :  { %p6745_p7 = pnand %p6744_p6, %p6738_p3 }
  0x12   :  { %6748 = shalt.err (!%p6745_p7)
}
  0x13   :  { %s6892_s19 = smov 512   ;;  %s6893_s20 = smov 32  }
  0x14   :  { %42 = dma.hbm_to_vmem [thread:$0]  %s8270_s1, 1024, %s37_s10, [#allocation11], %s6892_s19, %s6892_s19, %s6893_s20  }
  0x15   :  { %s6894_s23 = smov [#allocation13]   ;;  %s6895_s25 = smov [#allocation7]  }
  0x16   :  { %s62_s24 = sshll.u32 %s6894_s23, 4  ;;  %s24_s26 = sshll.u32 %s6895_s25, 4  ;;  %s63_s24 = int_to_ptr.vmem [resolvable:$true] %s62_s24  ;;  %s25_s26 = int_to_ptr.vmem [resolvable:$true] %s24_s26 }
  0x17   :  { %s6749_s29 = scalar_lea.hbm %s8273_s4, 8192 }
  0x18   :  { %p6750_p8 = scmp.ne.s32.totalorder %s8273_s4, %s6749_s29  ;;  %p6753_p9 = scmp.lt.u32.totalorder %s6749_s29, %s8273_s4 }
  0x1a   :  { %p6755_p10 = pnand %p6753_p9, %p6750_p8 }
  0x1c   :  { %6758 = shalt.err (!%p6755_p10)
}
  0x1d   :  { %s6759_s1 = scalar_lea.vmem %s63_s24, 8192  ;;  %p6764_p12 = scmp.lt.s32.totalorder %s63_s24, %s63_s24 }
  0x1e   :  { %p6760_p11 = scmp.ne.s32.totalorder %s63_s24, %s6759_s1  ;;  %p6765_p13 = scmp.lt.s32.totalorder %s6759_s1, %s6759_s1 }
  0x20   :  { %p6766_p0 = por %p6765_p13, %p6764_p12 }
  0x22   :  { %p6767_p1 = pnand %p6766_p0, %p6760_p11 }
  0x24   :  { %6770 = shalt.err (!%p6767_p1)
}
  0x25   :  { %68 = dma.hbm_to_vmem [thread:$0]  %s8273_s4, 8192, %s63_s24, [#allocation14], %s6892_s19, %s6892_s19, %s6893_s20  }
  0x26   :  { %s6771_s17 = scalar_lea.hbm %s8269_s0, 1024 }
  0x27   :  { %p6772_p2 = scmp.ne.s32.totalorder %s8269_s0, %s6771_s17  ;;  %p6775_p3 = scmp.lt.u32.totalorder %s6771_s17, %s8269_s0 }
  0x29   :  { %p6777_p4 = pnand %p6775_p3, %p6772_p2 }
  0x2b   :  { %6780 = shalt.err (!%p6777_p4)
}
  0x2c   :  { %s6781_s25 = scalar_lea.vmem %s25_s26, 1024  ;;  %p6786_p6 = scmp.lt.s32.totalorder %s25_s26, %s25_s26 }
  0x2d   :  { %p6782_p5 = scmp.ne.s32.totalorder %s25_s26, %s6781_s25  ;;  %p6787_p7 = scmp.lt.s32.totalorder %s6781_s25, %s6781_s25 }
  0x2f   :  { %p6788_p8 = por %p6787_p7, %p6786_p6 }
  0x31   :  { %p6789_p9 = pnand %p6788_p8, %p6782_p5 }
  0x33   :  { %6792 = shalt.err (!%p6789_p9)
}
  0x34   :  { %s6896_s4 = smov 128   ;;  %s6897_s24 = smov 8  }
  0x35   :  { %30 = dma.hbm_to_vmem [thread:$0]  %s8269_s0, 1024, %s25_s26, [#allocation8], %s6896_s4, %s6896_s4, %s6897_s24  }
  0x36   :  { %s6898_s29 = smov [#allocation12]   ;;  %s6899_s11 = smov [#allocation15]  }
  0x37   :  { %s48_s30 = sshll.u32 %s6898_s29, 4  ;;  %s74_s12 = sshll.u32 %s6899_s11, 4  ;;  %s49_s30 = int_to_ptr.vmem [resolvable:$true] %s48_s30  ;;  %s75_s12 = int_to_ptr.vmem [resolvable:$true] %s74_s12 }
  0x38   :  { %s6793_s10 = scalar_lea.hbm %s8271_s2, 8192 }
  0x39   :  { %p6794_p10 = scmp.ne.s32.totalorder %s8271_s2, %s6793_s10  ;;  %p6797_p11 = scmp.lt.u32.totalorder %s6793_s10, %s8271_s2 }
  0x3b   :  { %p6799_p12 = pnand %p6797_p11, %p6794_p10 }
  0x3d   :  { %6802 = shalt.err (!%p6799_p12)
}
  0x3e   :  { %s6803_s0 = scalar_lea.vmem %s49_s30, 8192  ;;  %p6808_p0 = scmp.lt.s32.totalorder %s49_s30, %s49_s30 }
  0x3f   :  { %p6804_p13 = scmp.ne.s32.totalorder %s49_s30, %s6803_s0  ;;  %p6809_p1 = scmp.lt.s32.totalorder %s6803_s0, %s6803_s0 }
  0x41   :  { %p6810_p2 = por %p6809_p1, %p6808_p0 }
  0x43   :  { %p6811_p3 = pnand %p6810_p2, %p6804_p13 }
  0x45   :  { %6814 = shalt.err (!%p6811_p3)
}
  0x46   :  { %54 = dma.hbm_to_vmem [thread:$0]  %s8271_s2, 8192, %s49_s30, [#allocation11], %s6892_s19, %s6892_s19, %s6893_s20  }
  0x47   :  { %s6815_s23 = scalar_lea.hbm %s8274_s5, 8192 }
  0x48   :  { %p6816_p4 = scmp.ne.s32.totalorder %s8274_s5, %s6815_s23  ;;  %p6819_p5 = scmp.lt.u32.totalorder %s6815_s23, %s8274_s5 }
  0x4a   :  { %p6821_p6 = pnand %p6819_p5, %p6816_p4 }
  0x4c   :  { %6824 = shalt.err (!%p6821_p6)
}
  0x4d   :  { %s6825_s11 = scalar_lea.vmem %s75_s12, 8192  ;;  %p6830_p8 = scmp.lt.s32.totalorder %s75_s12, %s75_s12 }
  0x4e   :  { %p6826_p7 = scmp.ne.s32.totalorder %s75_s12, %s6825_s11  ;;  %p6831_p9 = scmp.lt.s32.totalorder %s6825_s11, %s6825_s11 }
  0x50   :  { %p6832_p10 = por %p6831_p9, %p6830_p8 }
  0x52   :  { %p6833_p11 = pnand %p6832_p10, %p6826_p7 }
  0x54   :  { %6836 = shalt.err (!%p6833_p11)
}
  0x55   :  { %80 = dma.hbm_to_vmem [thread:$0]  %s8274_s5, 8192, %s75_s12, [#allocation14], %s6892_s19, %s6892_s19, %s6893_s20  }
  0x56   :  { %s6900_s13 = smov [#allocation16]   ;;  %s6837_s15 = scalar_lea.hbm %s8276_s7, 2048 }
  0x57   :  { %s88_s1 = sshll.u32 %s6900_s13, 4  ;;  %p6838_p12 = scmp.ne.s32.totalorder %s8276_s7, %s6837_s15  ;;  %s89_s1 = int_to_ptr.vmem [resolvable:$true] %s88_s1 }
  0x58   :  { %p6841_p13 = scmp.lt.u32.totalorder %s6837_s15, %s8276_s7 }
  0x5a   :  { %p6843_p0 = pnand %p6841_p13, %p6838_p12 }
  0x5c   :  { %6846 = shalt.err (!%p6843_p0)
}
  0x5d   :  { %s6847_s18 = scalar_lea.vmem %s89_s1, 2048  ;;  %p6852_p2 = scmp.lt.s32.totalorder %s89_s1, %s89_s1 }
  0x5e   :  { %p6848_p1 = scmp.ne.s32.totalorder %s89_s1, %s6847_s18  ;;  %p6853_p3 = scmp.lt.s32.totalorder %s6847_s18, %s6847_s18 }
  0x60   :  { %p6854_p4 = por %p6853_p3, %p6852_p2 }
  0x62   :  { %p6855_p5 = pnand %p6854_p4, %p6848_p1 }
  0x64   :  { %6858 = shalt.err (!%p6855_p5)
}
  0x65   :  { %94 = dma.hbm_to_vmem [thread:$0]  %s8276_s7, 2048, %s89_s1, [#allocation17], %s6896_s4, %s6896_s4, %s6897_s24  }
  0x66   :  { %6881 = dma.done.wait [#allocation8], 1024  }
  0x67   :  { %6882 = vsyncadd [#allocation8], 4294966272 }
  0x68   :  { %6883 = dma.done.wait [#allocation11], 9216  }
  0x69   :  { %6884 = vsyncadd [#allocation11], 4294958080 }
  0x6a   :  { %6885 = dma.done.wait [#allocation14], 16384  }
  0x6b   :  { %6886 = vsyncadd [#allocation14], 4294950912 }
  0x6c   :  { %6887 = dma.done.wait [#allocation17], 2048  }
  0x6d   :  { %6888 = vsyncadd [#allocation17], 4294965248  ;;  %v8279_v0 = vmov 0.0   ;;  %v132_v1 = vld [vmem:[#allocation10 + $0x8] sm:$0xff]  ;;  %v134_v3 = vld [vmem:[#allocation10 + $0x18] sm:$0xff]  ;;  %vm161_vm0 = vcmask 130048  }
  0x6e   :  { %250 = vmatprep.mubr.f32.mxu0 %v8279_v0  ;;  %363 = vmatprep.mubr.f32.mxu1 %v8279_v0  ;;  %v136_v2 = vld [vmem:[#allocation10 + $0x28] sm:$0xff]  ;;  %v138_v5 = vld [vmem:[#allocation10 + $0x38] sm:$0xff]  ;;  %v131_v6 = vld [vmem:[#allocation10] sm:$0xff]  ;;  %vm6903_vm1 = vmmov 0   ;;  %s6904_s12 = smov [#allocation18]  }
  0x6f   :  { %v4793_v4 = vpack.c.bf16 %v136_v2, %v132_v1  ;;  %v135_v7 = vld [vmem:[#allocation10 + $0x20] sm:$0xff]  ;;  %v4797_v8 = vpack.c.bf16 %v138_v5, %v134_v3  ;;  %v133_v10 = vld [vmem:[#allocation10 + $0x10] sm:$0xff]  ;;  %v445_v14 = vld [vmem:[#allocation12 + $0x8] sm:$0xff]  ;;  %s4664_s21 = sshll.u32 %s6904_s12, 4  ;;  %s4665_s21 = int_to_ptr.vmem [resolvable:$true] %s4664_s21 }
  0x70   :  { %v4795_v9 = vpack.c.bf16 %v135_v7, %v131_v6  ;;  %v137_v11 = vld [vmem:[#allocation10 + $0x30] sm:$0xff]  ;;  %v123_v12 = vld [vmem:[#allocation7] sm:$0xff]  ;;  %v449_v15 = vld [vmem:[#allocation12 + $0x28] sm:$0xff]  ;;  %s6859_s22 = scalar_lea.vmem %s4665_s21, 128  ;;  %p6864_p7 = scmp.lt.s32.totalorder %s4665_s21, %s4665_s21 }
  0x71   :  { %4794 = vmatprep.subr.bf16.mxu0 %v4793_v4  ;;  %v4799_v13 = vpack.c.bf16 %v137_v11, %v133_v10  ;;  %v447_v16 = vld [vmem:[#allocation12 + $0x18] sm:$0xff]  ;;  %4798 = vmatprep.subr.bf16.mxu1 %v4797_v8  ;;  %v7047_v17 = vpack.c.bf16 %v449_v15, %v445_v14  ;;  %v444_v19 = vld [vmem:[#allocation12] sm:$0xff]  ;;  %v446_v23 = vld [vmem:[#allocation12 + $0x10] sm:$0xff]  ;;  %p6860_p6 = scmp.ne.s32.totalorder %s4665_s21, %s6859_s22  ;;  %p6865_p8 = scmp.lt.s32.totalorder %s6859_s22, %s6859_s22 }
  0x72   :  { %4796 = vmatpush1.bf16.msra.mxu0 %v4795_v9  ;;  %v451_v18 = vld [vmem:[#allocation12 + $0x38] sm:$0xff]  ;;  %v448_v20 = vld [vmem:[#allocation12 + $0x20] sm:$0xff]  ;;  %v450_v24 = vld [vmem:[#allocation12 + $0x30] sm:$0xff] }
  0x73   :  { %8479 = vst [vmem:[#allocation24_spill] sm:$0xff] %v7047_v17  ;;  %4800 = vmatpush1.bf16.msra.mxu1 %v4799_v13  ;;  %v7049_v21 = vpack.c.bf16 %v451_v18, %v447_v16  ;;  %v7051_v22 = vpack.c.bf16 %v448_v20, %v444_v19  ;;  %4802 = vmatprep.subr.bf16.mxu0 %v7047_v17  ;;  %v453_v26 = vld [vmem:[#allocation12 + $0x48] sm:$0xff]  ;;  %v455_v28 = vld [vmem:[#allocation12 + $0x58] sm:$0xff]  ;;  %v452_v31 = vld [vmem:[#allocation12 + $0x40] sm:$0xff]  ;;  %p6866_p9 = por %p6865_p8, %p6864_p7 }
  0x74   :  { %v7054_v25 = vpack.c.bf16 %v450_v24, %v446_v23  ;;  %v457_v27 = vld [vmem:[#allocation12 + $0x68] sm:$0xff]  ;;  %v459_v30 = vld [vmem:[#allocation12 + $0x78] sm:$0xff]  ;;  %v456_v32 = vld [vmem:[#allocation12 + $0x60] sm:$0xff] }
  0x75   :  { %8480 = vst [vmem:[#allocation25_spill] sm:$0xff] %v7049_v21  ;;  %4676 = vmatmul.mubr.msk.f32.vlgmr.msra.gmra.mrb[0].mxu0 %vm161_vm0, %v123_v12  ;;  %4834 = vmatprep.subr.bf16.mxu1 %v7049_v21  ;;  %v7058_v29 = vpack.c.bf16 %v457_v27, %v453_v26  ;;  %v124_v33 = vld [vmem:[#allocation7 + $0x8] sm:$0xff]  ;;  %v7062_v34 = vpack.c.bf16 %v459_v30, %v455_v28  ;;  %v454_v36 = vld [vmem:[#allocation12 + $0x50] sm:$0xff]  ;;  %v463_v41 = vld [vmem:[#allocation12 + $0x98] sm:$0xff]  ;;  %p6867_p10 = pnand %p6866_p9, %p6860_p6 }
  0x76   :  { %4684 = vmatmul.mubr.msk.f32.vlgmr.msra.gmra.mrb[0].mxu1 %vm161_vm0, %v123_v12  ;;  %4804 = vmatpush1.bf16.msra.mxu0 %v7051_v22  ;;  %v7064_v35 = vpack.c.bf16 %v456_v32, %v452_v31  ;;  %v458_v37 = vld [vmem:[#allocation12 + $0x70] sm:$0xff]  ;;  %v461_v39 = vld [vmem:[#allocation12 + $0x88] sm:$0xff]  ;;  %v467_v43 = vld [vmem:[#allocation12 + $0xb8] sm:$0xff] }
  0x77   :  { %4836 = vmatpush1.bf16.msra.mxu1 %v7054_v25  ;;  %256 = vmatprep.mubr.f32.mxu0 %v8279_v0  ;;  %v7068_v38 = vpack.c.bf16 %v458_v37, %v454_v36  ;;  %v465_v40 = vld [vmem:[#allocation12 + $0xa8] sm:$0xff]  ;;  %v460_v44 = vld [vmem:[#allocation12 + $0x80] sm:$0xff]  ;;  %v125_v46 = vld [vmem:[#allocation7 + $0x10] sm:$0xff]  ;;  %v7076_v47 = vpack.c.bf16 %v467_v43, %v463_v41 }
  0x78   :  { %369 = vmatprep.mubr.f32.mxu1 %v8279_v0  ;;  %4806 = vmatprep.subr.bf16.mxu0 %v7058_v29  ;;  %v7072_v42 = vpack.c.bf16 %v465_v40, %v461_v39  ;;  %v464_v45 = vld [vmem:[#allocation12 + $0xa0] sm:$0xff]  ;;  %v462_v48 = vld [vmem:[#allocation12 + $0x90] sm:$0xff]  ;;  %v469_v51 = vld [vmem:[#allocation12 + $0xc8] sm:$0xff] }
  0x79   :  { %4677 = vmatmul.mubr.msk.f32.gmra.mrb[2].mxu0 %vm161_vm0, %v124_v33  ;;  %4838 = vmatprep.subr.bf16.mxu1 %v7062_v34  ;;  %8482 = vst [vmem:[#allocation27_spill] sm:$0xff] %v7076_v47  ;;  %v466_v49 = vld [vmem:[#allocation12 + $0xb0] sm:$0xff]  ;;  %v7080_v50 = vpack.c.bf16 %v464_v45, %v460_v44  ;;  %v473_v52 = vld [vmem:[#allocation12 + $0xe8] sm:$0xff]  ;;  %v471_v53 = vld [vmem:[#allocation12 + $0xd8] sm:$0xff] }
  0x7a   :  { %8481 = vst [vmem:[#allocation26_spill] sm:$0xff] %v7072_v42  ;;  %4685 = vmatmul.mubr.msk.f32.gmra.mrb[2].mxu1 %vm161_vm0, %v124_v33  ;;  %4808 = vmatpush1.bf16.msra.mxu0 %v7064_v35  ;;  %v7084_v54 = vpack.c.bf16 %v466_v49, %v462_v48  ;;  %v475_v55 = vld [vmem:[#allocation12 + $0xf8] sm:$0xff]  ;;  %v468_v56 = vld [vmem:[#allocation12 + $0xc0] sm:$0xff]  ;;  %v7088_v58 = vpack.c.bf16 %v473_v52, %v469_v51  ;;  %v470_v59 = vld [vmem:[#allocation12 + $0xd0] sm:$0xff] }
  0x7b   :  { %8483 = vst [vmem:[#allocation28_spill] sm:$0xff] %v7080_v50  ;;  %4840 = vmatpush1.bf16.msra.mxu1 %v7068_v38  ;;  %262 = vmatprep.mubr.f32.mxu0 %v8279_v0  ;;  %v472_v57 = vld [vmem:[#allocation12 + $0xe0] sm:$0xff]  ;;  %v474_v60 = vld [vmem:[#allocation12 + $0xf0] sm:$0xff]  ;;  %v7092_v61 = vpack.c.bf16 %v475_v55, %v471_v53  ;;  %v477_v62 = vld [vmem:[#allocation12 + $0x108] sm:$0xff] }
  0x7c   :  { %8484 = vst [vmem:[#allocation29_spill] sm:$0xff] %v7084_v54  ;;  %375 = vmatprep.mubr.f32.mxu1 %v8279_v0  ;;  %4810 = vmatprep.subr.bf16.mxu0 %v7072_v42  ;;  %8485 = vst [vmem:[#allocation30_spill] sm:$0xff] %v7088_v58  ;;  %v481_v63 = vld [vmem:[#allocation12 + $0x128] sm:$0xff]  ;;  %v126_v1 = vld [vmem:[#allocation7 + $0x18] sm:$0xff]  ;;  %v7096_v2 = vpack.c.bf16 %v472_v57, %v468_v56  ;;  %v7100_v5 = vpack.c.bf16 %v474_v60, %v470_v59 }
  0x7d   :  { %4678 = vmatmul.mubr.msk.f32.gmra.mrb[4].mxu0 %vm161_vm0, %v125_v46  ;;  %4842 = vmatprep.subr.bf16.mxu1 %v7076_v47  ;;  %8486 = vst [vmem:[#allocation31_spill] sm:$0xff] %v7092_v61  ;;  %v479_v3 = vld [vmem:[#allocation12 + $0x118] sm:$0xff]  ;;  %v476_v6 = vld [vmem:[#allocation12 + $0x100] sm:$0xff]  ;;  %v7104_v8 = vpack.c.bf16 %v481_v63, %v477_v62  ;;  %v478_v9 = vld [vmem:[#allocation12 + $0x110] sm:$0xff] }
  0x7e   :  { %4686 = vmatmul.mubr.msk.f32.gmra.mrb[4].mxu1 %vm161_vm0, %v125_v46  ;;  %4812 = vmatpush1.bf16.msra.mxu0 %v7080_v50  ;;  %8487 = vst [vmem:[#allocation32_spill] sm:$0xff] %v7096_v2  ;;  %v483_v4 = vld [vmem:[#allocation12 + $0x138] sm:$0xff]  ;;  %8488 = vst [vmem:[#allocation33_spill] sm:$0xff] %v7100_v5  ;;  %v480_v7 = vld [vmem:[#allocation12 + $0x120] sm:$0xff] }
  0x7f   :  { %4844 = vmatpush1.bf16.msra.mxu1 %v7084_v54  ;;  %268 = vmatprep.mubr.f32.mxu0 %v8279_v0  ;;  %8489 = vst [vmem:[#allocation34_spill] sm:$0xff] %v7104_v8  ;;  %v482_v10 = vld [vmem:[#allocation12 + $0x130] sm:$0xff]  ;;  %v7108_v11 = vpack.c.bf16 %v483_v4, %v479_v3  ;;  %v485_v12 = vld [vmem:[#allocation12 + $0x148] sm:$0xff]  ;;  %v127_v14 = vld [vmem:[#allocation7 + $0x20] sm:$0xff]  ;;  %v7112_v15 = vpack.c.bf16 %v480_v7, %v476_v6 }
  0x80   :  { %381 = vmatprep.mubr.f32.mxu1 %v8279_v0  ;;  %4814 = vmatprep.subr.bf16.mxu0 %v7088_v58  ;;  %v489_v13 = vld [vmem:[#allocation12 + $0x168] sm:$0xff]  ;;  %v487_v16 = vld [vmem:[#allocation12 + $0x158] sm:$0xff]  ;;  %v7116_v19 = vpack.c.bf16 %v482_v10, %v478_v9  ;;  %v484_v20 = vld [vmem:[#allocation12 + $0x140] sm:$0xff] }
  0x81   :  { %4679 = vmatmul.mubr.msk.f32.gmra.mrb[6].mxu0 %vm161_vm0, %v126_v1  ;;  %4846 = vmatprep.subr.bf16.mxu1 %v7092_v61  ;;  %8490 = vst [vmem:[#allocation35_spill] sm:$0xff] %v7108_v11  ;;  %8491 = vst [vmem:[#allocation36_spill] sm:$0xff] %v7112_v15  ;;  %v491_v18 = vld [vmem:[#allocation12 + $0x178] sm:$0xff]  ;;  %v488_v23 = vld [vmem:[#allocation12 + $0x160] sm:$0xff]  ;;  %v7120_v24 = vpack.c.bf16 %v489_v13, %v485_v12 }
  0x82   :  { %4687 = vmatmul.mubr.msk.f32.gmra.mrb[6].mxu1 %vm161_vm0, %v126_v1  ;;  %4816 = vmatpush1.bf16.msra.mxu0 %v7096_v2  ;;  %8492 = vst [vmem:[#allocation37_spill] sm:$0xff] %v7116_v19  ;;  %v486_v26 = vld [vmem:[#allocation12 + $0x150] sm:$0xff]  ;;  %v7124_v28 = vpack.c.bf16 %v491_v18, %v487_v16  ;;  %v493_v30 = vld [vmem:[#allocation12 + $0x188] sm:$0xff]  ;;  %v7128_v33 = vpack.c.bf16 %v488_v23, %v484_v20  ;;  %v495_v36 = vld [vmem:[#allocation12 + $0x198] sm:$0xff] }
  0x83   :  { %4848 = vmatpush1.bf16.msra.mxu1 %v7100_v5  ;;  %274 = vmatprep.mubr.f32.mxu0 %v8279_v0  ;;  %8493 = vst [vmem:[#allocation38_spill] sm:$0xff] %v7120_v24  ;;  %v490_v27 = vld [vmem:[#allocation12 + $0x170] sm:$0xff]  ;;  %v497_v31 = vld [vmem:[#allocation12 + $0x1a8] sm:$0xff]  ;;  %v499_v37 = vld [vmem:[#allocation12 + $0x1b8] sm:$0xff] }
  0x84   :  { %387 = vmatprep.mubr.f32.mxu1 %v8279_v0  ;;  %4818 = vmatprep.subr.bf16.mxu0 %v7104_v8  ;;  %8494 = vst [vmem:[#allocation39_spill] sm:$0xff] %v7124_v28  ;;  %v128_v32 = vld [vmem:[#allocation7 + $0x28] sm:$0xff]  ;;  %8495 = vst [vmem:[#allocation40_spill] sm:$0xff] %v7128_v33  ;;  %v7132_v39 = vpack.c.bf16 %v490_v27, %v486_v26  ;;  %v492_v40 = vld [vmem:[#allocation12 + $0x180] sm:$0xff]  ;;  %v7136_v43 = vpack.c.bf16 %v497_v31, %v493_v30 }
  0x85   :  { %4680 = vmatmul.mubr.msk.f32.gmra.mrb[8].mxu0 %vm161_vm0, %v127_v14  ;;  %4850 = vmatprep.subr.bf16.mxu1 %v7108_v11  ;;  %v496_v41 = vld [vmem:[#allocation12 + $0x1a0] sm:$0xff]  ;;  %v494_v44 = vld [vmem:[#allocation12 + $0x190] sm:$0xff]  ;;  %v7140_v46 = vpack.c.bf16 %v499_v37, %v495_v36  ;;  %v501_v48 = vld [vmem:[#allocation12 + $0x1c8] sm:$0xff] }
  0x86   :  { %4688 = vmatmul.mubr.msk.f32.gmra.mrb[8].mxu1 %vm161_vm0, %v127_v14  ;;  %4820 = vmatpush1.bf16.msra.mxu0 %v7112_v15  ;;  %8496 = vst [vmem:[#allocation41_spill] sm:$0xff] %v7132_v39  ;;  %8497 = vst [vmem:[#allocation42_spill] sm:$0xff] %v7136_v43  ;;  %v498_v45 = vld [vmem:[#allocation12 + $0x1b0] sm:$0xff]  ;;  %v505_v49 = vld [vmem:[#allocation12 + $0x1e8] sm:$0xff]  ;;  %v7144_v52 = vpack.c.bf16 %v496_v41, %v492_v40 }
  0x87   :  { %4852 = vmatpush1.bf16.msra.mxu1 %v7116_v19  ;;  %280 = vmatprep.mubr.f32.mxu0 %v8279_v0  ;;  %8498 = vst [vmem:[#allocation43_spill] sm:$0xff] %v7140_v46  ;;  %v129_v51 = vld [vmem:[#allocation7 + $0x30] sm:$0xff]  ;;  %v503_v53 = vld [vmem:[#allocation12 + $0x1d8] sm:$0xff]  ;;  %v7148_v56 = vpack.c.bf16 %v498_v45, %v494_v44  ;;  %v500_v57 = vld [vmem:[#allocation12 + $0x1c0] sm:$0xff]  ;;  %v7152_v60 = vpack.c.bf16 %v505_v49, %v501_v48 }
  0x88   :  { %393 = vmatprep.mubr.f32.mxu1 %v8279_v0  ;;  %4822 = vmatprep.subr.bf16.mxu0 %v7120_v24  ;;  %8499 = vst [vmem:[#allocation44_spill] sm:$0xff] %v7144_v52  ;;  %v507_v55 = vld [vmem:[#allocation12 + $0x1f8] sm:$0xff]  ;;  %v504_v59 = vld [vmem:[#allocation12 + $0x1e0] sm:$0xff]  ;;  %v502_v62 = vld [vmem:[#allocation12 + $0x1d0] sm:$0xff] }
  0x89   :  { %4681 = vmatmul.mubr.msk.f32.gmra.mrb[10].mxu0 %vm161_vm0, %v128_v32  ;;  %4854 = vmatprep.subr.bf16.mxu1 %v7124_v28  ;;  %8500 = vst [vmem:[#allocation45_spill] sm:$0xff] %v7148_v56  ;;  %8501 = vst [vmem:[#allocation46_spill] sm:$0xff] %v7152_v60  ;;  %v506_v63 = vld [vmem:[#allocation12 + $0x1f0] sm:$0xff]  ;;  %v7156_v1 = vpack.c.bf16 %v507_v55, %v503_v53  ;;  %v573_v3 = vld [vmem:[#allocation15 + $0x8] sm:$0xff]  ;;  %v7160_v7 = vpack.c.bf16 %v504_v59, %v500_v57 }
  0x8a   :  { %4689 = vmatmul.mubr.msk.f32.gmra.mrb[10].mxu1 %vm161_vm0, %v128_v32  ;;  %4824 = vmatpush1.bf16.msra.mxu0 %v7128_v33  ;;  %v577_v4 = vld [vmem:[#allocation15 + $0x28] sm:$0xff]  ;;  %v130_v6 = vld [vmem:[#allocation7 + $0x38] sm:$0xff]  ;;  %v7164_v12 = vpack.c.bf16 %v506_v63, %v502_v62  ;;  %v572_v13 = vld [vmem:[#allocation15] sm:$0xff] }
  0x8b   :  { %4856 = vmatpush1.bf16.msra.mxu1 %v7132_v39  ;;  %286 = vmatprep.mubr.f32.mxu0 %v8279_v0  ;;  %8502 = vst [vmem:[#allocation47_spill] sm:$0xff] %v7156_v1  ;;  %8503 = vst [vmem:[#allocation48_spill] sm:$0xff] %v7160_v7  ;;  %v575_v9 = vld [vmem:[#allocation15 + $0x18] sm:$0xff]  ;;  %v576_v14 = vld [vmem:[#allocation15 + $0x20] sm:$0xff]  ;;  %v7168_v18 = vpack.c.bf16 %v577_v4, %v573_v3 }
  0x8c   :  { %399 = vmatprep.mubr.f32.mxu1 %v8279_v0  ;;  %4826 = vmatprep.subr.bf16.mxu0 %v7136_v43  ;;  %v579_v10 = vld [vmem:[#allocation15 + $0x38] sm:$0xff]  ;;  %8504 = vst [vmem:[#allocation49_spill] sm:$0xff] %v7164_v12  ;;  %v574_v16 = vld [vmem:[#allocation15 + $0x10] sm:$0xff]  ;;  %v581_v23 = vld [vmem:[#allocation15 + $0x48] sm:$0xff]  ;;  %v7176_v32 = vpack.c.bf16 %v576_v14, %v572_v13 }
  0x8d   :  { %4682 = vmatmul.mubr.msk.f32.gmra.mrb[12].mxu0 %vm161_vm0, %v129_v51  ;;  %4858 = vmatprep.subr.bf16.mxu1 %v7140_v46  ;;  %8505 = vst [vmem:[#allocation50_spill] sm:$0xff] %v7168_v18  ;;  %v578_v20 = vld [vmem:[#allocation15 + $0x30] sm:$0xff]  ;;  %v585_v26 = vld [vmem:[#allocation15 + $0x68] sm:$0xff]  ;;  %v7172_v27 = vpack.c.bf16 %v579_v10, %v575_v9  ;;  %v583_v30 = vld [vmem:[#allocation15 + $0x58] sm:$0xff] }
  0x8e   :  { %4690 = vmatmul.mubr.msk.f32.gmra.mrb[12].mxu1 %vm161_vm0, %v129_v51  ;;  %4828 = vmatpush1.bf16.msra.mxu0 %v7144_v52  ;;  %v587_v31 = vld [vmem:[#allocation15 + $0x78] sm:$0xff]  ;;  %8507 = vst [vmem:[#allocation52_spill] sm:$0xff] %v7176_v32  ;;  %v7180_v36 = vpack.c.bf16 %v578_v20, %v574_v16  ;;  %v7182_v37 = vpack.c.bf16 %v585_v26, %v581_v23  ;;  %v580_v40 = vld [vmem:[#allocation15 + $0x40] sm:$0xff]  ;;  %v582_v44 = vld [vmem:[#allocation15 + $0x50] sm:$0xff] }
  0x8f   :  { %4860 = vmatpush1.bf16.msra.mxu1 %v7148_v56  ;;  %292 = vmatprep.mubr.f32.mxu0 %v8279_v0  ;;  %8506 = vst [vmem:[#allocation51_spill] sm:$0xff] %v7172_v27  ;;  %v584_v41 = vld [vmem:[#allocation15 + $0x60] sm:$0xff]  ;;  %v7186_v45 = vpack.c.bf16 %v587_v31, %v583_v30  ;;  %v586_v48 = vld [vmem:[#allocation15 + $0x70] sm:$0xff]  ;;  %v589_v49 = vld [vmem:[#allocation15 + $0x88] sm:$0xff] }
  0x90   :  { %405 = vmatprep.mubr.f32.mxu1 %v8279_v0  ;;  %4830 = vmatprep.subr.bf16.mxu0 %v7152_v60  ;;  %8508 = vst [vmem:[#allocation53_spill] sm:$0xff] %v7180_v36  ;;  %8509 = vst [vmem:[#allocation54_spill] sm:$0xff] %v7182_v37  ;;  %v593_v51 = vld [vmem:[#allocation15 + $0xa8] sm:$0xff]  ;;  %v591_v53 = vld [vmem:[#allocation15 + $0x98] sm:$0xff]  ;;  %v7192_v57 = vpack.c.bf16 %v584_v41, %v580_v40  ;;  %v7196_v59 = vpack.c.bf16 %v586_v48, %v582_v44 }
  0x91   :  { %4683 = vmatmul.mubr.msk.f32.gmra.mrb[14].mxu0 %vm161_vm0, %v130_v6  ;;  %4862 = vmatprep.subr.bf16.mxu1 %v7156_v1  ;;  %8510 = vst [vmem:[#allocation55_spill] sm:$0xff] %v7186_v45  ;;  %v595_v55 = vld [vmem:[#allocation15 + $0xb8] sm:$0xff]  ;;  %v7198_v62 = vpack.c.bf16 %v593_v51, %v589_v49  ;;  %v588_v63 = vld [vmem:[#allocation15 + $0x80] sm:$0xff]  ;;  %v590_v4 = vld [vmem:[#allocation15 + $0x90] sm:$0xff] }
  0x92   :  { %4691 = vmatmul.mubr.msk.f32.gmra.mrb[14].mxu1 %vm161_vm0, %v130_v6  ;;  %4832 = vmatpush1.bf16.msra.mxu0 %v7160_v7  ;;  %8511 = vst [vmem:[#allocation56_spill] sm:$0xff] %v7192_v57  ;;  %8512 = vst [vmem:[#allocation57_spill] sm:$0xff] %v7196_v59  ;;  %v592_v3 = vld [vmem:[#allocation15 + $0xa0] sm:$0xff]  ;;  %v7201_v6 = vpack.c.bf16 %v595_v55, %v591_v53  ;;  %v594_v9 = vld [vmem:[#allocation15 + $0xb0] sm:$0xff] }
  0x93   :  { %4864 = vmatpush1.bf16.msra.mxu1 %v7164_v12  ;;  %709 = vmatprep.mubr.f32.mxu0 %v8279_v0  ;;  %8513 = vst [vmem:[#allocation58_spill] sm:$0xff] %v7198_v62  ;;  %v597_v10 = vld [vmem:[#allocation15 + $0xc8] sm:$0xff]  ;;  %v599_v14 = vld [vmem:[#allocation15 + $0xd8] sm:$0xff]  ;;  %v7206_v20 = vpack.c.bf16 %v592_v3, %v588_v63  ;;  %v7210_v23 = vpack.c.bf16 %v594_v9, %v590_v4  ;;  %v596_v30 = vld [vmem:[#allocation15 + $0xc0] sm:$0xff] }
  0x94   :  { %780 = vmatprep.mubr.f32.mxu1 %v8279_v0  ;;  %4866 = vmatprep.subr.bf16.mxu0 %v7168_v18  ;;  %8514 = vst [vmem:[#allocation59_spill] sm:$0xff] %v7201_v6  ;;  %v601_v13 = vld [vmem:[#allocation15 + $0xe8] sm:$0xff]  ;;  %v603_v16 = vld [vmem:[#allocation15 + $0xf8] sm:$0xff]  ;;  %v600_v31 = vld [vmem:[#allocation15 + $0xe0] sm:$0xff] }
  0x95   :  { %710 = vmatmul.mubr.f32.vlgmr.msra.gmra.mrb[0].mxu0 %v8279_v0  ;;  %4898 = vmatprep.subr.bf16.mxu1 %v7172_v27  ;;  %8515 = vst [vmem:[#allocation60_spill] sm:$0xff] %v7206_v20  ;;  %8516 = vst [vmem:[#allocation61_spill] sm:$0xff] %v7210_v23  ;;  %v7212_v26 = vpack.c.bf16 %v601_v13, %v597_v10  ;;  %v598_v40 = vld [vmem:[#allocation15 + $0xd0] sm:$0xff]  ;;  %v7215_v41 = vpack.c.bf16 %v603_v16, %v599_v14  ;;  %v605_v48 = vld [vmem:[#allocation15 + $0x108] sm:$0xff] }
  0x96   :  { %781 = vmatmul.mubr.f32.vlgmr.msra.gmra.mrb[0].mxu1 %v8279_v0  ;;  %4868 = vmatpush1.bf16.msra.mxu0 %v7176_v32  ;;  %v602_v44 = vld [vmem:[#allocation15 + $0xf0] sm:$0xff]  ;;  %v609_v49 = vld [vmem:[#allocation15 + $0x128] sm:$0xff]  ;;  %v607_v51 = vld [vmem:[#allocation15 + $0x118] sm:$0xff]  ;;  %v7218_v55 = vpack.c.bf16 %v600_v31, %v596_v30 }
  0x97   :  { %4900 = vmatpush1.bf16.msra.mxu1 %v7180_v36  ;;  %4870 = vmatprep.subr.bf16.mxu0 %v7182_v37  ;;  %8517 = vst [vmem:[#allocation62_spill] sm:$0xff] %v7212_v26  ;;  %8518 = vst [vmem:[#allocation63_spill] sm:$0xff] %v7215_v41  ;;  %v611_v53 = vld [vmem:[#allocation15 + $0x138] sm:$0xff]  ;;  %v7222_v63 = vpack.c.bf16 %v602_v44, %v598_v40  ;;  %v7224_v3 = vpack.c.bf16 %v609_v49, %v605_v48  ;;  %v604_v4 = vld [vmem:[#allocation15 + $0x100] sm:$0xff] }
  0x98   :  { %4902 = vmatprep.subr.bf16.mxu1 %v7186_v45  ;;  %879 = vmatprep.mubr.f32.mxu0 %v8279_v0  ;;  %8519 = vst [vmem:[#allocation64_spill] sm:$0xff] %v7218_v55  ;;  %v608_v9 = vld [vmem:[#allocation15 + $0x120] sm:$0xff]  ;;  %v7227_v10 = vpack.c.bf16 %v611_v53, %v607_v51  ;;  %v606_v13 = vld [vmem:[#allocation15 + $0x110] sm:$0xff]  ;;  %v613_v31 = vld [vmem:[#allocation15 + $0x148] sm:$0xff] }
  0x99   :  { %950 = vmatprep.mubr.f32.mxu1 %v8279_v0  ;;  %8520 = vst [vmem:[#allocation65_spill] sm:$0xff] %v7222_v63  ;;  %8521 = vst [vmem:[#allocation66_spill] sm:$0xff] %v7224_v3  ;;  %v610_v14 = vld [vmem:[#allocation15 + $0x130] sm:$0xff]  ;;  %v7230_v16 = vpack.c.bf16 %v608_v9, %v604_v4  ;;  %v617_v40 = vld [vmem:[#allocation15 + $0x168] sm:$0xff] }
  0x9a   :  { %4872 = vmatpush1.bf16.msra.mxu0 %v7192_v57  ;;  %8522 = vst [vmem:[#allocation67_spill] sm:$0xff] %v7227_v10  ;;  %v7234_v30 = vpack.c.bf16 %v610_v14, %v606_v13  ;;  %v615_v44 = vld [vmem:[#allocation15 + $0x158] sm:$0xff]  ;;  %v7239_v48 = vpack.c.bf16 %v617_v40, %v613_v31  ;;  %v612_v51 = vld [vmem:[#allocation15 + $0x140] sm:$0xff]  ;;  %v614_v13 = vld [vmem:[#allocation15 + $0x150] sm:$0xff] }
  0x9b   :  { %4904 = vmatpush1.bf16.msra.mxu1 %v7196_v59  ;;  %4874 = vmatprep.subr.bf16.mxu0 %v7198_v62  ;;  %8523 = vst [vmem:[#allocation68_spill] sm:$0xff] %v7230_v16  ;;  %v619_v49 = vld [vmem:[#allocation15 + $0x178] sm:$0xff]  ;;  %v616_v53 = vld [vmem:[#allocation15 + $0x160] sm:$0xff]  ;;  %v618_v14 = vld [vmem:[#allocation15 + $0x170] sm:$0xff] }
  0x9c   :  { %4906 = vmatprep.subr.bf16.mxu1 %v7201_v6  ;;  %8524 = vst [vmem:[#allocation69_spill] sm:$0xff] %v7234_v30  ;;  %8525 = vst [vmem:[#allocation70_spill] sm:$0xff] %v7239_v48  ;;  %v7241_v4 = vpack.c.bf16 %v619_v49, %v615_v44  ;;  %v7243_v9 = vpack.c.bf16 %v616_v53, %v612_v51  ;;  %v7246_v0 = vpack.c.bf16 %v618_v14, %v614_v13  ;;  %v625_v31 = vld [vmem:[#allocation15 + $0x1a8] sm:$0xff]  ;;  %v623_v40 = vld [vmem:[#allocation15 + $0x198] sm:$0xff] }
  0x9d   :  { %v627_v44 = vld [vmem:[#allocation15 + $0x1b8] sm:$0xff]  ;;  %v620_v49 = vld [vmem:[#allocation15 + $0x180] sm:$0xff]  ;;  %v622_v13 = vld [vmem:[#allocation15 + $0x190] sm:$0xff] }
  0x9e   :  { %4876 = vmatpush1.bf16.msra.mxu0 %v7206_v20  ;;  %8526 = vst [vmem:[#allocation71_spill] sm:$0xff] %v7241_v4  ;;  %8527 = vst [vmem:[#allocation72_spill] sm:$0xff] %v7243_v9  ;;  %v624_v51 = vld [vmem:[#allocation15 + $0x1a0] sm:$0xff]  ;;  %v7253_v53 = vpack.c.bf16 %v627_v44, %v623_v40  ;;  %v626_v14 = vld [vmem:[#allocation15 + $0x1b0] sm:$0xff] }
  0x9f   :  { %4908 = vmatpush1.bf16.msra.mxu1 %v7210_v23  ;;  %4878 = vmatprep.subr.bf16.mxu0 %v7212_v26  ;;  %8528 = vst [vmem:[#allocation73_spill] sm:$0xff] %v7246_v0  ;;  %v635_v40 = vld [vmem:[#allocation15 + $0x1f8] sm:$0xff]  ;;  %v628_v44 = vld [vmem:[#allocation15 + $0x1c0] sm:$0xff] }
  0xa0   :  { %4910 = vmatprep.subr.bf16.mxu1 %v7215_v41  ;;  %8530 = vst [vmem:[#allocation75_spill] sm:$0xff] %v7253_v53 }
  0xa2   :  { %4880 = vmatpush1.bf16.msra.mxu0 %v7218_v55  ;;  %v563_v55 = vld [vmem:[#allocation13 + $0x1b8] sm:$0xff] }
  0xa3   :  { %4912 = vmatpush1.bf16.msra.mxu1 %v7222_v63  ;;  %4882 = vmatprep.subr.bf16.mxu0 %v7224_v3  ;;  %v561_v63 = vld [vmem:[#allocation13 + $0x1a8] sm:$0xff] }
  0xa4   :  { %4914 = vmatprep.subr.bf16.mxu1 %v7227_v10  ;;  %v7255_v10 = vpack.c.bf16 %v624_v51, %v620_v49  ;;  %v632_v49 = vld [vmem:[#allocation15 + $0x1e0] sm:$0xff] }
  0xa6   :  { %4884 = vmatpush1.bf16.msra.mxu0 %v7230_v16  ;;  %8531 = vst [vmem:[#allocation76_spill] sm:$0xff] %v7255_v10 }
  0xa7   :  { %4916 = vmatpush1.bf16.msra.mxu1 %v7234_v30  ;;  %4886 = vmatprep.subr.bf16.mxu0 %v7239_v48  ;;  %v621_v30 = vld [vmem:[#allocation15 + $0x188] sm:$0xff]  ;;  %v7267_v48 = vpack.c.bf16 %v632_v49, %v628_v44  ;;  %v512_v44 = vld [vmem:[#allocation13 + $0x20] sm:$0xff] }
  0xa8   :  { %4918 = vmatprep.subr.bf16.mxu1 %v7241_v4  ;;  %v7251_v16 = vpack.c.bf16 %v625_v31, %v621_v30  ;;  %v7258_v4 = vpack.c.bf16 %v626_v14, %v622_v13  ;;  %v633_v30 = vld [vmem:[#allocation15 + $0x1e8] sm:$0xff]  ;;  %v631_v31 = vld [vmem:[#allocation15 + $0x1d8] sm:$0xff]  ;;  %v630_v13 = vld [vmem:[#allocation15 + $0x1d0] sm:$0xff] }
  0xa9   :  { %v7265_v51 = vpack.c.bf16 %v635_v40, %v631_v31  ;;  %8535 = vst [vmem:[#allocation80_spill] sm:$0xff] %v7267_v48  ;;  %v634_v14 = vld [vmem:[#allocation15 + $0x1f0] sm:$0xff]  ;;  %v515_v31 = vld [vmem:[#allocation13 + $0x38] sm:$0xff]  ;;  %v508_v40 = vld [vmem:[#allocation13] sm:$0xff] }
  0xaa   :  { %4888 = vmatpush1.bf16.msra.mxu0 %v7243_v9  ;;  %8529 = vst [vmem:[#allocation74_spill] sm:$0xff] %v7251_v16  ;;  %8532 = vst [vmem:[#allocation77_spill] sm:$0xff] %v7258_v4 }
  0xab   :  { %4920 = vmatpush1.bf16.msra.mxu1 %v7246_v0  ;;  %4890 = vmatprep.subr.bf16.mxu0 %v7251_v16  ;;  %v629_v0 = vld [vmem:[#allocation15 + $0x1c8] sm:$0xff]  ;;  %8534 = vst [vmem:[#allocation79_spill] sm:$0xff] %v7265_v51  ;;  %v7279_v16 = vpack.c.bf16 %v512_v44, %v508_v40  ;;  %v516_v40 = vld [vmem:[#allocation13 + $0x40] sm:$0xff] }
  0xac   :  { %4922 = vmatprep.subr.bf16.mxu1 %v7253_v53  ;;  %v7263_v9 = vpack.c.bf16 %v633_v30, %v629_v0  ;;  %v7270_v53 = vpack.c.bf16 %v634_v14, %v630_v13  ;;  %v513_v0 = vld [vmem:[#allocation13 + $0x28] sm:$0xff]  ;;  %v511_v30 = vld [vmem:[#allocation13 + $0x18] sm:$0xff]  ;;  %v510_v13 = vld [vmem:[#allocation13 + $0x10] sm:$0xff] }
  0xad   :  { %v7277_v49 = vpack.c.bf16 %v515_v31, %v511_v30  ;;  %8539 = vst [vmem:[#allocation84_spill] sm:$0xff] %v7279_v16  ;;  %v514_v14 = vld [vmem:[#allocation13 + $0x30] sm:$0xff]  ;;  %v523_v31 = vld [vmem:[#allocation13 + $0x78] sm:$0xff]  ;;  %v520_v44 = vld [vmem:[#allocation13 + $0x60] sm:$0xff] }
  0xae   :  { %4892 = vmatpush1.bf16.msra.mxu0 %v7255_v10  ;;  %8533 = vst [vmem:[#allocation78_spill] sm:$0xff] %v7263_v9  ;;  %8536 = vst [vmem:[#allocation81_spill] sm:$0xff] %v7270_v53 }
  0xaf   :  { %4924 = vmatpush1.bf16.msra.mxu1 %v7258_v4  ;;  %4894 = vmatprep.subr.bf16.mxu0 %v7263_v9  ;;  %v509_v4 = vld [vmem:[#allocation13 + $0x8] sm:$0xff]  ;;  %8538 = vst [vmem:[#allocation83_spill] sm:$0xff] %v7277_v49 }
  0xb0   :  { %4926 = vmatprep.subr.bf16.mxu1 %v7265_v51  ;;  %v7275_v10 = vpack.c.bf16 %v513_v0, %v509_v4  ;;  %v8540_v51 = vmov 0.0   ;;  %v517_v4 = vld [vmem:[#allocation13 + $0x48] sm:$0xff] }
  0xb1   :  { %v521_v0 = vld [vmem:[#allocation13 + $0x68] sm:$0xff] }
  0xb2   :  { %4896 = vmatpush1.bf16.msra.mxu0 %v7267_v48  ;;  %8537 = vst [vmem:[#allocation82_spill] sm:$0xff] %v7275_v10  ;;  %v7283_v48 = vpack.c.bf16 %v514_v14, %v510_v13  ;;  %v7289_v30 = vpack.c.bf16 %v521_v0, %v517_v4  ;;  %v7293_v13 = vpack.c.bf16 %v520_v44, %v516_v40  ;;  %v518_v14 = vld [vmem:[#allocation13 + $0x50] sm:$0xff]  ;;  %v525_v4 = vld [vmem:[#allocation13 + $0x88] sm:$0xff]  ;;  %v524_v40 = vld [vmem:[#allocation13 + $0x80] sm:$0xff] }
  0xb3   :  { %4928 = vmatpush1.bf16.msra.mxu1 %v7270_v53  ;;  %4930 = vmatprep.subr.bf16.mxu0 %v7275_v10  ;;  %v519_v53 = vld [vmem:[#allocation13 + $0x58] sm:$0xff]  ;;  %v529_v0 = vld [vmem:[#allocation13 + $0xa8] sm:$0xff]  ;;  %v528_v44 = vld [vmem:[#allocation13 + $0xa0] sm:$0xff] }
  0xb4   :  { %8541 = vst [vmem:[#allocation85_spill] sm:$0xff] %v7283_v48  ;;  %4962 = vmatprep.subr.bf16.mxu1 %v7277_v49  ;;  %8542 = vst [vmem:[#allocation86_spill] sm:$0xff] %v7289_v30  ;;  %v7291_v10 = vpack.c.bf16 %v523_v31, %v519_v53  ;;  %v522_v49 = vld [vmem:[#allocation13 + $0x70] sm:$0xff]  ;;  %v7303_v53 = vpack.c.bf16 %v529_v0, %v525_v4  ;;  %v531_v31 = vld [vmem:[#allocation13 + $0xb8] sm:$0xff]  ;;  %v7307_v3 = vpack.c.bf16 %v528_v44, %v524_v40 }
  0xb5   :  { %880 = vmatmul.mubr.f32.vlgmr.msra.gmra.mrb[16].mxu0 %v8540_v51  ;;  %8544 = vst [vmem:[#allocation88_spill] sm:$0xff] %v7293_v13  ;;  %v532_v0 = vld [vmem:[#allocation13 + $0xc0] sm:$0xff] }
  0xb6   :  { %951 = vmatmul.mubr.f32.vlgmr.msra.gmra.mrb[16].mxu1 %v8540_v51  ;;  %4932 = vmatpush1.bf16.msra.mxu0 %v7279_v16  ;;  %8543 = vst [vmem:[#allocation87_spill] sm:$0xff] %v7291_v10  ;;  %v7298_v16 = vpack.c.bf16 %v522_v49, %v518_v14  ;;  %8546 = vst [vmem:[#allocation90_spill] sm:$0xff] %v7303_v53  ;;  %v526_v49 = vld [vmem:[#allocation13 + $0x90] sm:$0xff] }
  0xb7   :  { %4964 = vmatpush1.bf16.msra.mxu1 %v7283_v48  ;;  %1021 = vmatprep.mubr.f32.mxu0 %v8540_v51  ;;  %v527_v48 = vld [vmem:[#allocation13 + $0x98] sm:$0xff]  ;;  %8548 = vst [vmem:[#allocation92_spill] sm:$0xff] %v7307_v3  ;;  %v530_v14 = vld [vmem:[#allocation13 + $0xb0] sm:$0xff] }
  0xb8   :  { %1092 = vmatprep.mubr.f32.mxu1 %v8540_v51  ;;  %4934 = vmatprep.subr.bf16.mxu0 %v7289_v30  ;;  %8545 = vst [vmem:[#allocation89_spill] sm:$0xff] %v7298_v16  ;;  %v7305_v9 = vpack.c.bf16 %v531_v31, %v527_v48  ;;  %v537_v30 = vld [vmem:[#allocation13 + $0xe8] sm:$0xff]  ;;  %v539_v48 = vld [vmem:[#allocation13 + $0xf8] sm:$0xff]  ;;  %v536_v31 = vld [vmem:[#allocation13 + $0xe0] sm:$0xff] }
  0xb9   :  { %4966 = vmatprep.subr.bf16.mxu1 %v7291_v10  ;;  %v7310_v10 = vpack.c.bf16 %v530_v14, %v526_v49  ;;  %v7319_v44 = vpack.c.bf16 %v536_v31, %v532_v0  ;;  %v534_v49 = vld [vmem:[#allocation13 + $0xd0] sm:$0xff] }
  0xba   :  { %4936 = vmatpush1.bf16.msra.mxu0 %v7293_v13  ;;  %8547 = vst [vmem:[#allocation91_spill] sm:$0xff] %v7305_v9  ;;  %v533_v13 = vld [vmem:[#allocation13 + $0xc8] sm:$0xff]  ;;  %v538_v14 = vld [vmem:[#allocation13 + $0xf0] sm:$0xff] }
  0xbb   :  { %4968 = vmatpush1.bf16.msra.mxu1 %v7298_v16  ;;  %4938 = vmatprep.subr.bf16.mxu0 %v7303_v53  ;;  %8549 = vst [vmem:[#allocation93_spill] sm:$0xff] %v7310_v10  ;;  %v535_v16 = vld [vmem:[#allocation13 + $0xd8] sm:$0xff]  ;;  %v7315_v4 = vpack.c.bf16 %v537_v30, %v533_v13  ;;  %8552 = vst [vmem:[#allocation96_spill] sm:$0xff] %v7319_v44  ;;  %v545_v53 = vld [vmem:[#allocation13 + $0x128] sm:$0xff] }
  0xbc   :  { %4970 = vmatprep.subr.bf16.mxu1 %v7305_v9  ;;  %v7317_v40 = vpack.c.bf16 %v539_v48, %v535_v16  ;;  %v7322_v9 = vpack.c.bf16 %v538_v14, %v534_v49  ;;  %v547_v16 = vld [vmem:[#allocation13 + $0x138] sm:$0xff]  ;;  %v540_v13 = vld [vmem:[#allocation13 + $0x100] sm:$0xff]  ;;  %v542_v49 = vld [vmem:[#allocation13 + $0x110] sm:$0xff] }
  0xbd   :  { %8550 = vst [vmem:[#allocation94_spill] sm:$0xff] %v7315_v4  ;;  %v544_v48 = vld [vmem:[#allocation13 + $0x120] sm:$0xff]  ;;  %v546_v14 = vld [vmem:[#allocation13 + $0x130] sm:$0xff] }
  0xbe   :  { %4940 = vmatpush1.bf16.msra.mxu0 %v7307_v3  ;;  %8551 = vst [vmem:[#allocation95_spill] sm:$0xff] %v7317_v40  ;;  %8553 = vst [vmem:[#allocation97_spill] sm:$0xff] %v7322_v9  ;;  %v541_v3 = vld [vmem:[#allocation13 + $0x108] sm:$0xff]  ;;  %v7331_v31 = vpack.c.bf16 %v544_v48, %v540_v13 }
  0xbf   :  { %4972 = vmatpush1.bf16.msra.mxu1 %v7310_v10  ;;  %4942 = vmatprep.subr.bf16.mxu0 %v7315_v4  ;;  %v543_v10 = vld [vmem:[#allocation13 + $0x118] sm:$0xff]  ;;  %v7327_v30 = vpack.c.bf16 %v545_v53, %v541_v3  ;;  %v553_v4 = vld [vmem:[#allocation13 + $0x168] sm:$0xff]  ;;  %v548_v53 = vld [vmem:[#allocation13 + $0x140] sm:$0xff] }
  0xc0   :  { %4974 = vmatprep.subr.bf16.mxu1 %v7317_v40  ;;  %v7329_v0 = vpack.c.bf16 %v547_v16, %v543_v10  ;;  %8556 = vst [vmem:[#allocation100_spill] sm:$0xff] %v7331_v31  ;;  %v7334_v40 = vpack.c.bf16 %v546_v14, %v542_v49  ;;  %v555_v10 = vld [vmem:[#allocation13 + $0x178] sm:$0xff]  ;;  %v552_v16 = vld [vmem:[#allocation13 + $0x160] sm:$0xff]  ;;  %v550_v49 = vld [vmem:[#allocation13 + $0x150] sm:$0xff] }
  0xc1   :  { %8554 = vst [vmem:[#allocation98_spill] sm:$0xff] %v7327_v30  ;;  %v7343_v48 = vpack.c.bf16 %v552_v16, %v548_v53  ;;  %v554_v14 = vld [vmem:[#allocation13 + $0x170] sm:$0xff] }
  0xc2   :  { %4944 = vmatpush1.bf16.msra.mxu0 %v7319_v44  ;;  %8555 = vst [vmem:[#allocation99_spill] sm:$0xff] %v7329_v0  ;;  %8557 = vst [vmem:[#allocation101_spill] sm:$0xff] %v7334_v40  ;;  %v549_v44 = vld [vmem:[#allocation13 + $0x148] sm:$0xff]  ;;  %v558_v53 = vld [vmem:[#allocation13 + $0x190] sm:$0xff] }
  0xc3   :  { %4976 = vmatpush1.bf16.msra.mxu1 %v7322_v9  ;;  %4946 = vmatprep.subr.bf16.mxu0 %v7327_v30  ;;  %v551_v9 = vld [vmem:[#allocation13 + $0x158] sm:$0xff]  ;;  %v7339_v3 = vpack.c.bf16 %v553_v4, %v549_v44  ;;  %8560 = vst [vmem:[#allocation104_spill] sm:$0xff] %v7343_v48  ;;  %v557_v30 = vld [vmem:[#allocation13 + $0x188] sm:$0xff] }
  0xc4   :  { %4978 = vmatprep.subr.bf16.mxu1 %v7329_v0  ;;  %v7341_v13 = vpack.c.bf16 %v555_v10, %v551_v9  ;;  %v7346_v0 = vpack.c.bf16 %v554_v14, %v550_v49  ;;  %v7349_v4 = vpack.c.bf16 %v561_v63, %v557_v30  ;;  %v556_v9 = vld [vmem:[#allocation13 + $0x180] sm:$0xff]  ;;  %v562_v49 = vld [vmem:[#allocation13 + $0x1b0] sm:$0xff]  ;;  %v565_v14 = vld [vmem:[#allocation13 + $0x1c8] sm:$0xff] }
  0xc5   :  { %8558 = vst [vmem:[#allocation102_spill] sm:$0xff] %v7339_v3  ;;  %v560_v10 = vld [vmem:[#allocation13 + $0x1a0] sm:$0xff]  ;;  %v7359_v63 = vpack.c.bf16 %v562_v49, %v558_v53  ;;  %v567_v30 = vld [vmem:[#allocation13 + $0x1d8] sm:$0xff] }
  0xc6   :  { %4948 = vmatpush1.bf16.msra.mxu0 %v7331_v31  ;;  %8559 = vst [vmem:[#allocation103_spill] sm:$0xff] %v7341_v13  ;;  %8561 = vst [vmem:[#allocation105_spill] sm:$0xff] %v7346_v0  ;;  %v559_v31 = vld [vmem:[#allocation13 + $0x198] sm:$0xff]  ;;  %v7355_v16 = vpack.c.bf16 %v560_v10, %v556_v9  ;;  %v570_v9 = vld [vmem:[#allocation13 + $0x1f0] sm:$0xff] }
  0xc7   :  { %4980 = vmatpush1.bf16.msra.mxu1 %v7334_v40  ;;  %4950 = vmatprep.subr.bf16.mxu0 %v7339_v3  ;;  %8562 = vst [vmem:[#allocation106_spill] sm:$0xff] %v7349_v4  ;;  %v7351_v44 = vpack.c.bf16 %v563_v55, %v559_v31  ;;  %v569_v3 = vld [vmem:[#allocation13 + $0x1e8] sm:$0xff]  ;;  %8565 = vst [vmem:[#allocation109_spill] sm:$0xff] %v7359_v63  ;;  %v571_v31 = vld [vmem:[#allocation13 + $0x1f8] sm:$0xff] }
  0xc8   :  { %4982 = vmatprep.subr.bf16.mxu1 %v7341_v13  ;;  %8564 = vst [vmem:[#allocation108_spill] sm:$0xff] %v7355_v16  ;;  %v7361_v55 = vpack.c.bf16 %v569_v3, %v565_v14  ;;  %v564_v13 = vld [vmem:[#allocation13 + $0x1c0] sm:$0xff]  ;;  %v7363_v40 = vpack.c.bf16 %v571_v31, %v567_v30  ;;  %v141_v3 = vlaneseq }
  0xc9   :  { %8563 = vst [vmem:[#allocation107_spill] sm:$0xff] %v7351_v44 }
  0xca   :  { %4952 = vmatpush1.bf16.msra.mxu0 %v7343_v48  ;;  %8566 = vst [vmem:[#allocation110_spill] sm:$0xff] %v7361_v55  ;;  %8567 = vst [vmem:[#allocation111_spill] sm:$0xff] %v7363_v40  ;;  %v568_v48 = vld [vmem:[#allocation13 + $0x1e0] sm:$0xff]  ;;  %v7377_v53 = vshrl.u32 %v141_v3, 7 }
  0xcb   :  { %4984 = vmatpush1.bf16.msra.mxu1 %v7346_v0  ;;  %4954 = vmatprep.subr.bf16.mxu0 %v7349_v4  ;;  %v566_v0 = vld [vmem:[#allocation13 + $0x1d0] sm:$0xff]  ;;  %v7367_v10 = vpack.c.bf16 %v568_v48, %v564_v13 }
  0xcc   :  { %4986 = vmatprep.subr.bf16.mxu1 %v7351_v44  ;;  %v7369_v4 = vpack.c.bf16 %v570_v9, %v566_v0  ;;  %v8377_v13 = vsub.s32 0, %v7377_v53  ;;  %v139_v0 = vld [vmem:[%s8272_s3] sm:$0xf]  ;;  %v8378_v48 = vsub.s32 1, %v7377_v53  ;;  %v8387_v31 = vsub.s32 2, %v7377_v53 }
  0xcd   :  { %8568 = vst [vmem:[#allocation112_spill] sm:$0xff] %v7367_v10 }
  0xce   :  { %4956 = vmatpush1.bf16.msra.mxu0 %v7355_v16  ;;  %8569 = vst [vmem:[#allocation113_spill] sm:$0xff] %v7369_v4  ;;  %v7386_v49 = vrot.slane %v139_v0, %v8377_v13  ;;  %v7390_v14 = vrot.slane %v139_v0, %v8378_v48  ;;  %v8394_v48 = vsub.s32 3, %v7377_v53 }
  0xcf   :  { %4988 = vmatpush1.bf16.msra.mxu1 %v7359_v63  ;;  %4958 = vmatprep.subr.bf16.mxu0 %v7361_v55 }
  0xd0   :  { %4990 = vmatprep.subr.bf16.mxu1 %v7363_v40  ;;  %8570 = vst [vmem:[#allocation114_spill] sm:$0xff] %v7386_v49  ;;  %8571 = vst [vmem:[#allocation115_spill] sm:$0xff] %v7390_v14  ;;  %v7397_v40 = vrot.slane %v139_v0, %v8387_v31 }
  0xd2   :  { %4960 = vmatpush1.bf16.msra.mxu0 %v7367_v10  ;;  %8572 = vst [vmem:[#allocation116_spill] sm:$0xff] %v7397_v40 }
  0xd3   :  { %4992 = vmatpush1.bf16.msra.mxu1 %v7369_v4  ;;  %4994 = vmatprep.subr.bf16.mxu0 %v7047_v17 }
  0xd4   :  { %5026 = vmatprep.subr.bf16.mxu1 %v7049_v21 }
 0x168   :  { %v711_v30 = vpop.f32.mrb[0].mxu0 }
 0x169   :  { %v6361_v9 = vadd.f32 %v711_v30, %v7386_v49  ;;  %v782_v3 = vpop.f32.mrb[0].mxu1  ;;  %v713_v21 = vpop.f32.mrb[1].mxu0  ;;  %v7403_v30 = vrot.slane %v139_v0, %v8394_v48  ;;  %v8588_v48 = vld [vmem:[#allocation79_spill] sm:$0xff] }
 0x16a   :  { %v6362_v17 = vadd.f32 %v713_v21, %v7390_v14  ;;  %v784_v4 = vpop.f32.mrb[1].mxu1  ;;  %v6377_v55 = vadd.f32 %v782_v3, %v7397_v40 }
 0x16b   :  { %v4692_v10 = vmul.f32 -1.442695, %v6361_v9  ;;  %v6378_v21 = vadd.f32 %v784_v4, %v7403_v30 }
 0x16c   :  { %v4693_v13 = vmul.f32 -1.442695, %v6362_v17  ;;  %v4694_v63 = vmul.f32 -1.442695, %v6377_v55  ;;  %v8575_v55 = vld [vmem:[#allocation66_spill] sm:$0xff] }
 0x16d   :  { %6471 = vpow2.f32 %v4692_v10 }
 0x16e   :  { %6473 = vpow2.f32 %v4693_v13 }
 0x16f   :  { %6475 = vpow2.f32 %v4694_v63 }
 0x170   :  { %6477 = vtanh.f32 %v6378_v21  ;;  %v8579_v21 = vld [vmem:[#allocation70_spill] sm:$0xff] }
 0x177   :  { %v6472_v16 = vpop.eup %6471 }
 0x178   :  { %v800_v9 = vadd.f32 1.0, %v6472_v16  ;;  %v6474_v44 = vpop.eup %6473 }
 0x179   :  { %v801_v17 = vadd.f32 1.0, %v6474_v44  ;;  %v6476_v10 = vpop.eup %6475  ;;  %v8574_v44 = vld [vmem:[#allocation65_spill] sm:$0xff] }
 0x17a   :  { %6479 = vrcp.f32 %v800_v9  ;;  %v6478_v31 = vpop.eup %6477  ;;  %v802_v40 = vadd.f32 1.0, %v6476_v10  ;;  %v8580_v9 = vld [vmem:[#allocation71_spill] sm:$0xff]  ;;  %v8582_v10 = vld [vmem:[#allocation73_spill] sm:$0xff] }
 0x17b   :  { %6481 = vrcp.f32 %v801_v17  ;;  %v8581_v17 = vld [vmem:[#allocation72_spill] sm:$0xff] }
 0x17c   :  { %6483 = vrcp.f32 %v802_v40  ;;  %v8573_v40 = vld [vmem:[#allocation64_spill] sm:$0xff] }
 0x184   :  { %v6480_v13 = vpop.eup %6479 }
 0x185   :  { %v811_v14 = vmul.f32 %v6480_v13, %v6478_v31  ;;  %v6482_v3 = vpop.eup %6481  ;;  %v8578_v31 = vld [vmem:[#allocation69_spill] sm:$0xff]  ;;  %v8583_v13 = vld [vmem:[#allocation74_spill] sm:$0xff] }
 0x186   :  { %v810_v49 = vmul.f32 0.0, %v6482_v3  ;;  %v6484_v4 = vpop.eup %6483  ;;  %v8584_v3 = vld [vmem:[#allocation75_spill] sm:$0xff] }
 0x188   :  { %v7406_v0 = vadd.f32 %v811_v14, %v810_v49  ;;  %v8576_v49 = vld [vmem:[#allocation67_spill] sm:$0xff]  ;;  %v8577_v14 = vld [vmem:[#allocation68_spill] sm:$0xff] }
 0x18a   :  { %6485 = vtanh.f32 %v7406_v0 }
 0x194   :  { %v6486_v16 = vpop.eup %6485 }
 0x195   :  { %v814_v63 = vmul.f32 %v6486_v16, %v6484_v4  ;;  %v8585_v4 = vld [vmem:[#allocation76_spill] sm:$0xff]  ;;  %v8586_v16 = vld [vmem:[#allocation77_spill] sm:$0xff] }
 0x197   :  { %1022 = vmatmul.mubr.f32.vlgmr.msra.gmra.mrb[16].mxu0 %v814_v63  ;;  %1093 = vmatmul.mubr.f32.vlgmr.msra.gmra.mrb[16].mxu1 %v814_v63 }
 0x198   :  { %4996 = vmatpush1.bf16.msra.mxu0 %v7051_v22  ;;  %5028 = vmatpush1.bf16.msra.mxu1 %v7054_v25 }
 0x199   :  { %4998 = vmatprep.subr.bf16.mxu0 %v7058_v29  ;;  %5030 = vmatprep.subr.bf16.mxu1 %v7062_v34 }
 0x19a   :  { %1217 = vmatprep.mubr.f32.mxu0 %v8540_v51  ;;  %1288 = vmatprep.mubr.f32.mxu1 %v8540_v51 }
 0x19c   :  { %5000 = vmatpush1.bf16.msra.mxu0 %v7064_v35  ;;  %5032 = vmatpush1.bf16.msra.mxu1 %v7068_v38 }
 0x19d   :  { %5002 = vmatprep.subr.bf16.mxu0 %v7072_v42  ;;  %5034 = vmatprep.subr.bf16.mxu1 %v7076_v47 }
 0x1a0   :  { %5004 = vmatpush1.bf16.msra.mxu0 %v7080_v50  ;;  %5036 = vmatpush1.bf16.msra.mxu1 %v7084_v54 }
 0x1a1   :  { %5006 = vmatprep.subr.bf16.mxu0 %v7088_v58  ;;  %5038 = vmatprep.subr.bf16.mxu1 %v7092_v61 }
 0x1a4   :  { %5008 = vmatpush1.bf16.msra.mxu0 %v7096_v2  ;;  %5040 = vmatpush1.bf16.msra.mxu1 %v7100_v5 }
 0x1a5   :  { %5010 = vmatprep.subr.bf16.mxu0 %v7104_v8  ;;  %5042 = vmatprep.subr.bf16.mxu1 %v7108_v11 }
 0x1a8   :  { %5012 = vmatpush1.bf16.msra.mxu0 %v7112_v15  ;;  %5044 = vmatpush1.bf16.msra.mxu1 %v7116_v19 }
 0x1a9   :  { %5014 = vmatprep.subr.bf16.mxu0 %v7120_v24  ;;  %5046 = vmatprep.subr.bf16.mxu1 %v7124_v28 }
 0x1ac   :  { %5016 = vmatpush1.bf16.msra.mxu0 %v7128_v33  ;;  %5048 = vmatpush1.bf16.msra.mxu1 %v7132_v39 }
 0x1ad   :  { %5018 = vmatprep.subr.bf16.mxu0 %v7136_v43  ;;  %5050 = vmatprep.subr.bf16.mxu1 %v7140_v46 }
 0x1b0   :  { %5020 = vmatpush1.bf16.msra.mxu0 %v7144_v52  ;;  %5052 = vmatpush1.bf16.msra.mxu1 %v7148_v56 }
 0x1b1   :  { %5022 = vmatprep.subr.bf16.mxu0 %v7152_v60  ;;  %5054 = vmatprep.subr.bf16.mxu1 %v7156_v1 }
 0x1b4   :  { %5024 = vmatpush1.bf16.msra.mxu0 %v7160_v7  ;;  %5056 = vmatpush1.bf16.msra.mxu1 %v7164_v12 }
 0x1b5   :  { %5058 = vmatprep.subr.bf16.mxu0 %v7168_v18  ;;  %5090 = vmatprep.subr.bf16.mxu1 %v7172_v27 }
 0x1b7   :  { %1218 = vmatmul.mubr.f32.vlgmr.msra.gmra.mrb[2].mxu0 %v814_v63  ;;  %1289 = vmatmul.mubr.f32.vlgmr.msra.gmra.mrb[2].mxu1 %v814_v63  ;;  %v8587_v63 = vld [vmem:[#allocation78_spill] sm:$0xff] }
 0x1b8   :  { %5060 = vmatpush1.bf16.msra.mxu0 %v7176_v32  ;;  %5092 = vmatpush1.bf16.msra.mxu1 %v7180_v36 }
 0x1b9   :  { %5062 = vmatprep.subr.bf16.mxu0 %v7182_v37  ;;  %5094 = vmatprep.subr.bf16.mxu1 %v7186_v45 }
 0x1ba   :  { %1387 = vmatprep.mubr.f32.mxu0 %v8540_v51  ;;  %1458 = vmatprep.mubr.f32.mxu1 %v8540_v51 }
 0x1bc   :  { %5064 = vmatpush1.bf16.msra.mxu0 %v7192_v57  ;;  %5096 = vmatpush1.bf16.msra.mxu1 %v7196_v59 }
 0x1bd   :  { %5066 = vmatprep.subr.bf16.mxu0 %v7198_v62  ;;  %5098 = vmatprep.subr.bf16.mxu1 %v7201_v6 }
 0x1c0   :  { %5068 = vmatpush1.bf16.msra.mxu0 %v7206_v20  ;;  %5100 = vmatpush1.bf16.msra.mxu1 %v7210_v23 }
 0x1c1   :  { %5070 = vmatprep.subr.bf16.mxu0 %v7212_v26  ;;  %5102 = vmatprep.subr.bf16.mxu1 %v7215_v41 }
 0x1c4   :  { %5072 = vmatpush1.bf16.msra.mxu0 %v8573_v40  ;;  %5104 = vmatpush1.bf16.msra.mxu1 %v8574_v44 }
 0x1c5   :  { %5074 = vmatprep.subr.bf16.mxu0 %v8575_v55  ;;  %5106 = vmatprep.subr.bf16.mxu1 %v8576_v49  ;;  %v8597_v55 = vsub.s32 2, %v7377_v53 }
 0x1c8   :  { %5076 = vmatpush1.bf16.msra.mxu0 %v8577_v14  ;;  %5108 = vmatpush1.bf16.msra.mxu1 %v8578_v31  ;;  %v8589_v31 = vld [vmem:[#allocation80_spill] sm:$0xff] }
 0x1c9   :  { %5078 = vmatprep.subr.bf16.mxu0 %v8579_v21  ;;  %5110 = vmatprep.subr.bf16.mxu1 %v8580_v9  ;;  %v8590_v21 = vld [vmem:[#allocation81_spill] sm:$0xff]  ;;  %v8591_v9 = vld [vmem:[#allocation82_spill] sm:$0xff] }
 0x1cc   :  { %5080 = vmatpush1.bf16.msra.mxu0 %v8581_v17  ;;  %5112 = vmatpush1.bf16.msra.mxu1 %v8582_v10  ;;  %v8592_v17 = vld [vmem:[#allocation83_spill] sm:$0xff] }
 0x1cd   :  { %5082 = vmatprep.subr.bf16.mxu0 %v8583_v13  ;;  %5114 = vmatprep.subr.bf16.mxu1 %v8584_v3  ;;  %v636_v3 = vld [vmem:[%s8275_s6] sm:$0xf] }
 0x1ce   :  { %v7492_v44 = vrot.slane %v636_v3, %v8597_v55 }
 0x1d0   :  { %5084 = vmatpush1.bf16.msra.mxu0 %v8585_v4  ;;  %5116 = vmatpush1.bf16.msra.mxu1 %v8586_v16  ;;  %v8593_v4 = vsub.s32 0, %v7377_v53  ;;  %8598 = vst [vmem:[#allocation119_spill] sm:$0xff] %v7492_v44 }
 0x1d1   :  { %5086 = vmatprep.subr.bf16.mxu0 %v8587_v63  ;;  %5118 = vmatprep.subr.bf16.mxu1 %v8588_v48  ;;  %v8595_v63 = vsub.s32 1, %v7377_v53 }
 0x1d2   :  { %v7482_v13 = vrot.slane %v636_v3, %v8593_v4  ;;  %v8599_v4 = vsub.s32 3, %v7377_v53 }
 0x1d3   :  { %v7486_v16 = vrot.slane %v636_v3, %v8595_v63 }
 0x1d4   :  { %5088 = vmatpush1.bf16.msra.mxu0 %v8589_v31  ;;  %5120 = vmatpush1.bf16.msra.mxu1 %v8590_v21  ;;  %8594 = vst [vmem:[#allocation117_spill] sm:$0xff] %v7482_v13  ;;  %v7496_v63 = vrot.slane %v636_v3, %v8599_v4 }
 0x1d5   :  { %5122 = vmatprep.subr.bf16.mxu0 %v8591_v9  ;;  %5154 = vmatprep.subr.bf16.mxu1 %v8592_v17  ;;  %8596 = vst [vmem:[#allocation118_spill] sm:$0xff] %v7486_v16 }
 0x1d6   :  { %8600 = vst [vmem:[#allocation120_spill] sm:$0xff] %v7496_v63 }
 0x26a   :  { %v1023_v48 = vpop.f32.mrb[16].mxu0  ;;  %v1094_v31 = vpop.f32.mrb[16].mxu1 }
 0x26b   :  { %v1120_v21 = vadd.f32 %v7482_v13, %v1023_v48  ;;  %v1025_v10 = vpop.f32.mrb[17].mxu0  ;;  %v1096_v9 = vpop.f32.mrb[17].mxu1  ;;  %v1122_v40 = vadd.f32 %v7492_v44, %v1094_v31 }
 0x26c   :  { %v1121_v17 = vadd.f32 %v7486_v16, %v1025_v10  ;;  %v1123_v48 = vadd.f32 %v7496_v63, %v1096_v9 }
 0x26d   :  { %v4695_v14 = vmul.f32 -1.442695, %v1120_v21  ;;  %v4697_v13 = vmul.f32 -1.442695, %v1122_v40  ;;  %v8601_v40 = vld [vmem:[#allocation114_spill] sm:$0xff] }
 0x26e   :  { %v4696_v49 = vmul.f32 -1.442695, %v1121_v17 }
 0x26f   :  { %6487 = vpow2.f32 %v4695_v14 }
 0x270   :  { %6489 = vpow2.f32 %v4696_v49 }
 0x271   :  { %6491 = vtanh.f32 %v1123_v48 }
 0x272   :  { %6493 = vpow2.f32 %v4697_v13  ;;  %v8602_v13 = vld [vmem:[#allocation115_spill] sm:$0xff] }
 0x279   :  { %v6488_v41 = vpop.eup %6487 }
 0x27a   :  { %v1133_v26 = vadd.f32 1.0, %v6488_v41  ;;  %v6490_v21 = vpop.eup %6489 }
 0x27b   :  { %v1134_v14 = vadd.f32 1.0, %v6490_v21  ;;  %v6492_v55 = vpop.eup %6491 }
 0x27c   :  { %6495 = vrcp.f32 %v1133_v26  ;;  %v6494_v17 = vpop.eup %6493 }
 0x27d   :  { %6497 = vrcp.f32 %v1134_v14  ;;  %v1135_v3 = vadd.f32 1.0, %v6494_v17 }
 0x27f   :  { %6499 = vrcp.f32 %v1135_v3 }
 0x286   :  { %v6496_v49 = vpop.eup %6495 }
 0x287   :  { %v1144_v10 = vmul.f32 %v6496_v49, %v6492_v55  ;;  %v6498_v53 = vpop.eup %6497  ;;  %v8603_v55 = vld [vmem:[#allocation116_spill] sm:$0xff] }
 0x288   :  { %v1143_v4 = vmul.f32 0.0, %v6498_v53 }
 0x289   :  { %v6500_v49 = vpop.eup %6499 }
 0x28a   :  { %v1219_v16 = vpop.f32.mrb[2].mxu0  ;;  %v1290_v31 = vpop.f32.mrb[2].mxu1  ;;  %v7500_v44 = vadd.f32 %v1144_v10, %v1143_v4 }
 0x28b   :  { %v6363_v9 = vadd.f32 %v1219_v16, %v8601_v40  ;;  %v1221_v41 = vpop.f32.mrb[3].mxu0  ;;  %v1292_v48 = vpop.f32.mrb[3].mxu1  ;;  %v6379_v17 = vadd.f32 %v1290_v31, %v8603_v55  ;;  %v8606_v31 = vld [vmem:[#allocation86_spill] sm:$0xff] }
 0x28c   :  { %v6364_v26 = vadd.f32 %v1221_v41, %v8602_v13  ;;  %6501 = vtanh.f32 %v7500_v44  ;;  %v6380_v53 = vadd.f32 %v1292_v48, %v7403_v30  ;;  %v8604_v41 = vld [vmem:[#allocation84_spill] sm:$0xff] }
 0x28d   :  { %v4698_v21 = vmul.f32 -1.442695, %v6363_v9  ;;  %v4700_v4 = vmul.f32 -1.442695, %v6379_v17  ;;  %v8605_v9 = vld [vmem:[#allocation85_spill] sm:$0xff]  ;;  %v8608_v48 = vld [vmem:[#allocation88_spill] sm:$0xff] }
 0x28e   :  { %v4699_v14 = vmul.f32 -1.442695, %v6364_v26  ;;  %v8611_v17 = vld [vmem:[#allocation91_spill] sm:$0xff] }
 0x28f   :  { %6503 = vpow2.f32 %v4698_v21  ;;  %v8607_v21 = vld [vmem:[#allocation87_spill] sm:$0xff] }
 0x290   :  { %6505 = vpow2.f32 %v4699_v14  ;;  %v8610_v14 = vld [vmem:[#allocation90_spill] sm:$0xff] }
 0x291   :  { %6507 = vtanh.f32 %v6380_v53 }
 0x292   :  { %6509 = vpow2.f32 %v4700_v4  ;;  %v8615_v4 = vld [vmem:[#allocation95_spill] sm:$0xff] }
 0x296   :  { %v6502_v10 = vpop.eup %6501 }
 0x297   :  { %v1147_v63 = vmul.f32 %v6502_v10, %v6500_v49  ;;  %v8612_v49 = vld [vmem:[#allocation92_spill] sm:$0xff]  ;;  %v8614_v10 = vld [vmem:[#allocation94_spill] sm:$0xff] }
 0x299   :  { %v6504_v16 = vpop.eup %6503  ;;  %1388 = vmatmul.mubr.f32.vlgmr.msra.gmra.mrb[18].mxu0 %v1147_v63  ;;  %1459 = vmatmul.mubr.f32.vlgmr.msra.gmra.mrb[18].mxu1 %v1147_v63  ;;  %v8609_v63 = vld [vmem:[#allocation89_spill] sm:$0xff] }
 0x29a   :  { %v1308_v40 = vadd.f32 1.0, %v6504_v16  ;;  %v6506_v3 = vpop.eup %6505  ;;  %5124 = vmatpush1.bf16.msra.mxu0 %v8604_v41  ;;  %5156 = vmatpush1.bf16.msra.mxu1 %v8605_v9 }
 0x29b   :  { %v1309_v26 = vadd.f32 1.0, %v6506_v3  ;;  %5126 = vmatprep.subr.bf16.mxu0 %v8606_v31  ;;  %5158 = vmatprep.subr.bf16.mxu1 %v8607_v21  ;;  %v6508_v53 = vpop.eup %6507  ;;  %v8616_v21 = vld [vmem:[#allocation96_spill] sm:$0xff]  ;;  %v8618_v31 = vld [vmem:[#allocation98_spill] sm:$0xff] }
 0x29c   :  { %6511 = vrcp.f32 %v1308_v40  ;;  %1529 = vmatprep.mubr.f32.mxu0 %v8540_v51  ;;  %1600 = vmatprep.mubr.f32.mxu1 %v8540_v51  ;;  %v8613_v40 = vld [vmem:[#allocation93_spill] sm:$0xff]  ;;  %v6510_v16 = vpop.eup %6509 }
 0x29d   :  { %6513 = vrcp.f32 %v1309_v26 }
 0x29e   :  { %5128 = vmatpush1.bf16.msra.mxu0 %v8608_v48  ;;  %5160 = vmatpush1.bf16.msra.mxu1 %v8609_v63  ;;  %v8617_v48 = vld [vmem:[#allocation97_spill] sm:$0xff] }
 0x29f   :  { %5130 = vmatprep.subr.bf16.mxu0 %v8610_v14  ;;  %5162 = vmatprep.subr.bf16.mxu1 %v8611_v17  ;;  %v1310_v14 = vadd.f32 1.0, %v6510_v16  ;;  %v8619_v17 = vld [vmem:[#allocation99_spill] sm:$0xff]  ;;  %v8624_v16 = vld [vmem:[#allocation104_spill] sm:$0xff] }
 0x2a1   :  { %6515 = vrcp.f32 %v1310_v14  ;;  %v8631_v14 = vld [vmem:[#allocation111_spill] sm:$0xff] }
 0x2a2   :  { %5132 = vmatpush1.bf16.msra.mxu0 %v8612_v49  ;;  %5164 = vmatpush1.bf16.msra.mxu1 %v8613_v40 }
 0x2a3   :  { %5134 = vmatprep.subr.bf16.mxu0 %v8614_v10  ;;  %5166 = vmatprep.subr.bf16.mxu1 %v8615_v4  ;;  %v8620_v10 = vld [vmem:[#allocation100_spill] sm:$0xff]  ;;  %v8621_v4 = vld [vmem:[#allocation101_spill] sm:$0xff] }
 0x2a6   :  { %v6512_v3 = vpop.eup %6511  ;;  %5136 = vmatpush1.bf16.msra.mxu0 %v8616_v21  ;;  %5168 = vmatpush1.bf16.msra.mxu1 %v8617_v48 }
 0x2a7   :  { %v1319_v26 = vmul.f32 %v6512_v3, %v6508_v53  ;;  %v6514_v63 = vpop.eup %6513  ;;  %5138 = vmatprep.subr.bf16.mxu0 %v8618_v31  ;;  %5170 = vmatprep.subr.bf16.mxu1 %v8619_v17  ;;  %v8622_v53 = vld [vmem:[#allocation102_spill] sm:$0xff]  ;;  %v8623_v3 = vld [vmem:[#allocation103_spill] sm:$0xff]  ;;  %v8625_v31 = vld [vmem:[#allocation105_spill] sm:$0xff] }
 0x2a8   :  { %v1318_v40 = vmul.f32 %v6514_v63, %v7406_v0  ;;  %v8626_v17 = vld [vmem:[#allocation106_spill] sm:$0xff]  ;;  %v8627_v0 = vld [vmem:[#allocation107_spill] sm:$0xff]  ;;  %v8628_v63 = vld [vmem:[#allocation108_spill] sm:$0xff] }
 0x2aa   :  { %v7526_v49 = vadd.f32 %v1319_v26, %v1318_v40  ;;  %5140 = vmatpush1.bf16.msra.mxu0 %v8620_v10  ;;  %5172 = vmatpush1.bf16.msra.mxu1 %v8621_v4  ;;  %v8629_v40 = vld [vmem:[#allocation109_spill] sm:$0xff]  ;;  %v8630_v26 = vld [vmem:[#allocation110_spill] sm:$0xff]  ;;  %v8632_v4 = vld [vmem:[#allocation112_spill] sm:$0xff] }
 0x2ab   :  { %5142 = vmatprep.subr.bf16.mxu0 %v8622_v53  ;;  %5174 = vmatprep.subr.bf16.mxu1 %v8623_v3  ;;  %v6516_v53 = vpop.eup %6515  ;;  %v8633_v10 = vld [vmem:[#allocation113_spill] sm:$0xff] }
 0x2ac   :  { %6517 = vtanh.f32 %v7526_v49 }
 0x2ae   :  { %5144 = vmatpush1.bf16.msra.mxu0 %v8624_v16  ;;  %5176 = vmatpush1.bf16.msra.mxu1 %v8625_v31  ;;  %v8634_v31 = vld [vmem:[#allocation24_spill] sm:$0xff] }
 0x2af   :  { %5146 = vmatprep.subr.bf16.mxu0 %v8626_v17  ;;  %5178 = vmatprep.subr.bf16.mxu1 %v8627_v0  ;;  %v8635_v17 = vld [vmem:[#allocation25_spill] sm:$0xff] }
 0x2b2   :  { %5148 = vmatpush1.bf16.msra.mxu0 %v8628_v63  ;;  %5180 = vmatpush1.bf16.msra.mxu1 %v8629_v40 }
 0x2b3   :  { %5150 = vmatprep.subr.bf16.mxu0 %v8630_v26  ;;  %5182 = vmatprep.subr.bf16.mxu1 %v8631_v14 }
 0x2b6   :  { %v6518_v3 = vpop.eup %6517  ;;  %5152 = vmatpush1.bf16.msra.mxu0 %v8632_v4  ;;  %5184 = vmatpush1.bf16.msra.mxu1 %v8633_v10 }
 0x2b7   :  { %v1322_v16 = vmul.f32 %v6518_v3, %v6516_v53  ;;  %5186 = vmatprep.subr.bf16.mxu0 %v8634_v31  ;;  %5218 = vmatprep.subr.bf16.mxu1 %v8635_v17  ;;  %v8636_v53 = vld [vmem:[#allocation62_spill] sm:$0xff]  ;;  %v8637_v3 = vld [vmem:[#allocation63_spill] sm:$0xff] }
 0x2b9   :  { %1530 = vmatmul.mubr.f32.vlgmr.msra.gmra.mrb[18].mxu0 %v1322_v16  ;;  %1601 = vmatmul.mubr.f32.vlgmr.msra.gmra.mrb[18].mxu1 %v1322_v16 }
 0x2ba   :  { %5188 = vmatpush1.bf16.msra.mxu0 %v7051_v22  ;;  %5220 = vmatpush1.bf16.msra.mxu1 %v7054_v25 }
 0x2bb   :  { %5190 = vmatprep.subr.bf16.mxu0 %v7058_v29  ;;  %5222 = vmatprep.subr.bf16.mxu1 %v7062_v34 }
 0x2bc   :  { %1704 = vmatprep.mubr.f32.mxu0 %v8540_v51  ;;  %1775 = vmatprep.mubr.f32.mxu1 %v8540_v51 }
 0x2be   :  { %5192 = vmatpush1.bf16.msra.mxu0 %v7064_v35  ;;  %5224 = vmatpush1.bf16.msra.mxu1 %v7068_v38 }
 0x2bf   :  { %5194 = vmatprep.subr.bf16.mxu0 %v7072_v42  ;;  %5226 = vmatprep.subr.bf16.mxu1 %v7076_v47 }
 0x2c2   :  { %5196 = vmatpush1.bf16.msra.mxu0 %v7080_v50  ;;  %5228 = vmatpush1.bf16.msra.mxu1 %v7084_v54 }
 0x2c3   :  { %5198 = vmatprep.subr.bf16.mxu0 %v7088_v58  ;;  %5230 = vmatprep.subr.bf16.mxu1 %v7092_v61 }
 0x2c6   :  { %5200 = vmatpush1.bf16.msra.mxu0 %v7096_v2  ;;  %5232 = vmatpush1.bf16.msra.mxu1 %v7100_v5 }
 0x2c7   :  { %5202 = vmatprep.subr.bf16.mxu0 %v7104_v8  ;;  %5234 = vmatprep.subr.bf16.mxu1 %v7108_v11 }
 0x2ca   :  { %5204 = vmatpush1.bf16.msra.mxu0 %v7112_v15  ;;  %5236 = vmatpush1.bf16.msra.mxu1 %v7116_v19 }
 0x2cb   :  { %5206 = vmatprep.subr.bf16.mxu0 %v7120_v24  ;;  %5238 = vmatprep.subr.bf16.mxu1 %v7124_v28 }
 0x2ce   :  { %5208 = vmatpush1.bf16.msra.mxu0 %v7128_v33  ;;  %5240 = vmatpush1.bf16.msra.mxu1 %v7132_v39 }
 0x2cf   :  { %5210 = vmatprep.subr.bf16.mxu0 %v7136_v43  ;;  %5242 = vmatprep.subr.bf16.mxu1 %v7140_v46 }
 0x2d2   :  { %5212 = vmatpush1.bf16.msra.mxu0 %v7144_v52  ;;  %5244 = vmatpush1.bf16.msra.mxu1 %v7148_v56 }
 0x2d3   :  { %5214 = vmatprep.subr.bf16.mxu0 %v7152_v60  ;;  %5246 = vmatprep.subr.bf16.mxu1 %v7156_v1 }
 0x2d6   :  { %5216 = vmatpush1.bf16.msra.mxu0 %v7160_v7  ;;  %5248 = vmatpush1.bf16.msra.mxu1 %v7164_v12  ;;  %v8661_v12 = vld [vmem:[#allocation120_spill] sm:$0xff] }
 0x2d7   :  { %5250 = vmatprep.subr.bf16.mxu0 %v7168_v18  ;;  %5282 = vmatprep.subr.bf16.mxu1 %v7172_v27  ;;  %v8659_v27 = vld [vmem:[#allocation118_spill] sm:$0xff] }
 0x2d9   :  { %1705 = vmatmul.mubr.f32.vlgmr.msra.gmra.mrb[4].mxu0 %v1322_v16  ;;  %1776 = vmatmul.mubr.f32.vlgmr.msra.gmra.mrb[4].mxu1 %v1322_v16  ;;  %v8638_v16 = vld [vmem:[#allocation64_spill] sm:$0xff] }
 0x2da   :  { %5252 = vmatpush1.bf16.msra.mxu0 %v7176_v32  ;;  %5284 = vmatpush1.bf16.msra.mxu1 %v7180_v36  ;;  %v8658_v36 = vld [vmem:[#allocation117_spill] sm:$0xff] }
 0x2db   :  { %5254 = vmatprep.subr.bf16.mxu0 %v7182_v37  ;;  %5286 = vmatprep.subr.bf16.mxu1 %v7186_v45  ;;  %v8639_v45 = vld [vmem:[#allocation65_spill] sm:$0xff]  ;;  %v8640_v37 = vld [vmem:[#allocation66_spill] sm:$0xff] }
 0x2dc   :  { %1874 = vmatprep.mubr.f32.mxu0 %v8540_v51  ;;  %1945 = vmatprep.mubr.f32.mxu1 %v8540_v51 }
 0x2de   :  { %5256 = vmatpush1.bf16.msra.mxu0 %v7192_v57  ;;  %5288 = vmatpush1.bf16.msra.mxu1 %v7196_v59  ;;  %v8641_v57 = vld [vmem:[#allocation67_spill] sm:$0xff]  ;;  %v8642_v59 = vld [vmem:[#allocation68_spill] sm:$0xff] }
 0x2df   :  { %5258 = vmatprep.subr.bf16.mxu0 %v7198_v62  ;;  %5290 = vmatprep.subr.bf16.mxu1 %v7201_v6  ;;  %v8643_v62 = vld [vmem:[#allocation69_spill] sm:$0xff]  ;;  %v8644_v6 = vld [vmem:[#allocation70_spill] sm:$0xff] }
 0x2e2   :  { %5260 = vmatpush1.bf16.msra.mxu0 %v7206_v20  ;;  %5292 = vmatpush1.bf16.msra.mxu1 %v7210_v23  ;;  %v8645_v20 = vld [vmem:[#allocation71_spill] sm:$0xff]  ;;  %v8646_v23 = vld [vmem:[#allocation72_spill] sm:$0xff] }
 0x2e3   :  { %5262 = vmatprep.subr.bf16.mxu0 %v8636_v53  ;;  %5294 = vmatprep.subr.bf16.mxu1 %v8637_v3  ;;  %v8647_v53 = vld [vmem:[#allocation73_spill] sm:$0xff]  ;;  %v8648_v3 = vld [vmem:[#allocation74_spill] sm:$0xff] }
 0x2e6   :  { %5264 = vmatpush1.bf16.msra.mxu0 %v8638_v16  ;;  %5296 = vmatpush1.bf16.msra.mxu1 %v8639_v45  ;;  %v8649_v16 = vld [vmem:[#allocation75_spill] sm:$0xff]  ;;  %v8650_v45 = vld [vmem:[#allocation76_spill] sm:$0xff] }
 0x2e7   :  { %5266 = vmatprep.subr.bf16.mxu0 %v8640_v37  ;;  %5298 = vmatprep.subr.bf16.mxu1 %v8641_v57  ;;  %v8651_v37 = vld [vmem:[#allocation77_spill] sm:$0xff]  ;;  %v8652_v57 = vld [vmem:[#allocation78_spill] sm:$0xff] }
 0x2ea   :  { %5268 = vmatpush1.bf16.msra.mxu0 %v8642_v59  ;;  %5300 = vmatpush1.bf16.msra.mxu1 %v8643_v62  ;;  %v8653_v59 = vld [vmem:[#allocation79_spill] sm:$0xff]  ;;  %v8654_v62 = vld [vmem:[#allocation80_spill] sm:$0xff] }
 0x2eb   :  { %5270 = vmatprep.subr.bf16.mxu0 %v8644_v6  ;;  %5302 = vmatprep.subr.bf16.mxu1 %v8645_v20  ;;  %v8655_v6 = vld [vmem:[#allocation81_spill] sm:$0xff]  ;;  %v8656_v20 = vld [vmem:[#allocation82_spill] sm:$0xff] }
 0x2ee   :  { %5272 = vmatpush1.bf16.msra.mxu0 %v8646_v23  ;;  %5304 = vmatpush1.bf16.msra.mxu1 %v8647_v53  ;;  %v8657_v23 = vld [vmem:[#allocation83_spill] sm:$0xff] }
 0x2ef   :  { %5274 = vmatprep.subr.bf16.mxu0 %v8648_v3  ;;  %5306 = vmatprep.subr.bf16.mxu1 %v8649_v16 }
 0x2f2   :  { %5276 = vmatpush1.bf16.msra.mxu0 %v8650_v45  ;;  %5308 = vmatpush1.bf16.msra.mxu1 %v8651_v37 }
 0x2f3   :  { %5278 = vmatprep.subr.bf16.mxu0 %v8652_v57  ;;  %5310 = vmatprep.subr.bf16.mxu1 %v8653_v59  ;;  %v8660_v59 = vld [vmem:[#allocation119_spill] sm:$0xff] }
 0x2f6   :  { %5280 = vmatpush1.bf16.msra.mxu0 %v8654_v62  ;;  %5312 = vmatpush1.bf16.msra.mxu1 %v8655_v6 }
 0x2f7   :  { %5314 = vmatprep.subr.bf16.mxu0 %v8656_v20  ;;  %5346 = vmatprep.subr.bf16.mxu1 %v8657_v23 }
 0x38c   :  { %v1531_v53 = vpop.f32.mrb[18].mxu0  ;;  %v1602_v3 = vpop.f32.mrb[18].mxu1 }
 0x38d   :  { %v1607_v16 = vadd.f32 %v1531_v53, %v8658_v36  ;;  %v1533_v32 = vpop.f32.mrb[19].mxu0  ;;  %v1604_v45 = vpop.f32.mrb[19].mxu1  ;;  %v1609_v62 = vadd.f32 %v1602_v3, %v8660_v59 }
 0x38e   :  { %v1608_v37 = vadd.f32 %v1533_v32, %v8659_v27  ;;  %v1610_v6 = vadd.f32 %v1604_v45, %v8661_v12 }
 0x38f   :  { %v4701_v18 = vmul.f32 -1.442695, %v1607_v16  ;;  %v4703_v7 = vmul.f32 -1.442695, %v1609_v62  ;;  %v8662_v62 = vld [vmem:[#allocation114_spill] sm:$0xff] }
 0x390   :  { %v4702_v57 = vmul.f32 -1.442695, %v1608_v37 }
 0x391   :  { %6519 = vpow2.f32 %v4701_v18 }
 0x392   :  { %6521 = vpow2.f32 %v4702_v57 }
 0x393   :  { %6523 = vtanh.f32 %v1610_v6 }
 0x394   :  { %6525 = vpow2.f32 %v4703_v7 }
 0x39b   :  { %v6520_v20 = vpop.eup %6519 }
 0x39c   :  { %v1620_v1 = vadd.f32 1.0, %v6520_v20  ;;  %v6522_v23 = vpop.eup %6521 }
 0x39d   :  { %v1621_v53 = vadd.f32 1.0, %v6522_v23  ;;  %v6524_v36 = vpop.eup %6523 }
 0x39e   :  { %6527 = vrcp.f32 %v1620_v1  ;;  %v6526_v60 = vpop.eup %6525 }
 0x39f   :  { %6529 = vrcp.f32 %v1621_v53  ;;  %v1622_v18 = vadd.f32 1.0, %v6526_v60 }
 0x3a1   :  { %6531 = vrcp.f32 %v1622_v18 }
 0x3a8   :  { %v6528_v32 = vpop.eup %6527 }
 0x3a9   :  { %v1631_v16 = vmul.f32 %v6528_v32, %v6524_v36  ;;  %v6530_v37 = vpop.eup %6529 }
 0x3aa   :  { %v1630_v57 = vmul.f32 %v6530_v37, %v7500_v44 }
 0x3ab   :  { %v6532_v36 = vpop.eup %6531 }
 0x3ac   :  { %v1706_v3 = vpop.f32.mrb[4].mxu0  ;;  %v1777_v59 = vpop.f32.mrb[4].mxu1  ;;  %v7618_v45 = vadd.f32 %v1631_v16, %v1630_v57 }
 0x3ad   :  { %v6365_v20 = vadd.f32 %v1706_v3, %v8662_v62  ;;  %v1708_v6 = vpop.f32.mrb[5].mxu0  ;;  %v1779_v12 = vpop.f32.mrb[5].mxu1  ;;  %v6381_v60 = vadd.f32 %v1777_v59, %v8603_v55  ;;  %v8663_v59 = vld [vmem:[#allocation86_spill] sm:$0xff] }
 0x3ae   :  { %v6366_v1 = vadd.f32 %v1708_v6, %v8602_v13  ;;  %6533 = vtanh.f32 %v7618_v45  ;;  %v6382_v44 = vadd.f32 %v1779_v12, %v7403_v30  ;;  %v8665_v12 = vld [vmem:[#allocation88_spill] sm:$0xff]  ;;  %v8666_v6 = vld [vmem:[#allocation89_spill] sm:$0xff] }
 0x3af   :  { %v4704_v7 = vmul.f32 -1.442695, %v6365_v20  ;;  %v4706_v32 = vmul.f32 -1.442695, %v6381_v60  ;;  %v8664_v20 = vld [vmem:[#allocation87_spill] sm:$0xff]  ;;  %v8670_v60 = vld [vmem:[#allocation93_spill] sm:$0xff] }
 0x3b0   :  { %v4705_v23 = vmul.f32 -1.442695, %v6366_v1  ;;  %v8667_v1 = vld [vmem:[#allocation90_spill] sm:$0xff] }
 0x3b1   :  { %6535 = vpow2.f32 %v4704_v7  ;;  %v8668_v7 = vld [vmem:[#allocation91_spill] sm:$0xff] }
 0x3b2   :  { %6537 = vpow2.f32 %v4705_v23  ;;  %v8669_v23 = vld [vmem:[#allocation92_spill] sm:$0xff] }
 0x3b3   :  { %6539 = vtanh.f32 %v6382_v44  ;;  %v8671_v44 = vld [vmem:[#allocation94_spill] sm:$0xff] }
 0x3b4   :  { %6541 = vpow2.f32 %v4706_v32 }
 0x3b8   :  { %v6534_v53 = vpop.eup %6533 }
 0x3b9   :  { %v1634_v16 = vmul.f32 %v6534_v53, %v6532_v36  ;;  %v8672_v53 = vld [vmem:[#allocation95_spill] sm:$0xff] }
 0x3bb   :  { %v6536_v37 = vpop.eup %6535  ;;  %1875 = vmatmul.mubr.f32.vlgmr.msra.gmra.mrb[20].mxu0 %v1634_v16  ;;  %1946 = vmatmul.mubr.f32.vlgmr.msra.gmra.mrb[20].mxu1 %v1634_v16 }
 0x3bc   :  { %v1795_v57 = vadd.f32 1.0, %v6536_v37  ;;  %v6538_v18 = vpop.eup %6537  ;;  %5316 = vmatpush1.bf16.msra.mxu0 %v8604_v41  ;;  %5348 = vmatpush1.bf16.msra.mxu1 %v8605_v9 }
 0x3bd   :  { %v1796_v3 = vadd.f32 1.0, %v6538_v18  ;;  %5318 = vmatprep.subr.bf16.mxu0 %v8663_v59  ;;  %5350 = vmatprep.subr.bf16.mxu1 %v8664_v20  ;;  %v6540_v36 = vpop.eup %6539 }
 0x3be   :  { %6543 = vrcp.f32 %v1795_v57  ;;  %2016 = vmatprep.mubr.f32.mxu0 %v8540_v51  ;;  %2087 = vmatprep.mubr.f32.mxu1 %v8540_v51  ;;  %v6542_v32 = vpop.eup %6541 }
 0x3bf   :  { %6545 = vrcp.f32 %v1796_v3  ;;  %v1797_v18 = vadd.f32 1.0, %v6542_v32  ;;  %v8673_v3 = vld [vmem:[#allocation98_spill] sm:$0xff]  ;;  %v8679_v32 = vld [vmem:[#allocation104_spill] sm:$0xff] }
 0x3c0   :  { %5320 = vmatpush1.bf16.msra.mxu0 %v8665_v12  ;;  %5352 = vmatpush1.bf16.msra.mxu1 %v8666_v6 }
 0x3c1   :  { %5322 = vmatprep.subr.bf16.mxu0 %v8667_v1  ;;  %5354 = vmatprep.subr.bf16.mxu1 %v8668_v7  ;;  %v8674_v7 = vld [vmem:[#allocation99_spill] sm:$0xff]  ;;  %6547 = vrcp.f32 %v1797_v18 }
 0x3c2   :  { %v8683_v18 = vld [vmem:[#allocation47_spill] sm:$0xff] }
 0x3c4   :  { %5324 = vmatpush1.bf16.msra.mxu0 %v8669_v23  ;;  %5356 = vmatpush1.bf16.msra.mxu1 %v8670_v60 }
 0x3c5   :  { %5326 = vmatprep.subr.bf16.mxu0 %v8671_v44  ;;  %5358 = vmatprep.subr.bf16.mxu1 %v8672_v53  ;;  %v8675_v44 = vld [vmem:[#allocation100_spill] sm:$0xff]  ;;  %v8676_v53 = vld [vmem:[#allocation101_spill] sm:$0xff] }
 0x3c8   :  { %v6544_v16 = vpop.eup %6543  ;;  %5328 = vmatpush1.bf16.msra.mxu0 %v8616_v21  ;;  %5360 = vmatpush1.bf16.msra.mxu1 %v8617_v48 }
 0x3c9   :  { %v1806_v37 = vmul.f32 %v6544_v16, %v6540_v36  ;;  %v6546_v57 = vpop.eup %6545  ;;  %5330 = vmatprep.subr.bf16.mxu0 %v8673_v3  ;;  %5362 = vmatprep.subr.bf16.mxu1 %v8674_v7  ;;  %v8677_v36 = vld [vmem:[#allocation102_spill] sm:$0xff]  ;;  %v8678_v16 = vld [vmem:[#allocation103_spill] sm:$0xff]  ;;  %v8680_v3 = vld [vmem:[#allocation105_spill] sm:$0xff] }
 0x3ca   :  { %v1805_v60 = vmul.f32 %v6546_v57, %v7526_v49  ;;  %v8681_v7 = vld [vmem:[#allocation106_spill] sm:$0xff] }
 0x3cb   :  { %v6548_v49 = vpop.eup %6547  ;;  %v8682_v57 = vld [vmem:[#allocation46_spill] sm:$0xff] }
 0x3cc   :  { %v7644_v23 = vadd.f32 %v1806_v37, %v1805_v60  ;;  %5332 = vmatpush1.bf16.msra.mxu0 %v8675_v44  ;;  %5364 = vmatpush1.bf16.msra.mxu1 %v8676_v53 }
 0x3cd   :  { %5334 = vmatprep.subr.bf16.mxu0 %v8677_v36  ;;  %5366 = vmatprep.subr.bf16.mxu1 %v8678_v16 }
 0x3ce   :  { %6549 = vtanh.f32 %v7644_v23 }
 0x3d0   :  { %5336 = vmatpush1.bf16.msra.mxu0 %v8679_v32  ;;  %5368 = vmatpush1.bf16.msra.mxu1 %v8680_v3 }
 0x3d1   :  { %5338 = vmatprep.subr.bf16.mxu0 %v8681_v7  ;;  %5370 = vmatprep.subr.bf16.mxu1 %v8627_v0 }
 0x3d4   :  { %5340 = vmatpush1.bf16.msra.mxu0 %v8628_v63  ;;  %5372 = vmatpush1.bf16.msra.mxu1 %v8629_v40 }
 0x3d5   :  { %5342 = vmatprep.subr.bf16.mxu0 %v8630_v26  ;;  %5374 = vmatprep.subr.bf16.mxu1 %v8631_v14 }
 0x3d8   :  { %v6550_v60 = vpop.eup %6549  ;;  %5344 = vmatpush1.bf16.msra.mxu0 %v8632_v4  ;;  %5376 = vmatpush1.bf16.msra.mxu1 %v8633_v10 }
 0x3d9   :  { %5378 = vmatprep.subr.bf16.mxu0 %v8634_v31  ;;  %5410 = vmatprep.subr.bf16.mxu1 %v8635_v17  ;;  %v1809_v37 = vmul.f32 %v6550_v60, %v6548_v49  ;;  %v8684_v49 = vld [vmem:[#allocation48_spill] sm:$0xff]  ;;  %v8685_v60 = vld [vmem:[#allocation49_spill] sm:$0xff] }
 0x3db   :  { %2017 = vmatmul.mubr.f32.vlgmr.msra.gmra.mrb[20].mxu0 %v1809_v37  ;;  %2088 = vmatmul.mubr.f32.vlgmr.msra.gmra.mrb[20].mxu1 %v1809_v37 }
 0x3dc   :  { %5380 = vmatpush1.bf16.msra.mxu0 %v7051_v22  ;;  %5412 = vmatpush1.bf16.msra.mxu1 %v7054_v25 }
 0x3dd   :  { %5382 = vmatprep.subr.bf16.mxu0 %v7058_v29  ;;  %5414 = vmatprep.subr.bf16.mxu1 %v7062_v34 }
 0x3de   :  { %2191 = vmatprep.mubr.f32.mxu0 %v8540_v51  ;;  %2262 = vmatprep.mubr.f32.mxu1 %v8540_v51 }
 0x3e0   :  { %5384 = vmatpush1.bf16.msra.mxu0 %v7064_v35  ;;  %5416 = vmatpush1.bf16.msra.mxu1 %v7068_v38 }
 0x3e1   :  { %5386 = vmatprep.subr.bf16.mxu0 %v7072_v42  ;;  %5418 = vmatprep.subr.bf16.mxu1 %v7076_v47 }
 0x3e4   :  { %5388 = vmatpush1.bf16.msra.mxu0 %v7080_v50  ;;  %5420 = vmatpush1.bf16.msra.mxu1 %v7084_v54 }
 0x3e5   :  { %5390 = vmatprep.subr.bf16.mxu0 %v7088_v58  ;;  %5422 = vmatprep.subr.bf16.mxu1 %v7092_v61 }
 0x3e8   :  { %5392 = vmatpush1.bf16.msra.mxu0 %v7096_v2  ;;  %5424 = vmatpush1.bf16.msra.mxu1 %v7100_v5 }
 0x3e9   :  { %5394 = vmatprep.subr.bf16.mxu0 %v7104_v8  ;;  %5426 = vmatprep.subr.bf16.mxu1 %v7108_v11 }
 0x3ec   :  { %5396 = vmatpush1.bf16.msra.mxu0 %v7112_v15  ;;  %5428 = vmatpush1.bf16.msra.mxu1 %v7116_v19  ;;  %v8722_v15 = vld [vmem:[#allocation120_spill] sm:$0xff] }
 0x3ed   :  { %5398 = vmatprep.subr.bf16.mxu0 %v7120_v24  ;;  %5430 = vmatprep.subr.bf16.mxu1 %v7124_v28  ;;  %v8686_v28 = vld [vmem:[#allocation50_spill] sm:$0xff] }
 0x3f0   :  { %5400 = vmatpush1.bf16.msra.mxu0 %v7128_v33  ;;  %5432 = vmatpush1.bf16.msra.mxu1 %v7132_v39  ;;  %v8687_v33 = vld [vmem:[#allocation51_spill] sm:$0xff]  ;;  %v8720_v39 = vld [vmem:[#allocation117_spill] sm:$0xff] }
 0x3f1   :  { %5402 = vmatprep.subr.bf16.mxu0 %v7136_v43  ;;  %5434 = vmatprep.subr.bf16.mxu1 %v7140_v46  ;;  %v8688_v43 = vld [vmem:[#allocation52_spill] sm:$0xff]  ;;  %v8689_v46 = vld [vmem:[#allocation53_spill] sm:$0xff] }
 0x3f4   :  { %5404 = vmatpush1.bf16.msra.mxu0 %v7144_v52  ;;  %5436 = vmatpush1.bf16.msra.mxu1 %v7148_v56  ;;  %v8690_v52 = vld [vmem:[#allocation54_spill] sm:$0xff]  ;;  %v8691_v56 = vld [vmem:[#allocation55_spill] sm:$0xff] }
 0x3f5   :  { %5406 = vmatprep.subr.bf16.mxu0 %v8682_v57  ;;  %5438 = vmatprep.subr.bf16.mxu1 %v8683_v18  ;;  %v8701_v18 = vld [vmem:[#allocation65_spill] sm:$0xff]  ;;  %v8702_v57 = vld [vmem:[#allocation66_spill] sm:$0xff] }
 0x3f8   :  { %5408 = vmatpush1.bf16.msra.mxu0 %v8684_v49  ;;  %5440 = vmatpush1.bf16.msra.mxu1 %v8685_v60  ;;  %v8692_v49 = vld [vmem:[#allocation56_spill] sm:$0xff]  ;;  %v8693_v60 = vld [vmem:[#allocation57_spill] sm:$0xff] }
 0x3f9   :  { %5442 = vmatprep.subr.bf16.mxu0 %v8686_v28  ;;  %5474 = vmatprep.subr.bf16.mxu1 %v8687_v33  ;;  %v8694_v28 = vld [vmem:[#allocation58_spill] sm:$0xff]  ;;  %v8695_v33 = vld [vmem:[#allocation59_spill] sm:$0xff] }
 0x3fb   :  { %2192 = vmatmul.mubr.f32.vlgmr.msra.gmra.mrb[6].mxu0 %v1809_v37  ;;  %2263 = vmatmul.mubr.f32.vlgmr.msra.gmra.mrb[6].mxu1 %v1809_v37  ;;  %v8696_v37 = vld [vmem:[#allocation60_spill] sm:$0xff] }
 0x3fc   :  { %5444 = vmatpush1.bf16.msra.mxu0 %v8688_v43  ;;  %5476 = vmatpush1.bf16.msra.mxu1 %v8689_v46  ;;  %v8697_v43 = vld [vmem:[#allocation61_spill] sm:$0xff]  ;;  %v8698_v46 = vld [vmem:[#allocation62_spill] sm:$0xff] }
 0x3fd   :  { %5446 = vmatprep.subr.bf16.mxu0 %v8690_v52  ;;  %5478 = vmatprep.subr.bf16.mxu1 %v8691_v56  ;;  %v8699_v52 = vld [vmem:[#allocation63_spill] sm:$0xff]  ;;  %v8700_v56 = vld [vmem:[#allocation64_spill] sm:$0xff] }
 0x3fe   :  { %2361 = vmatprep.mubr.f32.mxu0 %v8540_v51  ;;  %2432 = vmatprep.mubr.f32.mxu1 %v8540_v51 }
 0x400   :  { %5448 = vmatpush1.bf16.msra.mxu0 %v8692_v49  ;;  %5480 = vmatpush1.bf16.msra.mxu1 %v8693_v60  ;;  %v8703_v49 = vld [vmem:[#allocation67_spill] sm:$0xff]  ;;  %v8704_v60 = vld [vmem:[#allocation68_spill] sm:$0xff] }
 0x401   :  { %5450 = vmatprep.subr.bf16.mxu0 %v8694_v28  ;;  %5482 = vmatprep.subr.bf16.mxu1 %v8695_v33  ;;  %v8705_v28 = vld [vmem:[#allocation69_spill] sm:$0xff]  ;;  %v8706_v33 = vld [vmem:[#allocation70_spill] sm:$0xff] }
 0x404   :  { %5452 = vmatpush1.bf16.msra.mxu0 %v8696_v37  ;;  %5484 = vmatpush1.bf16.msra.mxu1 %v8697_v43  ;;  %v8707_v37 = vld [vmem:[#allocation71_spill] sm:$0xff]  ;;  %v8708_v43 = vld [vmem:[#allocation72_spill] sm:$0xff] }
 0x405   :  { %5454 = vmatprep.subr.bf16.mxu0 %v8698_v46  ;;  %5486 = vmatprep.subr.bf16.mxu1 %v8699_v52  ;;  %v8709_v46 = vld [vmem:[#allocation73_spill] sm:$0xff]  ;;  %v8710_v52 = vld [vmem:[#allocation74_spill] sm:$0xff] }
 0x408   :  { %5456 = vmatpush1.bf16.msra.mxu0 %v8700_v56  ;;  %5488 = vmatpush1.bf16.msra.mxu1 %v8701_v18  ;;  %v8711_v56 = vld [vmem:[#allocation75_spill] sm:$0xff]  ;;  %v8712_v18 = vld [vmem:[#allocation76_spill] sm:$0xff] }
 0x409   :  { %5458 = vmatprep.subr.bf16.mxu0 %v8702_v57  ;;  %5490 = vmatprep.subr.bf16.mxu1 %v8703_v49  ;;  %v8713_v57 = vld [vmem:[#allocation77_spill] sm:$0xff]  ;;  %v8714_v49 = vld [vmem:[#allocation78_spill] sm:$0xff] }
 0x40c   :  { %5460 = vmatpush1.bf16.msra.mxu0 %v8704_v60  ;;  %5492 = vmatpush1.bf16.msra.mxu1 %v8705_v28  ;;  %v8715_v60 = vld [vmem:[#allocation79_spill] sm:$0xff]  ;;  %v8716_v28 = vld [vmem:[#allocation80_spill] sm:$0xff] }
 0x40d   :  { %5462 = vmatprep.subr.bf16.mxu0 %v8706_v33  ;;  %5494 = vmatprep.subr.bf16.mxu1 %v8707_v37  ;;  %v8717_v33 = vld [vmem:[#allocation81_spill] sm:$0xff]  ;;  %v8718_v37 = vld [vmem:[#allocation82_spill] sm:$0xff] }
 0x410   :  { %5464 = vmatpush1.bf16.msra.mxu0 %v8708_v43  ;;  %5496 = vmatpush1.bf16.msra.mxu1 %v8709_v46  ;;  %v8719_v43 = vld [vmem:[#allocation83_spill] sm:$0xff] }
 0x411   :  { %5466 = vmatprep.subr.bf16.mxu0 %v8710_v52  ;;  %5498 = vmatprep.subr.bf16.mxu1 %v8711_v56 }
 0x414   :  { %5468 = vmatpush1.bf16.msra.mxu0 %v8712_v18  ;;  %5500 = vmatpush1.bf16.msra.mxu1 %v8713_v57 }
 0x415   :  { %5470 = vmatprep.subr.bf16.mxu0 %v8714_v49  ;;  %5502 = vmatprep.subr.bf16.mxu1 %v8715_v60  ;;  %v8721_v60 = vld [vmem:[#allocation119_spill] sm:$0xff] }
 0x418   :  { %5472 = vmatpush1.bf16.msra.mxu0 %v8716_v28  ;;  %5504 = vmatpush1.bf16.msra.mxu1 %v8717_v33 }
 0x419   :  { %5506 = vmatprep.subr.bf16.mxu0 %v8718_v37  ;;  %5538 = vmatprep.subr.bf16.mxu1 %v8719_v43 }
 0x4ae   :  { %v2018_v46 = vpop.f32.mrb[20].mxu0  ;;  %v2089_v52 = vpop.f32.mrb[20].mxu1 }
 0x4af   :  { %v2094_v56 = vadd.f32 %v2018_v46, %v8720_v39  ;;  %v2020_v24 = vpop.f32.mrb[21].mxu0  ;;  %v2091_v18 = vpop.f32.mrb[21].mxu1  ;;  %v2096_v28 = vadd.f32 %v2089_v52, %v8721_v60 }
 0x4b0   :  { %v2095_v57 = vadd.f32 %v2020_v24, %v8659_v27  ;;  %v2097_v33 = vadd.f32 %v2091_v18, %v8722_v15 }
 0x4b1   :  { %v4707_v19 = vmul.f32 -1.442695, %v2094_v56  ;;  %v4709_v11 = vmul.f32 -1.442695, %v2096_v28 }
 0x4b2   :  { %v4708_v49 = vmul.f32 -1.442695, %v2095_v57 }
 0x4b3   :  { %6551 = vpow2.f32 %v4707_v19 }
 0x4b4   :  { %6553 = vpow2.f32 %v4708_v49 }
 0x4b5   :  { %6555 = vtanh.f32 %v2097_v33 }
 0x4b6   :  { %6557 = vpow2.f32 %v4709_v11 }
 0x4bd   :  { %v6552_v37 = vpop.eup %6551 }
 0x4be   :  { %v2107_v8 = vadd.f32 1.0, %v6552_v37  ;;  %v6554_v43 = vpop.eup %6553 }
 0x4bf   :  { %v2108_v46 = vadd.f32 1.0, %v6554_v43  ;;  %v6556_v39 = vpop.eup %6555 }
 0x4c0   :  { %6559 = vrcp.f32 %v2107_v8  ;;  %v6558_v5 = vpop.eup %6557 }
 0x4c1   :  { %6561 = vrcp.f32 %v2108_v46  ;;  %v2109_v19 = vadd.f32 1.0, %v6558_v5 }
 0x4c3   :  { %6563 = vrcp.f32 %v2109_v19 }
 0x4ca   :  { %v6560_v24 = vpop.eup %6559 }
 0x4cb   :  { %v2118_v56 = vmul.f32 %v6560_v24, %v6556_v39  ;;  %v6562_v57 = vpop.eup %6561 }
 0x4cc   :  { %v2117_v49 = vmul.f32 %v6562_v57, %v7618_v45 }
 0x4cd   :  { %v6564_v39 = vpop.eup %6563 }
 0x4ce   :  { %v2193_v52 = vpop.f32.mrb[6].mxu0  ;;  %v2264_v60 = vpop.f32.mrb[6].mxu1  ;;  %v7736_v18 = vadd.f32 %v2118_v56, %v2117_v49 }
 0x4cf   :  { %v6367_v28 = vadd.f32 %v2193_v52, %v8662_v62  ;;  %v2195_v33 = vpop.f32.mrb[7].mxu0  ;;  %v2266_v37 = vpop.f32.mrb[7].mxu1  ;;  %v6383_v5 = vadd.f32 %v2264_v60, %v8603_v55  ;;  %v8723_v60 = vld [vmem:[#allocation91_spill] sm:$0xff] }
 0x4d0   :  { %v6368_v8 = vadd.f32 %v2195_v33, %v8602_v13  ;;  %6565 = vtanh.f32 %v7736_v18  ;;  %v6384_v45 = vadd.f32 %v2266_v37, %v7403_v30  ;;  %v8725_v33 = vld [vmem:[#allocation93_spill] sm:$0xff] }
 0x4d1   :  { %v4710_v11 = vmul.f32 -1.442695, %v6367_v28  ;;  %v4712_v24 = vmul.f32 -1.442695, %v6383_v5  ;;  %v8724_v28 = vld [vmem:[#allocation92_spill] sm:$0xff] }
 0x4d2   :  { %v4711_v43 = vmul.f32 -1.442695, %v6368_v8  ;;  %v8726_v8 = vld [vmem:[#allocation94_spill] sm:$0xff] }
 0x4d3   :  { %6567 = vpow2.f32 %v4710_v11  ;;  %v8727_v11 = vld [vmem:[#allocation95_spill] sm:$0xff] }
 0x4d4   :  { %6569 = vpow2.f32 %v4711_v43 }
 0x4d5   :  { %6571 = vtanh.f32 %v6384_v45 }
 0x4d6   :  { %6573 = vpow2.f32 %v4712_v24  ;;  %v8728_v24 = vld [vmem:[#allocation98_spill] sm:$0xff] }
 0x4da   :  { %v6566_v46 = vpop.eup %6565 }
 0x4db   :  { %v2121_v56 = vmul.f32 %v6566_v46, %v6564_v39 }
 0x4dd   :  { %v6568_v57 = vpop.eup %6567  ;;  %2362 = vmatmul.mubr.f32.vlgmr.msra.gmra.mrb[22].mxu0 %v2121_v56  ;;  %2433 = vmatmul.mubr.f32.vlgmr.msra.gmra.mrb[22].mxu1 %v2121_v56  ;;  %v8729_v56 = vld [vmem:[#allocation99_spill] sm:$0xff] }
 0x4de   :  { %v2282_v49 = vadd.f32 1.0, %v6568_v57  ;;  %v6570_v19 = vpop.eup %6569  ;;  %5508 = vmatpush1.bf16.msra.mxu0 %v8604_v41  ;;  %5540 = vmatpush1.bf16.msra.mxu1 %v8605_v9 }
 0x4df   :  { %v2283_v52 = vadd.f32 1.0, %v6570_v19  ;;  %5510 = vmatprep.subr.bf16.mxu0 %v8663_v59  ;;  %5542 = vmatprep.subr.bf16.mxu1 %v8664_v20  ;;  %v6572_v37 = vpop.eup %6571 }
 0x4e0   :  { %6575 = vrcp.f32 %v2282_v49  ;;  %2503 = vmatprep.mubr.f32.mxu0 %v8540_v51  ;;  %2574 = vmatprep.mubr.f32.mxu1 %v8540_v51  ;;  %v6574_v43 = vpop.eup %6573 }
 0x4e1   :  { %6577 = vrcp.f32 %v2283_v52  ;;  %v2284_v46 = vadd.f32 1.0, %v6574_v43  ;;  %v8731_v43 = vld [vmem:[#allocation34_spill] sm:$0xff] }
 0x4e2   :  { %5512 = vmatpush1.bf16.msra.mxu0 %v8665_v12  ;;  %5544 = vmatpush1.bf16.msra.mxu1 %v8666_v6 }
 0x4e3   :  { %5514 = vmatprep.subr.bf16.mxu0 %v8667_v1  ;;  %5546 = vmatprep.subr.bf16.mxu1 %v8723_v60  ;;  %6579 = vrcp.f32 %v2284_v46  ;;  %v8735_v46 = vld [vmem:[#allocation38_spill] sm:$0xff] }
 0x4e6   :  { %5516 = vmatpush1.bf16.msra.mxu0 %v8724_v28  ;;  %5548 = vmatpush1.bf16.msra.mxu1 %v8725_v33 }
 0x4e7   :  { %5518 = vmatprep.subr.bf16.mxu0 %v8726_v8  ;;  %5550 = vmatprep.subr.bf16.mxu1 %v8727_v11 }
 0x4ea   :  { %v6576_v5 = vpop.eup %6575  ;;  %5520 = vmatpush1.bf16.msra.mxu0 %v8616_v21  ;;  %5552 = vmatpush1.bf16.msra.mxu1 %v8617_v48 }
 0x4eb   :  { %v2293_v39 = vmul.f32 %v6576_v5, %v6572_v37  ;;  %v6578_v45 = vpop.eup %6577  ;;  %5522 = vmatprep.subr.bf16.mxu0 %v8728_v24  ;;  %5554 = vmatprep.subr.bf16.mxu1 %v8729_v56  ;;  %v8730_v37 = vld [vmem:[#allocation33_spill] sm:$0xff]  ;;  %v8732_v5 = vld [vmem:[#allocation35_spill] sm:$0xff] }
 0x4ec   :  { %v2292_v57 = vmul.f32 %v6578_v45, %v7644_v23  ;;  %v8734_v45 = vld [vmem:[#allocation37_spill] sm:$0xff] }
 0x4ed   :  { %v6580_v23 = vpop.eup %6579 }
 0x4ee   :  { %v7762_v49 = vadd.f32 %v2293_v39, %v2292_v57  ;;  %5524 = vmatpush1.bf16.msra.mxu0 %v8675_v44  ;;  %5556 = vmatpush1.bf16.msra.mxu1 %v8676_v53  ;;  %v8733_v39 = vld [vmem:[#allocation36_spill] sm:$0xff]  ;;  %v8736_v57 = vld [vmem:[#allocation39_spill] sm:$0xff] }
 0x4ef   :  { %5526 = vmatprep.subr.bf16.mxu0 %v8677_v36  ;;  %5558 = vmatprep.subr.bf16.mxu1 %v8678_v16 }
 0x4f0   :  { %6581 = vtanh.f32 %v7762_v49 }
 0x4f2   :  { %5528 = vmatpush1.bf16.msra.mxu0 %v8679_v32  ;;  %5560 = vmatpush1.bf16.msra.mxu1 %v8680_v3 }
 0x4f3   :  { %5530 = vmatprep.subr.bf16.mxu0 %v8681_v7  ;;  %5562 = vmatprep.subr.bf16.mxu1 %v8627_v0 }
 0x4f6   :  { %5532 = vmatpush1.bf16.msra.mxu0 %v8628_v63  ;;  %5564 = vmatpush1.bf16.msra.mxu1 %v8629_v40 }
 0x4f7   :  { %5534 = vmatprep.subr.bf16.mxu0 %v8630_v26  ;;  %5566 = vmatprep.subr.bf16.mxu1 %v8631_v14 }
 0x4fa   :  { %v6582_v19 = vpop.eup %6581  ;;  %5536 = vmatpush1.bf16.msra.mxu0 %v8632_v4  ;;  %5568 = vmatpush1.bf16.msra.mxu1 %v8633_v10 }
 0x4fb   :  { %v2296_v52 = vmul.f32 %v6582_v19, %v6580_v23  ;;  %5570 = vmatprep.subr.bf16.mxu0 %v8634_v31  ;;  %5602 = vmatprep.subr.bf16.mxu1 %v8635_v17  ;;  %v8737_v23 = vld [vmem:[#allocation40_spill] sm:$0xff]  ;;  %v8738_v19 = vld [vmem:[#allocation41_spill] sm:$0xff] }
 0x4fd   :  { %2504 = vmatmul.mubr.f32.vlgmr.msra.gmra.mrb[22].mxu0 %v2296_v52  ;;  %2575 = vmatmul.mubr.f32.vlgmr.msra.gmra.mrb[22].mxu1 %v2296_v52 }
 0x4fe   :  { %5572 = vmatpush1.bf16.msra.mxu0 %v7051_v22  ;;  %5604 = vmatpush1.bf16.msra.mxu1 %v7054_v25 }
 0x4ff   :  { %5574 = vmatprep.subr.bf16.mxu0 %v7058_v29  ;;  %5606 = vmatprep.subr.bf16.mxu1 %v7062_v34 }
 0x500   :  { %2678 = vmatprep.mubr.f32.mxu0 %v8540_v51  ;;  %2749 = vmatprep.mubr.f32.mxu1 %v8540_v51 }
 0x502   :  { %5576 = vmatpush1.bf16.msra.mxu0 %v7064_v35  ;;  %5608 = vmatpush1.bf16.msra.mxu1 %v7068_v38 }
 0x503   :  { %5578 = vmatprep.subr.bf16.mxu0 %v7072_v42  ;;  %5610 = vmatprep.subr.bf16.mxu1 %v7076_v47 }
 0x506   :  { %5580 = vmatpush1.bf16.msra.mxu0 %v7080_v50  ;;  %5612 = vmatpush1.bf16.msra.mxu1 %v7084_v54 }
 0x507   :  { %5582 = vmatprep.subr.bf16.mxu0 %v7088_v58  ;;  %5614 = vmatprep.subr.bf16.mxu1 %v7092_v61  ;;  %v8739_v61 = vld [vmem:[#allocation42_spill] sm:$0xff] }
 0x50a   :  { %5584 = vmatpush1.bf16.msra.mxu0 %v7096_v2  ;;  %5616 = vmatpush1.bf16.msra.mxu1 %v8730_v37  ;;  %v8740_v2 = vld [vmem:[#allocation43_spill] sm:$0xff]  ;;  %v8741_v37 = vld [vmem:[#allocation44_spill] sm:$0xff] }
 0x50b   :  { %5586 = vmatprep.subr.bf16.mxu0 %v8731_v43  ;;  %5618 = vmatprep.subr.bf16.mxu1 %v8732_v5  ;;  %v8742_v43 = vld [vmem:[#allocation45_spill] sm:$0xff]  ;;  %v8743_v5 = vld [vmem:[#allocation46_spill] sm:$0xff] }
 0x50e   :  { %5588 = vmatpush1.bf16.msra.mxu0 %v8733_v39  ;;  %5620 = vmatpush1.bf16.msra.mxu1 %v8734_v45  ;;  %v8744_v39 = vld [vmem:[#allocation47_spill] sm:$0xff]  ;;  %v8745_v45 = vld [vmem:[#allocation48_spill] sm:$0xff] }
 0x50f   :  { %5590 = vmatprep.subr.bf16.mxu0 %v8735_v46  ;;  %5622 = vmatprep.subr.bf16.mxu1 %v8736_v57  ;;  %v8746_v46 = vld [vmem:[#allocation49_spill] sm:$0xff]  ;;  %v8747_v57 = vld [vmem:[#allocation50_spill] sm:$0xff] }
 0x512   :  { %5592 = vmatpush1.bf16.msra.mxu0 %v8737_v23  ;;  %5624 = vmatpush1.bf16.msra.mxu1 %v8738_v19  ;;  %v8748_v23 = vld [vmem:[#allocation51_spill] sm:$0xff]  ;;  %v8781_v19 = vld [vmem:[#allocation117_spill] sm:$0xff] }
 0x513   :  { %5594 = vmatprep.subr.bf16.mxu0 %v8739_v61  ;;  %5626 = vmatprep.subr.bf16.mxu1 %v8740_v2  ;;  %v8749_v61 = vld [vmem:[#allocation52_spill] sm:$0xff]  ;;  %v8750_v2 = vld [vmem:[#allocation53_spill] sm:$0xff] }
 0x516   :  { %5596 = vmatpush1.bf16.msra.mxu0 %v8741_v37  ;;  %5628 = vmatpush1.bf16.msra.mxu1 %v8742_v43  ;;  %v8751_v37 = vld [vmem:[#allocation54_spill] sm:$0xff]  ;;  %v8752_v43 = vld [vmem:[#allocation55_spill] sm:$0xff] }
 0x517   :  { %5598 = vmatprep.subr.bf16.mxu0 %v8743_v5  ;;  %5630 = vmatprep.subr.bf16.mxu1 %v8744_v39  ;;  %v8762_v39 = vld [vmem:[#allocation65_spill] sm:$0xff]  ;;  %v8763_v5 = vld [vmem:[#allocation66_spill] sm:$0xff] }
 0x51a   :  { %5600 = vmatpush1.bf16.msra.mxu0 %v8745_v45  ;;  %5632 = vmatpush1.bf16.msra.mxu1 %v8746_v46  ;;  %v8753_v45 = vld [vmem:[#allocation56_spill] sm:$0xff]  ;;  %v8754_v46 = vld [vmem:[#allocation57_spill] sm:$0xff] }
 0x51b   :  { %5634 = vmatprep.subr.bf16.mxu0 %v8747_v57  ;;  %5666 = vmatprep.subr.bf16.mxu1 %v8748_v23  ;;  %v8755_v57 = vld [vmem:[#allocation58_spill] sm:$0xff]  ;;  %v8756_v23 = vld [vmem:[#allocation59_spill] sm:$0xff] }
 0x51d   :  { %2679 = vmatmul.mubr.f32.vlgmr.msra.gmra.mrb[8].mxu0 %v2296_v52  ;;  %2750 = vmatmul.mubr.f32.vlgmr.msra.gmra.mrb[8].mxu1 %v2296_v52  ;;  %v8757_v52 = vld [vmem:[#allocation60_spill] sm:$0xff] }
 0x51e   :  { %5636 = vmatpush1.bf16.msra.mxu0 %v8749_v61  ;;  %5668 = vmatpush1.bf16.msra.mxu1 %v8750_v2  ;;  %v8758_v61 = vld [vmem:[#allocation61_spill] sm:$0xff]  ;;  %v8759_v2 = vld [vmem:[#allocation62_spill] sm:$0xff] }
 0x51f   :  { %5638 = vmatprep.subr.bf16.mxu0 %v8751_v37  ;;  %5670 = vmatprep.subr.bf16.mxu1 %v8752_v43  ;;  %v8760_v37 = vld [vmem:[#allocation63_spill] sm:$0xff]  ;;  %v8761_v43 = vld [vmem:[#allocation64_spill] sm:$0xff] }
 0x520   :  { %2848 = vmatprep.mubr.f32.mxu0 %v8540_v51  ;;  %2919 = vmatprep.mubr.f32.mxu1 %v8540_v51 }
 0x522   :  { %5640 = vmatpush1.bf16.msra.mxu0 %v8753_v45  ;;  %5672 = vmatpush1.bf16.msra.mxu1 %v8754_v46  ;;  %v8764_v45 = vld [vmem:[#allocation67_spill] sm:$0xff]  ;;  %v8765_v46 = vld [vmem:[#allocation68_spill] sm:$0xff] }
 0x523   :  { %5642 = vmatprep.subr.bf16.mxu0 %v8755_v57  ;;  %5674 = vmatprep.subr.bf16.mxu1 %v8756_v23  ;;  %v8766_v57 = vld [vmem:[#allocation69_spill] sm:$0xff]  ;;  %v8767_v23 = vld [vmem:[#allocation70_spill] sm:$0xff] }
 0x526   :  { %5644 = vmatpush1.bf16.msra.mxu0 %v8757_v52  ;;  %5676 = vmatpush1.bf16.msra.mxu1 %v8758_v61  ;;  %v8768_v52 = vld [vmem:[#allocation71_spill] sm:$0xff]  ;;  %v8769_v61 = vld [vmem:[#allocation72_spill] sm:$0xff] }
 0x527   :  { %5646 = vmatprep.subr.bf16.mxu0 %v8759_v2  ;;  %5678 = vmatprep.subr.bf16.mxu1 %v8760_v37  ;;  %v8770_v2 = vld [vmem:[#allocation73_spill] sm:$0xff]  ;;  %v8771_v37 = vld [vmem:[#allocation74_spill] sm:$0xff] }
 0x52a   :  { %5648 = vmatpush1.bf16.msra.mxu0 %v8761_v43  ;;  %5680 = vmatpush1.bf16.msra.mxu1 %v8762_v39  ;;  %v8772_v43 = vld [vmem:[#allocation75_spill] sm:$0xff]  ;;  %v8773_v39 = vld [vmem:[#allocation76_spill] sm:$0xff] }
 0x52b   :  { %5650 = vmatprep.subr.bf16.mxu0 %v8763_v5  ;;  %5682 = vmatprep.subr.bf16.mxu1 %v8764_v45  ;;  %v8774_v5 = vld [vmem:[#allocation77_spill] sm:$0xff]  ;;  %v8775_v45 = vld [vmem:[#allocation78_spill] sm:$0xff] }
 0x52e   :  { %5652 = vmatpush1.bf16.msra.mxu0 %v8765_v46  ;;  %5684 = vmatpush1.bf16.msra.mxu1 %v8766_v57  ;;  %v8776_v46 = vld [vmem:[#allocation79_spill] sm:$0xff]  ;;  %v8777_v57 = vld [vmem:[#allocation80_spill] sm:$0xff] }
 0x52f   :  { %5654 = vmatprep.subr.bf16.mxu0 %v8767_v23  ;;  %5686 = vmatprep.subr.bf16.mxu1 %v8768_v52  ;;  %v8778_v23 = vld [vmem:[#allocation81_spill] sm:$0xff]  ;;  %v8779_v52 = vld [vmem:[#allocation82_spill] sm:$0xff] }
 0x532   :  { %5656 = vmatpush1.bf16.msra.mxu0 %v8769_v61  ;;  %5688 = vmatpush1.bf16.msra.mxu1 %v8770_v2  ;;  %v8780_v61 = vld [vmem:[#allocation83_spill] sm:$0xff] }
 0x533   :  { %5658 = vmatprep.subr.bf16.mxu0 %v8771_v37  ;;  %5690 = vmatprep.subr.bf16.mxu1 %v8772_v43 }
 0x536   :  { %5660 = vmatpush1.bf16.msra.mxu0 %v8773_v39  ;;  %5692 = vmatpush1.bf16.msra.mxu1 %v8774_v5 }
 0x537   :  { %5662 = vmatprep.subr.bf16.mxu0 %v8775_v45  ;;  %5694 = vmatprep.subr.bf16.mxu1 %v8776_v46  ;;  %v8782_v46 = vld [vmem:[#allocation119_spill] sm:$0xff] }
 0x53a   :  { %5664 = vmatpush1.bf16.msra.mxu0 %v8777_v57  ;;  %5696 = vmatpush1.bf16.msra.mxu1 %v8778_v23 }
 0x53b   :  { %5698 = vmatprep.subr.bf16.mxu0 %v8779_v52  ;;  %5730 = vmatprep.subr.bf16.mxu1 %v8780_v61 }
 0x5d0   :  { %v2505_v2 = vpop.f32.mrb[22].mxu0  ;;  %v2576_v37 = vpop.f32.mrb[22].mxu1 }
 0x5d1   :  { %v2581_v43 = vadd.f32 %v2505_v2, %v8781_v19  ;;  %v2507_v58 = vpop.f32.mrb[23].mxu0  ;;  %v2578_v39 = vpop.f32.mrb[23].mxu1  ;;  %v2583_v57 = vadd.f32 %v2576_v37, %v8782_v46 }
 0x5d2   :  { %v2582_v5 = vadd.f32 %v2507_v58, %v8659_v27  ;;  %v2584_v23 = vadd.f32 %v2578_v39, %v8722_v15 }
 0x5d3   :  { %v4713_v54 = vmul.f32 -1.442695, %v2581_v43  ;;  %v4715_v50 = vmul.f32 -1.442695, %v2583_v57 }
 0x5d4   :  { %v4714_v45 = vmul.f32 -1.442695, %v2582_v5 }
 0x5d5   :  { %6583 = vpow2.f32 %v4713_v54 }
 0x5d6   :  { %6585 = vpow2.f32 %v4714_v45 }
 0x5d7   :  { %6587 = vtanh.f32 %v2584_v23 }
 0x5d8   :  { %6589 = vpow2.f32 %v4715_v50 }
 0x5df   :  { %v6584_v52 = vpop.eup %6583 }
 0x5e0   :  { %v2594_v47 = vadd.f32 1.0, %v6584_v52  ;;  %v6586_v61 = vpop.eup %6585 }
 0x5e1   :  { %v2595_v2 = vadd.f32 1.0, %v6586_v61  ;;  %v6588_v19 = vpop.eup %6587 }
 0x5e2   :  { %6591 = vrcp.f32 %v2594_v47  ;;  %v6590_v42 = vpop.eup %6589 }
 0x5e3   :  { %6593 = vrcp.f32 %v2595_v2  ;;  %v2596_v54 = vadd.f32 1.0, %v6590_v42 }
 0x5e5   :  { %6595 = vrcp.f32 %v2596_v54 }
 0x5ec   :  { %v6592_v58 = vpop.eup %6591 }
 0x5ed   :  { %v2605_v43 = vmul.f32 %v6592_v58, %v6588_v19  ;;  %v6594_v5 = vpop.eup %6593 }
 0x5ee   :  { %v2604_v45 = vmul.f32 %v6594_v5, %v7736_v18 }
 0x5ef   :  { %v6596_v18 = vpop.eup %6595 }
 0x5f0   :  { %v2680_v37 = vpop.f32.mrb[8].mxu0  ;;  %v2751_v46 = vpop.f32.mrb[8].mxu1  ;;  %v7854_v39 = vadd.f32 %v2605_v43, %v2604_v45 }
 0x5f1   :  { %v6369_v57 = vadd.f32 %v2680_v37, %v8662_v62  ;;  %v2682_v23 = vpop.f32.mrb[9].mxu0  ;;  %v2753_v52 = vpop.f32.mrb[9].mxu1  ;;  %v6385_v42 = vadd.f32 %v2751_v46, %v8603_v55 }
 0x5f2   :  { %v6370_v47 = vadd.f32 %v2682_v23, %v8602_v13  ;;  %6597 = vtanh.f32 %v7854_v39  ;;  %v6386_v19 = vadd.f32 %v2753_v52, %v7403_v30 }
 0x5f3   :  { %v4716_v50 = vmul.f32 -1.442695, %v6369_v57  ;;  %v4718_v58 = vmul.f32 -1.442695, %v6385_v42 }
 0x5f4   :  { %v4717_v61 = vmul.f32 -1.442695, %v6370_v47 }
 0x5f5   :  { %6599 = vpow2.f32 %v4716_v50 }
 0x5f6   :  { %6601 = vpow2.f32 %v4717_v61 }
 0x5f7   :  { %6603 = vtanh.f32 %v6386_v19 }
 0x5f8   :  { %6605 = vpow2.f32 %v4718_v58  ;;  %v8784_v58 = vld [vmem:[#allocation27_spill] sm:$0xff] }
 0x5fc   :  { %v6598_v2 = vpop.eup %6597 }
 0x5fd   :  { %v2608_v43 = vmul.f32 %v6598_v2, %v6596_v18  ;;  %v8783_v2 = vld [vmem:[#allocation26_spill] sm:$0xff] }
 0x5ff   :  { %v6600_v5 = vpop.eup %6599  ;;  %2849 = vmatmul.mubr.f32.vlgmr.msra.gmra.mrb[24].mxu0 %v2608_v43  ;;  %2920 = vmatmul.mubr.f32.vlgmr.msra.gmra.mrb[24].mxu1 %v2608_v43  ;;  %v8785_v43 = vld [vmem:[#allocation28_spill] sm:$0xff] }
 0x600   :  { %v2769_v45 = vadd.f32 1.0, %v6600_v5  ;;  %v6602_v54 = vpop.eup %6601  ;;  %5700 = vmatpush1.bf16.msra.mxu0 %v8604_v41  ;;  %5732 = vmatpush1.bf16.msra.mxu1 %v8605_v9  ;;  %v8786_v5 = vld [vmem:[#allocation29_spill] sm:$0xff] }
 0x601   :  { %v2770_v37 = vadd.f32 1.0, %v6602_v54  ;;  %5702 = vmatprep.subr.bf16.mxu0 %v8663_v59  ;;  %5734 = vmatprep.subr.bf16.mxu1 %v8664_v20  ;;  %v6604_v46 = vpop.eup %6603  ;;  %v8788_v54 = vld [vmem:[#allocation31_spill] sm:$0xff] }
 0x602   :  { %6607 = vrcp.f32 %v2769_v45  ;;  %2990 = vmatprep.mubr.f32.mxu0 %v8540_v51  ;;  %3061 = vmatprep.mubr.f32.mxu1 %v8540_v51  ;;  %v6606_v57 = vpop.eup %6605  ;;  %v8787_v45 = vld [vmem:[#allocation30_spill] sm:$0xff] }
 0x603   :  { %6609 = vrcp.f32 %v2770_v37  ;;  %v2771_v50 = vadd.f32 1.0, %v6606_v57  ;;  %v8789_v37 = vld [vmem:[#allocation32_spill] sm:$0xff]  ;;  %v8791_v57 = vld [vmem:[#allocation34_spill] sm:$0xff] }
 0x604   :  { %5704 = vmatpush1.bf16.msra.mxu0 %v8665_v12  ;;  %5736 = vmatpush1.bf16.msra.mxu1 %v8666_v6 }
 0x605   :  { %5706 = vmatprep.subr.bf16.mxu0 %v8667_v1  ;;  %5738 = vmatprep.subr.bf16.mxu1 %v8723_v60  ;;  %6611 = vrcp.f32 %v2771_v50  ;;  %v8795_v50 = vld [vmem:[#allocation38_spill] sm:$0xff] }
 0x608   :  { %5708 = vmatpush1.bf16.msra.mxu0 %v8724_v28  ;;  %5740 = vmatpush1.bf16.msra.mxu1 %v8725_v33 }
 0x609   :  { %5710 = vmatprep.subr.bf16.mxu0 %v8726_v8  ;;  %5742 = vmatprep.subr.bf16.mxu1 %v8727_v11 }
 0x60c   :  { %v6608_v23 = vpop.eup %6607  ;;  %5712 = vmatpush1.bf16.msra.mxu0 %v8616_v21  ;;  %5744 = vmatpush1.bf16.msra.mxu1 %v8617_v48 }
 0x60d   :  { %v2780_v52 = vmul.f32 %v6608_v23, %v6604_v46  ;;  %v6610_v47 = vpop.eup %6609  ;;  %5714 = vmatprep.subr.bf16.mxu0 %v8728_v24  ;;  %5746 = vmatprep.subr.bf16.mxu1 %v8729_v56  ;;  %v8790_v46 = vld [vmem:[#allocation33_spill] sm:$0xff]  ;;  %v8792_v23 = vld [vmem:[#allocation35_spill] sm:$0xff] }
 0x60e   :  { %v2779_v61 = vmul.f32 %v6610_v47, %v7762_v49  ;;  %v8794_v47 = vld [vmem:[#allocation37_spill] sm:$0xff] }
 0x60f   :  { %v6612_v49 = vpop.eup %6611 }
 0x610   :  { %v7880_v42 = vadd.f32 %v2780_v52, %v2779_v61  ;;  %5716 = vmatpush1.bf16.msra.mxu0 %v8675_v44  ;;  %5748 = vmatpush1.bf16.msra.mxu1 %v8676_v53  ;;  %v8793_v52 = vld [vmem:[#allocation36_spill] sm:$0xff]  ;;  %v8796_v61 = vld [vmem:[#allocation39_spill] sm:$0xff] }
 0x611   :  { %5718 = vmatprep.subr.bf16.mxu0 %v8677_v36  ;;  %5750 = vmatprep.subr.bf16.mxu1 %v8678_v16 }
 0x612   :  { %6613 = vtanh.f32 %v7880_v42 }
 0x614   :  { %5720 = vmatpush1.bf16.msra.mxu0 %v8679_v32  ;;  %5752 = vmatpush1.bf16.msra.mxu1 %v8680_v3 }
 0x615   :  { %5722 = vmatprep.subr.bf16.mxu0 %v8681_v7  ;;  %5754 = vmatprep.subr.bf16.mxu1 %v8627_v0 }
 0x618   :  { %5724 = vmatpush1.bf16.msra.mxu0 %v8628_v63  ;;  %5756 = vmatpush1.bf16.msra.mxu1 %v8629_v40 }
 0x619   :  { %5726 = vmatprep.subr.bf16.mxu0 %v8630_v26  ;;  %5758 = vmatprep.subr.bf16.mxu1 %v8631_v14 }
 0x61c   :  { %v6614_v18 = vpop.eup %6613  ;;  %5728 = vmatpush1.bf16.msra.mxu0 %v8632_v4  ;;  %5760 = vmatpush1.bf16.msra.mxu1 %v8633_v10 }
 0x61d   :  { %5762 = vmatprep.subr.bf16.mxu0 %v8634_v31  ;;  %5794 = vmatprep.subr.bf16.mxu1 %v8635_v17  ;;  %v2783_v19 = vmul.f32 %v6614_v18, %v6612_v49  ;;  %v8797_v49 = vld [vmem:[#allocation40_spill] sm:$0xff]  ;;  %v8798_v18 = vld [vmem:[#allocation41_spill] sm:$0xff] }
 0x61f   :  { %2991 = vmatmul.mubr.f32.vlgmr.msra.gmra.mrb[24].mxu0 %v2783_v19  ;;  %3062 = vmatmul.mubr.f32.vlgmr.msra.gmra.mrb[24].mxu1 %v2783_v19 }
 0x620   :  { %5764 = vmatpush1.bf16.msra.mxu0 %v7051_v22  ;;  %5796 = vmatpush1.bf16.msra.mxu1 %v7054_v25 }
 0x621   :  { %5766 = vmatprep.subr.bf16.mxu0 %v7058_v29  ;;  %5798 = vmatprep.subr.bf16.mxu1 %v7062_v34 }
 0x622   :  { %3165 = vmatprep.mubr.f32.mxu0 %v8540_v51  ;;  %3236 = vmatprep.mubr.f32.mxu1 %v8540_v51 }
 0x624   :  { %5768 = vmatpush1.bf16.msra.mxu0 %v7064_v35  ;;  %5800 = vmatpush1.bf16.msra.mxu1 %v7068_v38 }
 0x625   :  { %5770 = vmatprep.subr.bf16.mxu0 %v8783_v2  ;;  %5802 = vmatprep.subr.bf16.mxu1 %v8784_v58 }
 0x628   :  { %5772 = vmatpush1.bf16.msra.mxu0 %v8785_v43  ;;  %5804 = vmatpush1.bf16.msra.mxu1 %v8786_v5 }
 0x629   :  { %5774 = vmatprep.subr.bf16.mxu0 %v8787_v45  ;;  %5806 = vmatprep.subr.bf16.mxu1 %v8788_v54  ;;  %v8799_v54 = vld [vmem:[#allocation42_spill] sm:$0xff] }
 0x62c   :  { %5776 = vmatpush1.bf16.msra.mxu0 %v8789_v37  ;;  %5808 = vmatpush1.bf16.msra.mxu1 %v8790_v46  ;;  %v8800_v37 = vld [vmem:[#allocation43_spill] sm:$0xff]  ;;  %v8801_v46 = vld [vmem:[#allocation44_spill] sm:$0xff] }
 0x62d   :  { %5778 = vmatprep.subr.bf16.mxu0 %v8791_v57  ;;  %5810 = vmatprep.subr.bf16.mxu1 %v8792_v23  ;;  %v8802_v57 = vld [vmem:[#allocation45_spill] sm:$0xff]  ;;  %v8803_v23 = vld [vmem:[#allocation46_spill] sm:$0xff] }
 0x630   :  { %5780 = vmatpush1.bf16.msra.mxu0 %v8793_v52  ;;  %5812 = vmatpush1.bf16.msra.mxu1 %v8794_v47  ;;  %v8804_v52 = vld [vmem:[#allocation47_spill] sm:$0xff]  ;;  %v8805_v47 = vld [vmem:[#allocation48_spill] sm:$0xff] }
 0x631   :  { %5782 = vmatprep.subr.bf16.mxu0 %v8795_v50  ;;  %5814 = vmatprep.subr.bf16.mxu1 %v8796_v61  ;;  %v8806_v50 = vld [vmem:[#allocation49_spill] sm:$0xff]  ;;  %v8807_v61 = vld [vmem:[#allocation50_spill] sm:$0xff] }
 0x634   :  { %5784 = vmatpush1.bf16.msra.mxu0 %v8797_v49  ;;  %5816 = vmatpush1.bf16.msra.mxu1 %v8798_v18  ;;  %v8808_v49 = vld [vmem:[#allocation51_spill] sm:$0xff]  ;;  %v8841_v18 = vld [vmem:[#allocation117_spill] sm:$0xff] }
 0x635   :  { %5786 = vmatprep.subr.bf16.mxu0 %v8799_v54  ;;  %5818 = vmatprep.subr.bf16.mxu1 %v8800_v37  ;;  %v8809_v54 = vld [vmem:[#allocation52_spill] sm:$0xff]  ;;  %v8810_v37 = vld [vmem:[#allocation53_spill] sm:$0xff] }
 0x638   :  { %5788 = vmatpush1.bf16.msra.mxu0 %v8801_v46  ;;  %5820 = vmatpush1.bf16.msra.mxu1 %v8802_v57  ;;  %v8811_v46 = vld [vmem:[#allocation54_spill] sm:$0xff]  ;;  %v8812_v57 = vld [vmem:[#allocation55_spill] sm:$0xff] }
 0x639   :  { %5790 = vmatprep.subr.bf16.mxu0 %v8803_v23  ;;  %5822 = vmatprep.subr.bf16.mxu1 %v8804_v52  ;;  %v8822_v52 = vld [vmem:[#allocation65_spill] sm:$0xff]  ;;  %v8823_v23 = vld [vmem:[#allocation66_spill] sm:$0xff] }
 0x63c   :  { %5792 = vmatpush1.bf16.msra.mxu0 %v8805_v47  ;;  %5824 = vmatpush1.bf16.msra.mxu1 %v8806_v50  ;;  %v8813_v47 = vld [vmem:[#allocation56_spill] sm:$0xff]  ;;  %v8814_v50 = vld [vmem:[#allocation57_spill] sm:$0xff] }
 0x63d   :  { %5826 = vmatprep.subr.bf16.mxu0 %v8807_v61  ;;  %5858 = vmatprep.subr.bf16.mxu1 %v8808_v49  ;;  %v8815_v61 = vld [vmem:[#allocation58_spill] sm:$0xff]  ;;  %v8816_v49 = vld [vmem:[#allocation59_spill] sm:$0xff] }
 0x63f   :  { %3166 = vmatmul.mubr.f32.vlgmr.msra.gmra.mrb[10].mxu0 %v2783_v19  ;;  %3237 = vmatmul.mubr.f32.vlgmr.msra.gmra.mrb[10].mxu1 %v2783_v19  ;;  %v8817_v19 = vld [vmem:[#allocation60_spill] sm:$0xff] }
 0x640   :  { %5828 = vmatpush1.bf16.msra.mxu0 %v8809_v54  ;;  %5860 = vmatpush1.bf16.msra.mxu1 %v8810_v37  ;;  %v8818_v54 = vld [vmem:[#allocation61_spill] sm:$0xff]  ;;  %v8819_v37 = vld [vmem:[#allocation62_spill] sm:$0xff] }
 0x641   :  { %5830 = vmatprep.subr.bf16.mxu0 %v8811_v46  ;;  %5862 = vmatprep.subr.bf16.mxu1 %v8812_v57  ;;  %v8820_v46 = vld [vmem:[#allocation63_spill] sm:$0xff]  ;;  %v8821_v57 = vld [vmem:[#allocation64_spill] sm:$0xff] }
 0x642   :  { %3335 = vmatprep.mubr.f32.mxu0 %v8540_v51  ;;  %3406 = vmatprep.mubr.f32.mxu1 %v8540_v51 }
 0x644   :  { %5832 = vmatpush1.bf16.msra.mxu0 %v8813_v47  ;;  %5864 = vmatpush1.bf16.msra.mxu1 %v8814_v50  ;;  %v8824_v47 = vld [vmem:[#allocation67_spill] sm:$0xff]  ;;  %v8825_v50 = vld [vmem:[#allocation68_spill] sm:$0xff] }
 0x645   :  { %5834 = vmatprep.subr.bf16.mxu0 %v8815_v61  ;;  %5866 = vmatprep.subr.bf16.mxu1 %v8816_v49  ;;  %v8826_v61 = vld [vmem:[#allocation69_spill] sm:$0xff]  ;;  %v8827_v49 = vld [vmem:[#allocation70_spill] sm:$0xff] }
 0x648   :  { %5836 = vmatpush1.bf16.msra.mxu0 %v8817_v19  ;;  %5868 = vmatpush1.bf16.msra.mxu1 %v8818_v54  ;;  %v8828_v19 = vld [vmem:[#allocation71_spill] sm:$0xff]  ;;  %v8829_v54 = vld [vmem:[#allocation72_spill] sm:$0xff] }
 0x649   :  { %5838 = vmatprep.subr.bf16.mxu0 %v8819_v37  ;;  %5870 = vmatprep.subr.bf16.mxu1 %v8820_v46  ;;  %v8830_v37 = vld [vmem:[#allocation73_spill] sm:$0xff]  ;;  %v8831_v46 = vld [vmem:[#allocation74_spill] sm:$0xff] }
 0x64c   :  { %5840 = vmatpush1.bf16.msra.mxu0 %v8821_v57  ;;  %5872 = vmatpush1.bf16.msra.mxu1 %v8822_v52  ;;  %v8832_v57 = vld [vmem:[#allocation75_spill] sm:$0xff]  ;;  %v8833_v52 = vld [vmem:[#allocation76_spill] sm:$0xff] }
 0x64d   :  { %5842 = vmatprep.subr.bf16.mxu0 %v8823_v23  ;;  %5874 = vmatprep.subr.bf16.mxu1 %v8824_v47  ;;  %v8834_v23 = vld [vmem:[#allocation77_spill] sm:$0xff]  ;;  %v8835_v47 = vld [vmem:[#allocation78_spill] sm:$0xff] }
 0x650   :  { %5844 = vmatpush1.bf16.msra.mxu0 %v8825_v50  ;;  %5876 = vmatpush1.bf16.msra.mxu1 %v8826_v61  ;;  %v8836_v50 = vld [vmem:[#allocation79_spill] sm:$0xff]  ;;  %v8837_v61 = vld [vmem:[#allocation80_spill] sm:$0xff] }
 0x651   :  { %5846 = vmatprep.subr.bf16.mxu0 %v8827_v49  ;;  %5878 = vmatprep.subr.bf16.mxu1 %v8828_v19  ;;  %v8838_v49 = vld [vmem:[#allocation81_spill] sm:$0xff]  ;;  %v8839_v19 = vld [vmem:[#allocation82_spill] sm:$0xff] }
 0x654   :  { %5848 = vmatpush1.bf16.msra.mxu0 %v8829_v54  ;;  %5880 = vmatpush1.bf16.msra.mxu1 %v8830_v37  ;;  %v8840_v54 = vld [vmem:[#allocation83_spill] sm:$0xff] }
 0x655   :  { %5850 = vmatprep.subr.bf16.mxu0 %v8831_v46  ;;  %5882 = vmatprep.subr.bf16.mxu1 %v8832_v57 }
 0x658   :  { %5852 = vmatpush1.bf16.msra.mxu0 %v8833_v52  ;;  %5884 = vmatpush1.bf16.msra.mxu1 %v8834_v23 }
 0x659   :  { %5854 = vmatprep.subr.bf16.mxu0 %v8835_v47  ;;  %5886 = vmatprep.subr.bf16.mxu1 %v8836_v50  ;;  %v8842_v50 = vld [vmem:[#allocation119_spill] sm:$0xff] }
 0x65c   :  { %5856 = vmatpush1.bf16.msra.mxu0 %v8837_v61  ;;  %5888 = vmatpush1.bf16.msra.mxu1 %v8838_v49 }
 0x65d   :  { %5890 = vmatprep.subr.bf16.mxu0 %v8839_v19  ;;  %5922 = vmatprep.subr.bf16.mxu1 %v8840_v54 }
 0x6f2   :  { %v2992_v37 = vpop.f32.mrb[24].mxu0  ;;  %v3063_v46 = vpop.f32.mrb[24].mxu1 }
 0x6f3   :  { %v3068_v57 = vadd.f32 %v2992_v37, %v8841_v18  ;;  %v2994_v45 = vpop.f32.mrb[25].mxu0  ;;  %v3065_v52 = vpop.f32.mrb[25].mxu1  ;;  %v3070_v61 = vadd.f32 %v3063_v46, %v8842_v50 }
 0x6f4   :  { %v3069_v23 = vadd.f32 %v2994_v45, %v8659_v27  ;;  %v3071_v49 = vadd.f32 %v3065_v52, %v8722_v15 }
 0x6f5   :  { %v4719_v5 = vmul.f32 -1.442695, %v3068_v57  ;;  %v4721_v43 = vmul.f32 -1.442695, %v3070_v61 }
 0x6f6   :  { %v4720_v47 = vmul.f32 -1.442695, %v3069_v23 }
 0x6f7   :  { %6615 = vpow2.f32 %v4719_v5 }
 0x6f8   :  { %6617 = vpow2.f32 %v4720_v47 }
 0x6f9   :  { %6619 = vtanh.f32 %v3071_v49 }
 0x6fa   :  { %6621 = vpow2.f32 %v4721_v43 }
 0x701   :  { %v6616_v19 = vpop.eup %6615 }
 0x702   :  { %v3081_v58 = vadd.f32 1.0, %v6616_v19  ;;  %v6618_v54 = vpop.eup %6617 }
 0x703   :  { %v3082_v37 = vadd.f32 1.0, %v6618_v54  ;;  %v6620_v18 = vpop.eup %6619 }
 0x704   :  { %6623 = vrcp.f32 %v3081_v58  ;;  %v6622_v2 = vpop.eup %6621 }
 0x705   :  { %6625 = vrcp.f32 %v3082_v37  ;;  %v3083_v5 = vadd.f32 1.0, %v6622_v2 }
 0x707   :  { %6627 = vrcp.f32 %v3083_v5 }
 0x70e   :  { %v6624_v45 = vpop.eup %6623 }
 0x70f   :  { %v3092_v57 = vmul.f32 %v6624_v45, %v6620_v18  ;;  %v6626_v23 = vpop.eup %6625 }
 0x710   :  { %v3091_v47 = vmul.f32 %v6626_v23, %v7854_v39 }
 0x711   :  { %v6628_v39 = vpop.eup %6627 }
 0x712   :  { %v3167_v46 = vpop.f32.mrb[10].mxu0  ;;  %v3238_v50 = vpop.f32.mrb[10].mxu1  ;;  %v7972_v52 = vadd.f32 %v3092_v57, %v3091_v47 }
 0x713   :  { %v6371_v61 = vadd.f32 %v3167_v46, %v8662_v62  ;;  %v3169_v49 = vpop.f32.mrb[11].mxu0  ;;  %v3240_v19 = vpop.f32.mrb[11].mxu1  ;;  %v6387_v2 = vadd.f32 %v3238_v50, %v8603_v55 }
 0x714   :  { %v6372_v58 = vadd.f32 %v3169_v49, %v8602_v13  ;;  %6629 = vtanh.f32 %v7972_v52  ;;  %v6388_v18 = vadd.f32 %v3240_v19, %v7403_v30 }
 0x715   :  { %v4722_v43 = vmul.f32 -1.442695, %v6371_v61  ;;  %v4724_v45 = vmul.f32 -1.442695, %v6387_v2 }
 0x716   :  { %v4723_v54 = vmul.f32 -1.442695, %v6372_v58 }
 0x717   :  { %6631 = vpow2.f32 %v4722_v43 }
 0x718   :  { %6633 = vpow2.f32 %v4723_v54 }
 0x719   :  { %6635 = vtanh.f32 %v6388_v18 }
 0x71a   :  { %6637 = vpow2.f32 %v4724_v45  ;;  %v8844_v45 = vld [vmem:[#allocation27_spill] sm:$0xff] }
 0x71e   :  { %v6630_v37 = vpop.eup %6629 }
 0x71f   :  { %v3095_v57 = vmul.f32 %v6630_v37, %v6628_v39  ;;  %v8843_v37 = vld [vmem:[#allocation26_spill] sm:$0xff] }
 0x721   :  { %v6632_v23 = vpop.eup %6631  ;;  %3336 = vmatmul.mubr.f32.vlgmr.msra.gmra.mrb[26].mxu0 %v3095_v57  ;;  %3407 = vmatmul.mubr.f32.vlgmr.msra.gmra.mrb[26].mxu1 %v3095_v57  ;;  %v8845_v57 = vld [vmem:[#allocation28_spill] sm:$0xff] }
 0x722   :  { %v3256_v47 = vadd.f32 1.0, %v6632_v23  ;;  %v6634_v5 = vpop.eup %6633  ;;  %5892 = vmatpush1.bf16.msra.mxu0 %v8604_v41  ;;  %5924 = vmatpush1.bf16.msra.mxu1 %v8605_v9  ;;  %v8846_v23 = vld [vmem:[#allocation29_spill] sm:$0xff] }
 0x723   :  { %v3257_v46 = vadd.f32 1.0, %v6634_v5  ;;  %5894 = vmatprep.subr.bf16.mxu0 %v8663_v59  ;;  %5926 = vmatprep.subr.bf16.mxu1 %v8664_v20  ;;  %v6636_v50 = vpop.eup %6635  ;;  %v8848_v5 = vld [vmem:[#allocation31_spill] sm:$0xff] }
 0x724   :  { %6639 = vrcp.f32 %v3256_v47  ;;  %3477 = vmatprep.mubr.f32.mxu0 %v8540_v51  ;;  %3548 = vmatprep.mubr.f32.mxu1 %v8540_v51  ;;  %v6638_v61 = vpop.eup %6637  ;;  %v8847_v47 = vld [vmem:[#allocation30_spill] sm:$0xff] }
 0x725   :  { %6641 = vrcp.f32 %v3257_v46  ;;  %v3258_v43 = vadd.f32 1.0, %v6638_v61  ;;  %v8849_v46 = vld [vmem:[#allocation32_spill] sm:$0xff]  ;;  %v8851_v61 = vld [vmem:[#allocation34_spill] sm:$0xff] }
 0x726   :  { %5896 = vmatpush1.bf16.msra.mxu0 %v8665_v12  ;;  %5928 = vmatpush1.bf16.msra.mxu1 %v8666_v6 }
 0x727   :  { %5898 = vmatprep.subr.bf16.mxu0 %v8667_v1  ;;  %5930 = vmatprep.subr.bf16.mxu1 %v8723_v60  ;;  %6643 = vrcp.f32 %v3258_v43  ;;  %v8855_v43 = vld [vmem:[#allocation38_spill] sm:$0xff] }
 0x72a   :  { %5900 = vmatpush1.bf16.msra.mxu0 %v8724_v28  ;;  %5932 = vmatpush1.bf16.msra.mxu1 %v8725_v33 }
 0x72b   :  { %5902 = vmatprep.subr.bf16.mxu0 %v8726_v8  ;;  %5934 = vmatprep.subr.bf16.mxu1 %v8727_v11 }
 0x72e   :  { %v6640_v49 = vpop.eup %6639  ;;  %5904 = vmatpush1.bf16.msra.mxu0 %v8616_v21  ;;  %5936 = vmatpush1.bf16.msra.mxu1 %v8617_v48 }
 0x72f   :  { %v3267_v19 = vmul.f32 %v6640_v49, %v6636_v50  ;;  %v6642_v58 = vpop.eup %6641  ;;  %5906 = vmatprep.subr.bf16.mxu0 %v8728_v24  ;;  %5938 = vmatprep.subr.bf16.mxu1 %v8729_v56  ;;  %v8850_v50 = vld [vmem:[#allocation33_spill] sm:$0xff]  ;;  %v8852_v49 = vld [vmem:[#allocation35_spill] sm:$0xff] }
 0x730   :  { %v3266_v54 = vmul.f32 %v6642_v58, %v7880_v42  ;;  %v8854_v58 = vld [vmem:[#allocation37_spill] sm:$0xff] }
 0x731   :  { %v6644_v42 = vpop.eup %6643 }
 0x732   :  { %v7998_v2 = vadd.f32 %v3267_v19, %v3266_v54  ;;  %5908 = vmatpush1.bf16.msra.mxu0 %v8675_v44  ;;  %5940 = vmatpush1.bf16.msra.mxu1 %v8676_v53  ;;  %v8853_v19 = vld [vmem:[#allocation36_spill] sm:$0xff]  ;;  %v8856_v54 = vld [vmem:[#allocation39_spill] sm:$0xff] }
 0x733   :  { %5910 = vmatprep.subr.bf16.mxu0 %v8677_v36  ;;  %5942 = vmatprep.subr.bf16.mxu1 %v8678_v16 }
 0x734   :  { %6645 = vtanh.f32 %v7998_v2 }
 0x736   :  { %5912 = vmatpush1.bf16.msra.mxu0 %v8679_v32  ;;  %5944 = vmatpush1.bf16.msra.mxu1 %v8680_v3 }
 0x737   :  { %5914 = vmatprep.subr.bf16.mxu0 %v8681_v7  ;;  %5946 = vmatprep.subr.bf16.mxu1 %v8627_v0 }
 0x73a   :  { %5916 = vmatpush1.bf16.msra.mxu0 %v8628_v63  ;;  %5948 = vmatpush1.bf16.msra.mxu1 %v8629_v40 }
 0x73b   :  { %5918 = vmatprep.subr.bf16.mxu0 %v8630_v26  ;;  %5950 = vmatprep.subr.bf16.mxu1 %v8631_v14 }
 0x73e   :  { %v6646_v39 = vpop.eup %6645  ;;  %5920 = vmatpush1.bf16.msra.mxu0 %v8632_v4  ;;  %5952 = vmatpush1.bf16.msra.mxu1 %v8633_v10 }
 0x73f   :  { %v3270_v18 = vmul.f32 %v6646_v39, %v6644_v42  ;;  %5954 = vmatprep.subr.bf16.mxu0 %v8634_v31  ;;  %5986 = vmatprep.subr.bf16.mxu1 %v8635_v17  ;;  %v8857_v42 = vld [vmem:[#allocation40_spill] sm:$0xff]  ;;  %v8858_v39 = vld [vmem:[#allocation41_spill] sm:$0xff] }
 0x741   :  { %3478 = vmatmul.mubr.f32.vlgmr.msra.gmra.mrb[26].mxu0 %v3270_v18  ;;  %3549 = vmatmul.mubr.f32.vlgmr.msra.gmra.mrb[26].mxu1 %v3270_v18 }
 0x742   :  { %5956 = vmatpush1.bf16.msra.mxu0 %v7051_v22  ;;  %5988 = vmatpush1.bf16.msra.mxu1 %v7054_v25 }
 0x743   :  { %5958 = vmatprep.subr.bf16.mxu0 %v7058_v29  ;;  %5990 = vmatprep.subr.bf16.mxu1 %v7062_v34 }
 0x744   :  { %3652 = vmatprep.mubr.f32.mxu0 %v8540_v51  ;;  %3723 = vmatprep.mubr.f32.mxu1 %v8540_v51 }
 0x746   :  { %5960 = vmatpush1.bf16.msra.mxu0 %v7064_v35  ;;  %5992 = vmatpush1.bf16.msra.mxu1 %v7068_v38 }
 0x747   :  { %5962 = vmatprep.subr.bf16.mxu0 %v8843_v37  ;;  %5994 = vmatprep.subr.bf16.mxu1 %v8844_v45 }
 0x74a   :  { %5964 = vmatpush1.bf16.msra.mxu0 %v8845_v57  ;;  %5996 = vmatpush1.bf16.msra.mxu1 %v8846_v23 }
 0x74b   :  { %5966 = vmatprep.subr.bf16.mxu0 %v8847_v47  ;;  %5998 = vmatprep.subr.bf16.mxu1 %v8848_v5  ;;  %v8859_v5 = vld [vmem:[#allocation42_spill] sm:$0xff] }
 0x74e   :  { %5968 = vmatpush1.bf16.msra.mxu0 %v8849_v46  ;;  %6000 = vmatpush1.bf16.msra.mxu1 %v8850_v50  ;;  %v8860_v46 = vld [vmem:[#allocation43_spill] sm:$0xff]  ;;  %v8861_v50 = vld [vmem:[#allocation44_spill] sm:$0xff] }
 0x74f   :  { %5970 = vmatprep.subr.bf16.mxu0 %v8851_v61  ;;  %6002 = vmatprep.subr.bf16.mxu1 %v8852_v49  ;;  %v8862_v61 = vld [vmem:[#allocation45_spill] sm:$0xff]  ;;  %v8863_v49 = vld [vmem:[#allocation46_spill] sm:$0xff] }
 0x752   :  { %5972 = vmatpush1.bf16.msra.mxu0 %v8853_v19  ;;  %6004 = vmatpush1.bf16.msra.mxu1 %v8854_v58  ;;  %v8864_v19 = vld [vmem:[#allocation47_spill] sm:$0xff]  ;;  %v8865_v58 = vld [vmem:[#allocation48_spill] sm:$0xff] }
 0x753   :  { %5974 = vmatprep.subr.bf16.mxu0 %v8855_v43  ;;  %6006 = vmatprep.subr.bf16.mxu1 %v8856_v54  ;;  %v8866_v43 = vld [vmem:[#allocation49_spill] sm:$0xff]  ;;  %v8867_v54 = vld [vmem:[#allocation50_spill] sm:$0xff] }
 0x756   :  { %5976 = vmatpush1.bf16.msra.mxu0 %v8857_v42  ;;  %6008 = vmatpush1.bf16.msra.mxu1 %v8858_v39  ;;  %v8868_v42 = vld [vmem:[#allocation51_spill] sm:$0xff]  ;;  %v8901_v39 = vld [vmem:[#allocation117_spill] sm:$0xff] }
 0x757   :  { %5978 = vmatprep.subr.bf16.mxu0 %v8859_v5  ;;  %6010 = vmatprep.subr.bf16.mxu1 %v8860_v46  ;;  %v8869_v5 = vld [vmem:[#allocation52_spill] sm:$0xff]  ;;  %v8870_v46 = vld [vmem:[#allocation53_spill] sm:$0xff] }
 0x75a   :  { %5980 = vmatpush1.bf16.msra.mxu0 %v8861_v50  ;;  %6012 = vmatpush1.bf16.msra.mxu1 %v8862_v61  ;;  %v8871_v50 = vld [vmem:[#allocation54_spill] sm:$0xff]  ;;  %v8872_v61 = vld [vmem:[#allocation55_spill] sm:$0xff] }
 0x75b   :  { %5982 = vmatprep.subr.bf16.mxu0 %v8863_v49  ;;  %6014 = vmatprep.subr.bf16.mxu1 %v8864_v19  ;;  %v8882_v19 = vld [vmem:[#allocation65_spill] sm:$0xff]  ;;  %v8883_v49 = vld [vmem:[#allocation66_spill] sm:$0xff] }
 0x75e   :  { %5984 = vmatpush1.bf16.msra.mxu0 %v8865_v58  ;;  %6016 = vmatpush1.bf16.msra.mxu1 %v8866_v43  ;;  %v8873_v58 = vld [vmem:[#allocation56_spill] sm:$0xff]  ;;  %v8874_v43 = vld [vmem:[#allocation57_spill] sm:$0xff] }
 0x75f   :  { %6018 = vmatprep.subr.bf16.mxu0 %v8867_v54  ;;  %6050 = vmatprep.subr.bf16.mxu1 %v8868_v42  ;;  %v8875_v54 = vld [vmem:[#allocation58_spill] sm:$0xff]  ;;  %v8876_v42 = vld [vmem:[#allocation59_spill] sm:$0xff] }
 0x761   :  { %3653 = vmatmul.mubr.f32.vlgmr.msra.gmra.mrb[12].mxu0 %v3270_v18  ;;  %3724 = vmatmul.mubr.f32.vlgmr.msra.gmra.mrb[12].mxu1 %v3270_v18  ;;  %v8877_v18 = vld [vmem:[#allocation60_spill] sm:$0xff] }
 0x762   :  { %6020 = vmatpush1.bf16.msra.mxu0 %v8869_v5  ;;  %6052 = vmatpush1.bf16.msra.mxu1 %v8870_v46  ;;  %v8878_v5 = vld [vmem:[#allocation61_spill] sm:$0xff]  ;;  %v8879_v46 = vld [vmem:[#allocation62_spill] sm:$0xff] }
 0x763   :  { %6022 = vmatprep.subr.bf16.mxu0 %v8871_v50  ;;  %6054 = vmatprep.subr.bf16.mxu1 %v8872_v61  ;;  %v8880_v50 = vld [vmem:[#allocation63_spill] sm:$0xff]  ;;  %v8881_v61 = vld [vmem:[#allocation64_spill] sm:$0xff] }
 0x764   :  { %3822 = vmatprep.mubr.f32.mxu0 %v8540_v51  ;;  %3893 = vmatprep.mubr.f32.mxu1 %v8540_v51 }
 0x766   :  { %6024 = vmatpush1.bf16.msra.mxu0 %v8873_v58  ;;  %6056 = vmatpush1.bf16.msra.mxu1 %v8874_v43  ;;  %v8884_v58 = vld [vmem:[#allocation67_spill] sm:$0xff]  ;;  %v8885_v43 = vld [vmem:[#allocation68_spill] sm:$0xff] }
 0x767   :  { %6026 = vmatprep.subr.bf16.mxu0 %v8875_v54  ;;  %6058 = vmatprep.subr.bf16.mxu1 %v8876_v42  ;;  %v8886_v54 = vld [vmem:[#allocation69_spill] sm:$0xff]  ;;  %v8887_v42 = vld [vmem:[#allocation70_spill] sm:$0xff] }
 0x76a   :  { %6028 = vmatpush1.bf16.msra.mxu0 %v8877_v18  ;;  %6060 = vmatpush1.bf16.msra.mxu1 %v8878_v5  ;;  %v8888_v18 = vld [vmem:[#allocation71_spill] sm:$0xff]  ;;  %v8889_v5 = vld [vmem:[#allocation72_spill] sm:$0xff] }
 0x76b   :  { %6030 = vmatprep.subr.bf16.mxu0 %v8879_v46  ;;  %6062 = vmatprep.subr.bf16.mxu1 %v8880_v50  ;;  %v8890_v46 = vld [vmem:[#allocation73_spill] sm:$0xff]  ;;  %v8891_v50 = vld [vmem:[#allocation74_spill] sm:$0xff] }
 0x76e   :  { %6032 = vmatpush1.bf16.msra.mxu0 %v8881_v61  ;;  %6064 = vmatpush1.bf16.msra.mxu1 %v8882_v19  ;;  %v8892_v61 = vld [vmem:[#allocation75_spill] sm:$0xff]  ;;  %v8893_v19 = vld [vmem:[#allocation76_spill] sm:$0xff] }
 0x76f   :  { %6034 = vmatprep.subr.bf16.mxu0 %v8883_v49  ;;  %6066 = vmatprep.subr.bf16.mxu1 %v8884_v58  ;;  %v8894_v49 = vld [vmem:[#allocation77_spill] sm:$0xff]  ;;  %v8895_v58 = vld [vmem:[#allocation78_spill] sm:$0xff] }
 0x772   :  { %6036 = vmatpush1.bf16.msra.mxu0 %v8885_v43  ;;  %6068 = vmatpush1.bf16.msra.mxu1 %v8886_v54  ;;  %v8896_v43 = vld [vmem:[#allocation79_spill] sm:$0xff]  ;;  %v8897_v54 = vld [vmem:[#allocation80_spill] sm:$0xff] }
 0x773   :  { %6038 = vmatprep.subr.bf16.mxu0 %v8887_v42  ;;  %6070 = vmatprep.subr.bf16.mxu1 %v8888_v18  ;;  %v8898_v42 = vld [vmem:[#allocation81_spill] sm:$0xff]  ;;  %v8899_v18 = vld [vmem:[#allocation82_spill] sm:$0xff] }
 0x776   :  { %6040 = vmatpush1.bf16.msra.mxu0 %v8889_v5  ;;  %6072 = vmatpush1.bf16.msra.mxu1 %v8890_v46  ;;  %v8900_v5 = vld [vmem:[#allocation83_spill] sm:$0xff] }
 0x777   :  { %6042 = vmatprep.subr.bf16.mxu0 %v8891_v50  ;;  %6074 = vmatprep.subr.bf16.mxu1 %v8892_v61 }
 0x77a   :  { %6044 = vmatpush1.bf16.msra.mxu0 %v8893_v19  ;;  %6076 = vmatpush1.bf16.msra.mxu1 %v8894_v49 }
 0x77b   :  { %6046 = vmatprep.subr.bf16.mxu0 %v8895_v58  ;;  %6078 = vmatprep.subr.bf16.mxu1 %v8896_v43  ;;  %v8902_v43 = vld [vmem:[#allocation119_spill] sm:$0xff] }
 0x77e   :  { %6048 = vmatpush1.bf16.msra.mxu0 %v8897_v54  ;;  %6080 = vmatpush1.bf16.msra.mxu1 %v8898_v42 }
 0x77f   :  { %6082 = vmatprep.subr.bf16.mxu0 %v8899_v18  ;;  %6114 = vmatprep.subr.bf16.mxu1 %v8900_v5 }
 0x814   :  { %v3479_v46 = vpop.f32.mrb[26].mxu0  ;;  %v3550_v50 = vpop.f32.mrb[26].mxu1 }
 0x815   :  { %v3555_v61 = vadd.f32 %v3479_v46, %v8901_v39  ;;  %v3481_v47 = vpop.f32.mrb[27].mxu0  ;;  %v3552_v19 = vpop.f32.mrb[27].mxu1  ;;  %v3557_v54 = vadd.f32 %v3550_v50, %v8902_v43 }
 0x816   :  { %v3556_v49 = vadd.f32 %v3481_v47, %v8659_v27  ;;  %v3558_v42 = vadd.f32 %v3552_v19, %v8722_v15 }
 0x817   :  { %v4725_v23 = vmul.f32 -1.442695, %v3555_v61  ;;  %v4727_v57 = vmul.f32 -1.442695, %v3557_v54 }
 0x818   :  { %v4726_v58 = vmul.f32 -1.442695, %v3556_v49 }
 0x819   :  { %6647 = vpow2.f32 %v4725_v23 }
 0x81a   :  { %6649 = vpow2.f32 %v4726_v58 }
 0x81b   :  { %6651 = vtanh.f32 %v3558_v42 }
 0x81c   :  { %6653 = vpow2.f32 %v4727_v57 }
 0x823   :  { %v6648_v18 = vpop.eup %6647 }
 0x824   :  { %v3568_v45 = vadd.f32 1.0, %v6648_v18  ;;  %v6650_v5 = vpop.eup %6649 }
 0x825   :  { %v3569_v46 = vadd.f32 1.0, %v6650_v5  ;;  %v6652_v39 = vpop.eup %6651 }
 0x826   :  { %6655 = vrcp.f32 %v3568_v45  ;;  %v6654_v37 = vpop.eup %6653 }
 0x827   :  { %6657 = vrcp.f32 %v3569_v46  ;;  %v3570_v23 = vadd.f32 1.0, %v6654_v37 }
 0x829   :  { %6659 = vrcp.f32 %v3570_v23 }
 0x830   :  { %v6656_v47 = vpop.eup %6655 }
 0x831   :  { %v3579_v61 = vmul.f32 %v6656_v47, %v6652_v39  ;;  %v6658_v49 = vpop.eup %6657 }
 0x832   :  { %v3578_v58 = vmul.f32 %v6658_v49, %v7972_v52 }
 0x833   :  { %v6660_v52 = vpop.eup %6659 }
 0x834   :  { %v3654_v50 = vpop.f32.mrb[12].mxu0  ;;  %v3725_v43 = vpop.f32.mrb[12].mxu1  ;;  %v8090_v19 = vadd.f32 %v3579_v61, %v3578_v58 }
 0x835   :  { %v6373_v54 = vadd.f32 %v3654_v50, %v8662_v62  ;;  %v3656_v42 = vpop.f32.mrb[13].mxu0  ;;  %v3727_v18 = vpop.f32.mrb[13].mxu1  ;;  %v6389_v37 = vadd.f32 %v3725_v43, %v8603_v55 }
 0x836   :  { %v6374_v45 = vadd.f32 %v3656_v42, %v8602_v13  ;;  %6661 = vtanh.f32 %v8090_v19  ;;  %v6390_v39 = vadd.f32 %v3727_v18, %v7403_v30 }
 0x837   :  { %v4728_v57 = vmul.f32 -1.442695, %v6373_v54  ;;  %v4730_v47 = vmul.f32 -1.442695, %v6389_v37 }
 0x838   :  { %v4729_v5 = vmul.f32 -1.442695, %v6374_v45 }
 0x839   :  { %6663 = vpow2.f32 %v4728_v57 }
 0x83a   :  { %6665 = vpow2.f32 %v4729_v5 }
 0x83b   :  { %6667 = vtanh.f32 %v6390_v39 }
 0x83c   :  { %6669 = vpow2.f32 %v4730_v47  ;;  %v8910_v47 = vld [vmem:[#allocation33_spill] sm:$0xff] }
 0x840   :  { %v6662_v46 = vpop.eup %6661 }
 0x841   :  { %v3582_v61 = vmul.f32 %v6662_v46, %v6660_v52  ;;  %v8905_v46 = vld [vmem:[#allocation28_spill] sm:$0xff] }
 0x843   :  { %v6664_v49 = vpop.eup %6663  ;;  %3823 = vmatmul.mubr.f32.vlgmr.msra.gmra.mrb[28].mxu0 %v3582_v61  ;;  %3894 = vmatmul.mubr.f32.vlgmr.msra.gmra.mrb[28].mxu1 %v3582_v61  ;;  %v8911_v61 = vld [vmem:[#allocation34_spill] sm:$0xff] }
 0x844   :  { %v3743_v58 = vadd.f32 1.0, %v6664_v49  ;;  %v6666_v23 = vpop.eup %6665  ;;  %6084 = vmatpush1.bf16.msra.mxu0 %v8604_v41  ;;  %6116 = vmatpush1.bf16.msra.mxu1 %v8605_v9  ;;  %v8914_v49 = vld [vmem:[#allocation37_spill] sm:$0xff] }
 0x845   :  { %v3744_v50 = vadd.f32 1.0, %v6666_v23  ;;  %6086 = vmatprep.subr.bf16.mxu0 %v8663_v59  ;;  %6118 = vmatprep.subr.bf16.mxu1 %v8664_v20  ;;  %v6668_v43 = vpop.eup %6667  ;;  %v8916_v23 = vld [vmem:[#allocation39_spill] sm:$0xff] }
 0x846   :  { %6671 = vrcp.f32 %v3743_v58  ;;  %3964 = vmatprep.mubr.f32.mxu0 %v8540_v51  ;;  %4035 = vmatprep.mubr.f32.mxu1 %v8540_v51  ;;  %v6670_v54 = vpop.eup %6669  ;;  %v8915_v58 = vld [vmem:[#allocation38_spill] sm:$0xff] }
 0x847   :  { %6673 = vrcp.f32 %v3744_v50  ;;  %v3745_v57 = vadd.f32 1.0, %v6670_v54  ;;  %v8917_v50 = vld [vmem:[#allocation40_spill] sm:$0xff]  ;;  %v8919_v54 = vld [vmem:[#allocation42_spill] sm:$0xff] }
 0x848   :  { %6088 = vmatpush1.bf16.msra.mxu0 %v8665_v12  ;;  %6120 = vmatpush1.bf16.msra.mxu1 %v8666_v6 }
 0x849   :  { %6090 = vmatprep.subr.bf16.mxu0 %v8667_v1  ;;  %6122 = vmatprep.subr.bf16.mxu1 %v8723_v60  ;;  %6675 = vrcp.f32 %v3745_v57  ;;  %v8923_v57 = vld [vmem:[#allocation46_spill] sm:$0xff] }
 0x84c   :  { %6092 = vmatpush1.bf16.msra.mxu0 %v8724_v28  ;;  %6124 = vmatpush1.bf16.msra.mxu1 %v8725_v33 }
 0x84d   :  { %6094 = vmatprep.subr.bf16.mxu0 %v8726_v8  ;;  %6126 = vmatprep.subr.bf16.mxu1 %v8727_v11 }
 0x850   :  { %v6672_v42 = vpop.eup %6671  ;;  %6096 = vmatpush1.bf16.msra.mxu0 %v8616_v21  ;;  %6128 = vmatpush1.bf16.msra.mxu1 %v8617_v48 }
 0x851   :  { %v3754_v18 = vmul.f32 %v6672_v42, %v6668_v43  ;;  %v6674_v45 = vpop.eup %6673  ;;  %6098 = vmatprep.subr.bf16.mxu0 %v8728_v24  ;;  %6130 = vmatprep.subr.bf16.mxu1 %v8729_v56  ;;  %v8918_v43 = vld [vmem:[#allocation41_spill] sm:$0xff]  ;;  %v8920_v42 = vld [vmem:[#allocation43_spill] sm:$0xff] }
 0x852   :  { %v3753_v5 = vmul.f32 %v6674_v45, %v7998_v2  ;;  %v8922_v45 = vld [vmem:[#allocation45_spill] sm:$0xff] }
 0x853   :  { %v6676_v2 = vpop.eup %6675 }
 0x854   :  { %v8116_v37 = vadd.f32 %v3754_v18, %v3753_v5  ;;  %6100 = vmatpush1.bf16.msra.mxu0 %v8675_v44  ;;  %6132 = vmatpush1.bf16.msra.mxu1 %v8676_v53  ;;  %v8921_v18 = vld [vmem:[#allocation44_spill] sm:$0xff]  ;;  %v8924_v5 = vld [vmem:[#allocation47_spill] sm:$0xff] }
 0x855   :  { %6102 = vmatprep.subr.bf16.mxu0 %v8677_v36  ;;  %6134 = vmatprep.subr.bf16.mxu1 %v8678_v16 }
 0x856   :  { %6677 = vtanh.f32 %v8116_v37 }
 0x858   :  { %6104 = vmatpush1.bf16.msra.mxu0 %v8679_v32  ;;  %6136 = vmatpush1.bf16.msra.mxu1 %v8680_v3 }
 0x859   :  { %6106 = vmatprep.subr.bf16.mxu0 %v8681_v7  ;;  %6138 = vmatprep.subr.bf16.mxu1 %v8627_v0 }
 0x85c   :  { %6108 = vmatpush1.bf16.msra.mxu0 %v8628_v63  ;;  %6140 = vmatpush1.bf16.msra.mxu1 %v8629_v40 }
 0x85d   :  { %6110 = vmatprep.subr.bf16.mxu0 %v8630_v26  ;;  %6142 = vmatprep.subr.bf16.mxu1 %v8631_v14 }
 0x860   :  { %v6678_v52 = vpop.eup %6677  ;;  %6112 = vmatpush1.bf16.msra.mxu0 %v8632_v4  ;;  %6144 = vmatpush1.bf16.msra.mxu1 %v8633_v10 }
 0x861   :  { %6146 = vmatprep.subr.bf16.mxu0 %v8634_v31  ;;  %6178 = vmatprep.subr.bf16.mxu1 %v8635_v17  ;;  %v3757_v39 = vmul.f32 %v6678_v52, %v6676_v2  ;;  %v8903_v31 = vld [vmem:[#allocation26_spill] sm:$0xff]  ;;  %v8904_v17 = vld [vmem:[#allocation27_spill] sm:$0xff]  ;;  %v8925_v2 = vld [vmem:[#allocation48_spill] sm:$0xff] }
 0x862   :  { %v8926_v52 = vld [vmem:[#allocation49_spill] sm:$0xff] }
 0x863   :  { %3965 = vmatmul.mubr.f32.vlgmr.msra.gmra.mrb[28].mxu0 %v3757_v39  ;;  %4036 = vmatmul.mubr.f32.vlgmr.msra.gmra.mrb[28].mxu1 %v3757_v39 }
 0x864   :  { %6148 = vmatpush1.bf16.msra.mxu0 %v7051_v22  ;;  %6180 = vmatpush1.bf16.msra.mxu1 %v7054_v25  ;;  %v8906_v22 = vld [vmem:[#allocation29_spill] sm:$0xff]  ;;  %v8907_v25 = vld [vmem:[#allocation30_spill] sm:$0xff] }
 0x865   :  { %6150 = vmatprep.subr.bf16.mxu0 %v7058_v29  ;;  %6182 = vmatprep.subr.bf16.mxu1 %v7062_v34  ;;  %v8908_v29 = vld [vmem:[#allocation31_spill] sm:$0xff]  ;;  %v8909_v34 = vld [vmem:[#allocation32_spill] sm:$0xff] }
 0x866   :  { %4139 = vmatprep.mubr.f32.mxu0 %v8540_v51  ;;  %4210 = vmatprep.mubr.f32.mxu1 %v8540_v51 }
 0x868   :  { %6152 = vmatpush1.bf16.msra.mxu0 %v7064_v35  ;;  %6184 = vmatpush1.bf16.msra.mxu1 %v7068_v38  ;;  %v8912_v35 = vld [vmem:[#allocation35_spill] sm:$0xff]  ;;  %v8913_v38 = vld [vmem:[#allocation36_spill] sm:$0xff] }
 0x869   :  { %6154 = vmatprep.subr.bf16.mxu0 %v8903_v31  ;;  %6186 = vmatprep.subr.bf16.mxu1 %v8904_v17  ;;  %v8927_v31 = vld [vmem:[#allocation50_spill] sm:$0xff]  ;;  %v8928_v17 = vld [vmem:[#allocation51_spill] sm:$0xff] }
 0x86c   :  { %6156 = vmatpush1.bf16.msra.mxu0 %v8905_v46  ;;  %6188 = vmatpush1.bf16.msra.mxu1 %v8906_v22  ;;  %v8929_v46 = vld [vmem:[#allocation52_spill] sm:$0xff]  ;;  %v8930_v22 = vld [vmem:[#allocation53_spill] sm:$0xff] }
 0x86d   :  { %6158 = vmatprep.subr.bf16.mxu0 %v8907_v25  ;;  %6190 = vmatprep.subr.bf16.mxu1 %v8908_v29  ;;  %v8931_v25 = vld [vmem:[#allocation54_spill] sm:$0xff]  ;;  %v8932_v29 = vld [vmem:[#allocation55_spill] sm:$0xff] }
 0x870   :  { %6160 = vmatpush1.bf16.msra.mxu0 %v8909_v34  ;;  %6192 = vmatpush1.bf16.msra.mxu1 %v8910_v47  ;;  %v8933_v34 = vld [vmem:[#allocation56_spill] sm:$0xff]  ;;  %v8934_v47 = vld [vmem:[#allocation57_spill] sm:$0xff] }
 0x871   :  { %6162 = vmatprep.subr.bf16.mxu0 %v8911_v61  ;;  %6194 = vmatprep.subr.bf16.mxu1 %v8912_v35  ;;  %v8935_v61 = vld [vmem:[#allocation58_spill] sm:$0xff]  ;;  %v8936_v35 = vld [vmem:[#allocation59_spill] sm:$0xff] }
 0x874   :  { %6164 = vmatpush1.bf16.msra.mxu0 %v8913_v38  ;;  %6196 = vmatpush1.bf16.msra.mxu1 %v8914_v49  ;;  %v8938_v38 = vld [vmem:[#allocation61_spill] sm:$0xff]  ;;  %v8939_v49 = vld [vmem:[#allocation62_spill] sm:$0xff] }
 0x875   :  { %6166 = vmatprep.subr.bf16.mxu0 %v8915_v58  ;;  %6198 = vmatprep.subr.bf16.mxu1 %v8916_v23  ;;  %v8940_v58 = vld [vmem:[#allocation63_spill] sm:$0xff]  ;;  %v8941_v23 = vld [vmem:[#allocation64_spill] sm:$0xff] }
 0x878   :  { %6168 = vmatpush1.bf16.msra.mxu0 %v8917_v50  ;;  %6200 = vmatpush1.bf16.msra.mxu1 %v8918_v43  ;;  %v8942_v50 = vld [vmem:[#allocation65_spill] sm:$0xff]  ;;  %v8943_v43 = vld [vmem:[#allocation66_spill] sm:$0xff] }
 0x879   :  { %6170 = vmatprep.subr.bf16.mxu0 %v8919_v54  ;;  %6202 = vmatprep.subr.bf16.mxu1 %v8920_v42  ;;  %v8944_v54 = vld [vmem:[#allocation67_spill] sm:$0xff]  ;;  %v8945_v42 = vld [vmem:[#allocation68_spill] sm:$0xff] }
 0x87c   :  { %6172 = vmatpush1.bf16.msra.mxu0 %v8921_v18  ;;  %6204 = vmatpush1.bf16.msra.mxu1 %v8922_v45  ;;  %v8946_v18 = vld [vmem:[#allocation69_spill] sm:$0xff]  ;;  %v8947_v45 = vld [vmem:[#allocation70_spill] sm:$0xff] }
 0x87d   :  { %6174 = vmatprep.subr.bf16.mxu0 %v8923_v57  ;;  %6206 = vmatprep.subr.bf16.mxu1 %v8924_v5  ;;  %v8948_v57 = vld [vmem:[#allocation71_spill] sm:$0xff]  ;;  %v8949_v5 = vld [vmem:[#allocation72_spill] sm:$0xff] }
 0x880   :  { %6176 = vmatpush1.bf16.msra.mxu0 %v8925_v2  ;;  %6208 = vmatpush1.bf16.msra.mxu1 %v8926_v52  ;;  %v8950_v2 = vld [vmem:[#allocation73_spill] sm:$0xff]  ;;  %v8951_v52 = vld [vmem:[#allocation74_spill] sm:$0xff] }
 0x881   :  { %6210 = vmatprep.subr.bf16.mxu0 %v8927_v31  ;;  %6242 = vmatprep.subr.bf16.mxu1 %v8928_v17  ;;  %v8952_v31 = vld [vmem:[#allocation75_spill] sm:$0xff]  ;;  %v8953_v17 = vld [vmem:[#allocation76_spill] sm:$0xff] }
 0x883   :  { %4140 = vmatmul.mubr.f32.vlgmr.msra.gmra.mrb[14].mxu0 %v3757_v39  ;;  %4211 = vmatmul.mubr.f32.vlgmr.msra.gmra.mrb[14].mxu1 %v3757_v39  ;;  %v8937_v39 = vld [vmem:[#allocation60_spill] sm:$0xff] }
 0x884   :  { %6212 = vmatpush1.bf16.msra.mxu0 %v8929_v46  ;;  %6244 = vmatpush1.bf16.msra.mxu1 %v8930_v22  ;;  %v8954_v46 = vld [vmem:[#allocation77_spill] sm:$0xff]  ;;  %v8955_v22 = vld [vmem:[#allocation78_spill] sm:$0xff] }
 0x885   :  { %6214 = vmatprep.subr.bf16.mxu0 %v8931_v25  ;;  %6246 = vmatprep.subr.bf16.mxu1 %v8932_v29  ;;  %v8956_v25 = vld [vmem:[#allocation79_spill] sm:$0xff]  ;;  %v8957_v29 = vld [vmem:[#allocation80_spill] sm:$0xff] }
 0x886   :  { %4309 = vmatprep.mubr.f32.mxu0 %v8540_v51  ;;  %4380 = vmatprep.mubr.f32.mxu1 %v8540_v51 }
 0x888   :  { %6216 = vmatpush1.bf16.msra.mxu0 %v8933_v34  ;;  %6248 = vmatpush1.bf16.msra.mxu1 %v8934_v47  ;;  %v8958_v34 = vld [vmem:[#allocation81_spill] sm:$0xff]  ;;  %v8959_v47 = vld [vmem:[#allocation82_spill] sm:$0xff] }
 0x889   :  { %6218 = vmatprep.subr.bf16.mxu0 %v8935_v61  ;;  %6250 = vmatprep.subr.bf16.mxu1 %v8936_v35  ;;  %v8960_v61 = vld [vmem:[#allocation83_spill] sm:$0xff] }
 0x88c   :  { %6220 = vmatpush1.bf16.msra.mxu0 %v8937_v39  ;;  %6252 = vmatpush1.bf16.msra.mxu1 %v8938_v38  ;;  %v8961_v38 = vld [vmem:[#allocation117_spill] sm:$0xff] }
 0x88d   :  { %6222 = vmatprep.subr.bf16.mxu0 %v8939_v49  ;;  %6254 = vmatprep.subr.bf16.mxu1 %v8940_v58 }
 0x890   :  { %6224 = vmatpush1.bf16.msra.mxu0 %v8941_v23  ;;  %6256 = vmatpush1.bf16.msra.mxu1 %v8942_v50 }
 0x891   :  { %6226 = vmatprep.subr.bf16.mxu0 %v8943_v43  ;;  %6258 = vmatprep.subr.bf16.mxu1 %v8944_v54 }
 0x894   :  { %6228 = vmatpush1.bf16.msra.mxu0 %v8945_v42  ;;  %6260 = vmatpush1.bf16.msra.mxu1 %v8946_v18  ;;  %v8962_v42 = vld [vmem:[#allocation119_spill] sm:$0xff] }
 0x895   :  { %6230 = vmatprep.subr.bf16.mxu0 %v8947_v45  ;;  %6262 = vmatprep.subr.bf16.mxu1 %v8948_v57 }
 0x898   :  { %6232 = vmatpush1.bf16.msra.mxu0 %v8949_v5  ;;  %6264 = vmatpush1.bf16.msra.mxu1 %v8950_v2 }
 0x899   :  { %6234 = vmatprep.subr.bf16.mxu0 %v8951_v52  ;;  %6266 = vmatprep.subr.bf16.mxu1 %v8952_v31 }
 0x89c   :  { %6236 = vmatpush1.bf16.msra.mxu0 %v8953_v17  ;;  %6268 = vmatpush1.bf16.msra.mxu1 %v8954_v46 }
 0x89d   :  { %6238 = vmatprep.subr.bf16.mxu0 %v8955_v22  ;;  %6270 = vmatprep.subr.bf16.mxu1 %v8956_v25 }
 0x8a0   :  { %6240 = vmatpush1.bf16.msra.mxu0 %v8957_v29  ;;  %6272 = vmatpush1.bf16.msra.mxu1 %v8958_v34 }
 0x8a1   :  { %6274 = vmatprep.subr.bf16.mxu0 %v8959_v47  ;;  %6306 = vmatprep.subr.bf16.mxu1 %v8960_v61 }
 0x936   :  { %v3966_v35 = vpop.f32.mrb[28].mxu0  ;;  %v4037_v39 = vpop.f32.mrb[28].mxu1 }
 0x937   :  { %v4042_v49 = vadd.f32 %v3966_v35, %v8961_v38  ;;  %v3968_v58 = vpop.f32.mrb[29].mxu0  ;;  %v4039_v23 = vpop.f32.mrb[29].mxu1  ;;  %v4044_v18 = vadd.f32 %v4037_v39, %v8962_v42 }
 0x938   :  { %v4043_v50 = vadd.f32 %v3968_v58, %v8659_v27  ;;  %v4045_v45 = vadd.f32 %v4039_v23, %v8722_v15 }
 0x939   :  { %v4731_v43 = vmul.f32 -1.442695, %v4042_v49  ;;  %v4733_v57 = vmul.f32 -1.442695, %v4044_v18 }
 0x93a   :  { %v4732_v54 = vmul.f32 -1.442695, %v4043_v50 }
 0x93b   :  { %6679 = vpow2.f32 %v4731_v43 }
 0x93c   :  { %6681 = vpow2.f32 %v4732_v54 }
 0x93d   :  { %6683 = vtanh.f32 %v4045_v45 }
 0x93e   :  { %6685 = vpow2.f32 %v4733_v57 }
 0x945   :  { %v6680_v5 = vpop.eup %6679 }
 0x946   :  { %v4055_v2 = vadd.f32 1.0, %v6680_v5  ;;  %v6682_v52 = vpop.eup %6681 }
 0x947   :  { %v4056_v31 = vadd.f32 1.0, %v6682_v52  ;;  %v6684_v17 = vpop.eup %6683 }
 0x948   :  { %6687 = vrcp.f32 %v4055_v2  ;;  %v6686_v46 = vpop.eup %6685 }
 0x949   :  { %6689 = vrcp.f32 %v4056_v31  ;;  %v4057_v34 = vadd.f32 1.0, %v6686_v46  ;;  %v4579_v46 = vld [vmem:[#allocation16 + $0x78] sm:$0xff] }
 0x94b   :  { %6691 = vrcp.f32 %v4057_v34 }
 0x952   :  { %v6688_v22 = vpop.eup %6687 }
 0x953   :  { %v4066_v25 = vmul.f32 %v6688_v22, %v6684_v17  ;;  %v6690_v29 = vpop.eup %6689  ;;  %v4578_v17 = vld [vmem:[#allocation16 + $0x70] sm:$0xff] }
 0x954   :  { %v4065_v47 = vmul.f32 %v6690_v29, %v8090_v19  ;;  %v6359_v22 = vpack.c.bf16 %v4579_v46, %v4578_v17 }
 0x955   :  { %v6692_v19 = vpop.eup %6691 }
 0x956   :  { %v4141_v61 = vpop.f32.mrb[14].mxu0  ;;  %v4212_v35 = vpop.f32.mrb[14].mxu1  ;;  %v8208_v39 = vadd.f32 %v4066_v25, %v4065_v47 }
 0x957   :  { %v6375_v49 = vadd.f32 %v4141_v61, %v8662_v62  ;;  %v4143_v58 = vpop.f32.mrb[15].mxu0  ;;  %v4214_v23 = vpop.f32.mrb[15].mxu1  ;;  %v6391_v18 = vadd.f32 %v4212_v35, %v8603_v55 }
 0x958   :  { %v6376_v50 = vadd.f32 %v4143_v58, %v8602_v13  ;;  %6693 = vtanh.f32 %v8208_v39  ;;  %v6392_v45 = vadd.f32 %v4214_v23, %v7403_v30 }
 0x959   :  { %v4734_v43 = vmul.f32 -1.442695, %v6375_v49  ;;  %v4736_v5 = vmul.f32 -1.442695, %v6391_v18 }
 0x95a   :  { %v4735_v54 = vmul.f32 -1.442695, %v6376_v50 }
 0x95b   :  { %6695 = vpow2.f32 %v4734_v43 }
 0x95c   :  { %6697 = vpow2.f32 %v4735_v54 }
 0x95d   :  { %6699 = vtanh.f32 %v6392_v45 }
 0x95e   :  { %6701 = vpow2.f32 %v4736_v5 }
 0x962   :  { %v6694_v57 = vpop.eup %6693 }
 0x963   :  { %v4069_v2 = vmul.f32 %v6694_v57, %v6692_v19 }
 0x965   :  { %v6696_v62 = vpop.eup %6695  ;;  %4310 = vmatmul.mubr.f32.vlgmr.msra.gmra.mrb[30].mxu0 %v4069_v2  ;;  %4381 = vmatmul.mubr.f32.vlgmr.msra.gmra.mrb[30].mxu1 %v4069_v2 }
 0x966   :  { %v4230_v52 = vadd.f32 1.0, %v6696_v62  ;;  %v6698_v13 = vpop.eup %6697  ;;  %6276 = vmatpush1.bf16.msra.mxu0 %v8604_v41  ;;  %6308 = vmatpush1.bf16.msra.mxu1 %v8605_v9 }
 0x967   :  { %v4231_v31 = vadd.f32 1.0, %v6698_v13  ;;  %6278 = vmatprep.subr.bf16.mxu0 %v8663_v59  ;;  %6310 = vmatprep.subr.bf16.mxu1 %v8664_v20  ;;  %v6700_v30 = vpop.eup %6699 }
 0x968   :  { %6703 = vrcp.f32 %v4230_v52  ;;  %4451 = vmatprep.mubr.f32.mxu0 %v8540_v51  ;;  %4522 = vmatprep.mubr.f32.mxu1 %v8540_v51  ;;  %v6702_v55 = vpop.eup %6701 }
 0x969   :  { %6705 = vrcp.f32 %v4231_v31  ;;  %v4232_v20 = vadd.f32 1.0, %v6702_v55  ;;  %v4740_v31 = vld [vmem:[%s8277_s8] ss:$0 sm:$0xff] }
 0x96a   :  { %6280 = vmatpush1.bf16.msra.mxu0 %v8665_v12  ;;  %6312 = vmatpush1.bf16.msra.mxu1 %v8666_v6 }
 0x96b   :  { %6282 = vmatprep.subr.bf16.mxu0 %v8667_v1  ;;  %6314 = vmatprep.subr.bf16.mxu1 %v8723_v60  ;;  %6707 = vrcp.f32 %v4232_v20  ;;  %v4573_v60 = vld [vmem:[#allocation16 + $0x48] sm:$0xff] }
 0x96e   :  { %6284 = vmatpush1.bf16.msra.mxu0 %v8724_v28  ;;  %6316 = vmatpush1.bf16.msra.mxu1 %v8725_v33  ;;  %v4574_v33 = vld [vmem:[#allocation16 + $0x50] sm:$0xff] }
 0x96f   :  { %6286 = vmatprep.subr.bf16.mxu0 %v8726_v8  ;;  %6318 = vmatprep.subr.bf16.mxu1 %v8727_v11  ;;  %v4575_v8 = vld [vmem:[#allocation16 + $0x58] sm:$0xff] }
 0x970   :  { %v6353_v11 = vpack.c.bf16 %v4575_v8, %v4574_v33 }
 0x972   :  { %v6704_v41 = vpop.eup %6703  ;;  %6288 = vmatpush1.bf16.msra.mxu0 %v8616_v21  ;;  %6320 = vmatpush1.bf16.msra.mxu1 %v8617_v48 }
 0x973   :  { %v4241_v9 = vmul.f32 %v6704_v41, %v6700_v30  ;;  %v6706_v59 = vpop.eup %6705  ;;  %6290 = vmatprep.subr.bf16.mxu0 %v8728_v24  ;;  %6322 = vmatprep.subr.bf16.mxu1 %v8729_v56  ;;  %v4576_v24 = vld [vmem:[#allocation16 + $0x60] sm:$0xff]  ;;  %v4577_v56 = vld [vmem:[#allocation16 + $0x68] sm:$0xff] }
 0x974   :  { %v4240_v12 = vmul.f32 %v6706_v59, %v8116_v37  ;;  %v6356_v37 = vpack.c.bf16 %v4577_v56, %v4576_v24 }
 0x975   :  { %v6708_v21 = vpop.eup %6707 }
 0x976   :  { %v4242_v6 = vadd.f32 %v4241_v9, %v4240_v12  ;;  %6292 = vmatpush1.bf16.msra.mxu0 %v8675_v44  ;;  %6324 = vmatpush1.bf16.msra.mxu1 %v8676_v53  ;;  %v4565_v44 = vld [vmem:[#allocation16 + $0x8] sm:$0xff]  ;;  %v6902_v53 = vmov 0.0|0.0  }
 0x977   :  { %6294 = vmatprep.subr.bf16.mxu0 %v8677_v36  ;;  %6326 = vmatprep.subr.bf16.mxu1 %v8678_v16  ;;  %v4571_v36 = vld [vmem:[#allocation16 + $0x38] sm:$0xff] }
 0x978   :  { %6709 = vtanh.f32 %v4242_v6 }
 0x97a   :  { %6296 = vmatpush1.bf16.msra.mxu0 %v8679_v32  ;;  %6328 = vmatpush1.bf16.msra.mxu1 %v8680_v3  ;;  %v4569_v3 = vld [vmem:[#allocation16 + $0x28] sm:$0xff]  ;;  %v4572_v32 = vld [vmem:[#allocation16 + $0x40] sm:$0xff] }
 0x97b   :  { %6298 = vmatprep.subr.bf16.mxu0 %v8681_v7  ;;  %6330 = vmatprep.subr.bf16.mxu1 %v8627_v0  ;;  %v4564_v7 = vld [vmem:[#allocation16] sm:$0xff]  ;;  %v6350_v28 = vpack.c.bf16 %v4573_v60, %v4572_v32 }
 0x97c   :  { %v6338_v0 = vpack.c.bf16 %v4565_v44, %v4564_v7 }
 0x97e   :  { %6300 = vmatpush1.bf16.msra.mxu0 %v8628_v63  ;;  %6332 = vmatpush1.bf16.msra.mxu1 %v8629_v40  ;;  %v4566_v63 = vld [vmem:[#allocation16 + $0x10] sm:$0xff]  ;;  %v4567_v40 = vld [vmem:[#allocation16 + $0x18] sm:$0xff] }
 0x97f   :  { %6302 = vmatprep.subr.bf16.mxu0 %v8630_v26  ;;  %6334 = vmatprep.subr.bf16.mxu1 %v8631_v14  ;;  %v6341_v26 = vpack.c.bf16 %v4567_v40, %v4566_v63  ;;  %v4568_v14 = vld [vmem:[#allocation16 + $0x20] sm:$0xff] }
 0x982   :  { %v6710_v48 = vpop.eup %6709  ;;  %6304 = vmatpush1.bf16.msra.mxu0 %v8632_v4  ;;  %6336 = vmatpush1.bf16.msra.mxu1 %v8633_v10  ;;  %v6344_v4 = vpack.c.bf16 %v4569_v3, %v4568_v14  ;;  %v4570_v10 = vld [vmem:[#allocation16 + $0x30] sm:$0xff] }
 0x983   :  { %v4244_v1 = vmul.f32 %v6710_v48, %v6708_v21  ;;  %6337 = vmatprep.subr.bf16.mxu0 %v6902_v53  ;;  %v6347_v16 = vpack.c.bf16 %v4571_v36, %v4570_v10 }
 0x985   :  { %4452 = vmatmul.mubr.f32.vlgmr.msra.gmra.mrb[30].mxu0 %v4244_v1  ;;  %4523 = vmatmul.mubr.f32.vlgmr.msra.gmra.mrb[30].mxu1 %v4244_v1 }
 0x986   :  { %6339 = vmatpush3.bf16.msra.mxu0 %v6338_v0  ;;  %4790 = vmatprep.mubr.msk.f32.mxu0 %vm6903_vm1, %v8540_v51 }
 0x987   :  { %6340 = vmatprep.subr.bf16.mxu0 %v6902_v53 }
 0x98a   :  { %6342 = vmatpush3.bf16.msra.mxu0 %v6341_v26 }
 0x98b   :  { %6343 = vmatprep.subr.bf16.mxu0 %v6902_v53 }
 0x98e   :  { %6345 = vmatpush3.bf16.msra.mxu0 %v6344_v4 }
 0x98f   :  { %6346 = vmatprep.subr.bf16.mxu0 %v6902_v53 }
 0x992   :  { %6348 = vmatpush3.bf16.msra.mxu0 %v6347_v16 }
 0x993   :  { %6349 = vmatprep.subr.bf16.mxu0 %v6902_v53 }
 0x996   :  { %6351 = vmatpush3.bf16.msra.mxu0 %v6350_v28 }
 0x997   :  { %6352 = vmatprep.subr.bf16.mxu0 %v6902_v53 }
 0x99a   :  { %6354 = vmatpush3.bf16.msra.mxu0 %v6353_v11 }
 0x99b   :  { %6355 = vmatprep.subr.bf16.mxu0 %v6902_v53 }
 0x99e   :  { %6357 = vmatpush3.bf16.msra.mxu0 %v6356_v37 }
 0x99f   :  { %6358 = vmatprep.subr.bf16.mxu0 %v6902_v53 }
 0x9a2   :  { %6360 = vmatpush3.bf16.msra.mxu0 %v6359_v22 }
 0xa58   :  { %v4453_v25 = vpop.f32.mrb[30].mxu0  ;;  %v4524_v29 = vpop.f32.mrb[30].mxu1 }
 0xa59   :  { %v4529_v34 = vadd.f32 %v4453_v25, %v8961_v38  ;;  %v4455_v47 = vpop.f32.mrb[31].mxu0  ;;  %v4526_v61 = vpop.f32.mrb[31].mxu1  ;;  %v4531_v51 = vadd.f32 %v4524_v29, %v8962_v42 }
 0xa5a   :  { %v4530_v35 = vadd.f32 %v4455_v47, %v8659_v27  ;;  %v4532_v23 = vadd.f32 %v4526_v61, %v8722_v15 }
 0xa5b   :  { %v4737_v49 = vmul.f32 -1.442695, %v4529_v34  ;;  %v4739_v50 = vmul.f32 -1.442695, %v4531_v51 }
 0xa5c   :  { %v4738_v58 = vmul.f32 -1.442695, %v4530_v35 }
 0xa5d   :  { %6711 = vpow2.f32 %v4737_v49 }
 0xa5e   :  { %6713 = vpow2.f32 %v4738_v58 }
 0xa5f   :  { %6715 = vtanh.f32 %v4532_v23 }
 0xa60   :  { %6717 = vpow2.f32 %v4739_v50 }
 0xa67   :  { %v6712_v43 = vpop.eup %6711 }
 0xa68   :  { %v4542_v54 = vadd.f32 1.0, %v6712_v43  ;;  %v6714_v18 = vpop.eup %6713 }
 0xa69   :  { %v4543_v38 = vadd.f32 1.0, %v6714_v18  ;;  %v6716_v19 = vpop.eup %6715 }
 0xa6a   :  { %6719 = vrcp.f32 %v4542_v54  ;;  %v6718_v45 = vpop.eup %6717 }
 0xa6b   :  { %6721 = vrcp.f32 %v4543_v38  ;;  %v4544_v2 = vadd.f32 1.0, %v6718_v45 }
 0xa6d   :  { %6723 = vrcp.f32 %v4544_v2 }
 0xa74   :  { %v6720_v27 = vpop.eup %6719 }
 0xa75   :  { %v4553_v57 = vmul.f32 %v6720_v27, %v6716_v19  ;;  %v6722_v5 = vpop.eup %6721 }
 0xa76   :  { %v4552_v62 = vmul.f32 %v6722_v5, %v8208_v39 }
 0xa77   :  { %v6724_v15 = vpop.eup %6723 }
 0xa78   :  { %v4554_v42 = vadd.f32 %v4553_v57, %v4552_v62 }
 0xa7a   :  { %6725 = vtanh.f32 %v4554_v42 }
 0xa84   :  { %v6726_v52 = vpop.eup %6725 }
 0xa85   :  { %v4556_v13 = vmul.f32 %v6726_v52, %v6724_v15 }
 0xa87   :  { %4791 = vmatmul.mubr.f32.vlgmr.msra.gmra.mrb[32].mxu0 %v4556_v13 }
 0xb5a   :  { %v4653_v30 = vpop.f32.mrb[32].mxu0 }
 0xb5b   :  { %v4654_v55 = vadd.f32 %v4740_v31, %v4653_v30  ;;  %v4792_v41 = vpop.f32.mrb[33].mxu0 }
 0xb5d   :  { %4657 = vst [vmem:[#allocation18] sm:$0xff] %v4654_v55 }
 0xb5e   :  { %6870 = shalt.err (!%p6867_p10)
}
 0xb5f   :  { %s6871_s27 = scalar_lea.hbm %s8278_s9, 128 }
 0xb60   :  { %p6872_p11 = scmp.ne.s32.totalorder %s8278_s9, %s6871_s27  ;;  %p6875_p12 = scmp.lt.u32.totalorder %s6871_s27, %s8278_s9 }
 0xb62   :  { %p6877_p13 = pnand %p6875_p12, %p6872_p11 }
 0xb64   :  { %6880 = shalt.err (!%p6877_p13)
}
 0xb65   :  { %4667 = dma.vmem_to_hbm [thread:$0]  %s4665_s21, 128, %s8278_s9, [#allocation9]  }
 0xb66   :  { %6889 = dma.done.wait [#allocation9], 128  }
 0xb67   :  { %6890 = vsyncadd [#allocation9], 4294967168 }
 0xb68   :  { %4671 = vsyncpa [#allocation8], 1 }
 0xb69   :  { %4672 = vsyncpa [#allocation11], 1 }
 0xb6a   :  { %4673 = vsyncpa [#allocation14], 1 }
 0xb6b   :  { %4674 = vsyncpa [#allocation17], 1 }
 0xb6c   :  { %4675 = vsyncpa [#allocation9], 1 }

</bundles_post_ra>
